<compile_context>
chip_gen: v5e
topology: v5e:2x2
jax: 0.10.0
libtpu: 0.0.40
codegen_flags: <defaults>
</compile_context>

<pallas_src>
import jax
import jax.numpy as jnp
from jax import lax
from jax.experimental import pallas as pl
from jax.experimental.pallas import tpu as pltpu


def _round_up(x, m):
    return ((x + m - 1) // m) * m


# --------------------------------------------------------------------------- #
# Kernel (factory: bakes the Python-level step counts in, so the common case
# n_seq_steps == n_bm25_chunks == grid_k emits no extra pl.when guards)
# --------------------------------------------------------------------------- #
def _make_kernel(n_seq_steps, n_bm25_chunks, grid_k):

    def kernel(tok_ref, mask_ref, dsel_ref, bm25_ref, sel_ref, cnt_ref, w_ref,
               out_ref, qsum_ref, mmax_ref, lsum_ref):
        s = pl.program_id(1)

        # ---- init running accumulators at the first inner step ----
        @pl.when(s == 0)
        def _init():
            qsum_ref[...] = jnp.zeros(qsum_ref.shape, jnp.float32)
            mmax_ref[...] = jnp.full(mmax_ref.shape, -jnp.inf, jnp.float32)
            lsum_ref[...] = jnp.zeros(lsum_ref.shape, jnp.float32)

        # ---- masked token-sum accumulation (mean-pool numerator) ----
        def _acc_tokens():
            tok = tok_ref[...]                        # (TB, TS, D) bf16
            msk = mask_ref[...]                       # (TB, TS, 1) bf16 -> lane-only broadcast
            # mask multiply in packed bf16, single upcast for the f32 accumulate
            masked = (tok * msk).astype(jnp.float32)
            qsum_ref[...] += jnp.sum(masked, axis=1)                 # (TB, D)

        # ---- BM25 online-softmax accumulation over N chunks ----
        def _acc_bm25():
            sc = bm25_ref[...]                        # (TB, TN) f32; padding == -1e30
            cmax = jnp.max(sc, axis=1, keepdims=True)                # (TB, 1)
            mnew = jnp.maximum(mmax_ref[...], cmax)
            alpha = jnp.exp(mmax_ref[...] - mnew)
            lsum_ref[...] = alpha * lsum_ref[...] + jnp.sum(
                jnp.exp(sc - mnew), axis=1, keepdims=True)
            mmax_ref[...] = mnew

        if n_seq_steps == grid_k:
            _acc_tokens()
        else:
            pl.when(s < n_seq_steps)(_acc_tokens)

        if n_bm25_chunks == grid_k:
            _acc_bm25()
        else:
            pl.when(s < n_bm25_chunks)(_acc_bm25)

        # ---- finalize at the last inner step ----
        @pl.when(s == grid_k - 1)
        def _finalize():
            # mean pooling: denominator = attention_mask.sum(dim=1), precomputed exactly
            inv_cnt = pl.reciprocal(cnt_ref[...], approx=False)      # (TB, 1)
            q = qsum_ref[...] * inv_cnt                              # (TB, D)
            d = dsel_ref[...].astype(jnp.float32)                    # (TB, D)

            dot = jnp.sum(q * d, axis=-1, keepdims=True)
            qsq = jnp.sum(q * q, axis=-1, keepdims=True)
            dsq = jnp.sum(d * d, axis=-1, keepdims=True)
            # torch.cosine_similarity clamps EACH norm at 1e-8:
            #   rsqrt(max(||x||^2, 1e-16)) == 1 / max(||x||, 1e-8)   (two EUP rsqrts)
            inv_norm = (lax.rsqrt(jnp.maximum(qsq, 1e-16)) *
                        lax.rsqrt(jnp.maximum(dsq, 1e-16)))
            dense_sim = 0.5 * (1.0 + dot * inv_norm)                 # (TB, 1)

            # softmax(raw)[idx] == exp(sel - rowmax) / sum(exp(raw - rowmax))
            bm25_sim = (jnp.exp(sel_ref[...] - mmax_ref[...]) *
                        pl.reciprocal(lsum_ref[...], approx=False))  # (TB, 1)

            out_ref[...] = w_ref[0] * dense_sim + w_ref[1] * bm25_sim

    return kernel


# --------------------------------------------------------------------------- #
# Tiling helpers
# --------------------------------------------------------------------------- #
def _vmem_limit_bytes():
    cap = 64 * 1024 * 1024
    try:
        cap = int(pltpu.get_tpu_info().vmem_capacity_bytes)
    except Exception:
        pass
    kind = ""
    try:
        kind = jax.devices()[0].device_kind.lower()
    except Exception:
        pass
    # v7x TensorCores only have 64 MiB of physical VMEM each; get_tpu_info() may
    # report a chip-level figure, so clamp explicitly before taking 3/4 headroom.
    if "v7" in kind:
        cap = min(cap, 64 * 1024 * 1024)
    return min((cap * 3) // 4, 96 * 1024 * 1024)


def _choose_tiles(B, S, D, N, tok_isz, mask_isz, emb_isz, vmem_budget,
                  max_tb=256):
    # Batch tile: keep >= 2 batch blocks so the "parallel" grid axis can be
    # sharded across the two v7x TensorCores; cap tb so finalize stays small.
    tb = None
    for t in (256, 128, 64, 32, 16, 8):
        if t <= max_tb and B % t == 0 and 2 * t <= B:
            tb = t
            break
    if tb is None:
        for t in (256, 128, 64, 32, 16, 8):
            if B % t == 0:
                tb = t
                break
    if tb is None:
        tb = B

    # Sequence tile: fill the remaining VMEM budget with the largest TS.
    if S % 128 == 0:
        ts_cands = sorted([t for t in range(128, S + 1, 128) if S % t == 0],
                          reverse=True)
    else:
        ts_cands = [S]

    tn_est = min(_round_up(max(N, 1), 128), 512)
    budget = int(vmem_budget * 0.8)   # headroom for compiler scratch / finalize spills
    for ts in ts_cands:
        need = (2 * tb * ts * D * tok_isz      # token block (dbl-buffered, re-DMA'd per step)
                + 2 * tb * ts * mask_isz       # mask block (dbl-buffered)
                + 2 * tb * tn_est * 4          # bm25 chunk (dbl-buffered)
                + 2 * tb * D * emb_isz         # selected doc embeddings (b-only, 2 bufs alloc'd)
                + 2 * 3 * tb * 4               # bm25_sel, mask count, output
                + tb * D * 4 + 3 * tb * 4)     # scratch accumulators
        if need <= budget:
            return tb, ts
    return tb, ts_cands[-1]


# --------------------------------------------------------------------------- #
# Wrapper
# --------------------------------------------------------------------------- #
def query_eval_forward(token_embeddings, attention_mask, doc_embeddings,
                       doc_indices, bm25_raw, weights, *, tb=None, ts=None):
    """Pallas-backed equivalent of QueryEval.score on precomputed embeddings."""
    B, S, D = token_embeddings.shape
    N = bm25_raw.shape[1]

    # TODO(synk): the dense/BM25 text encoders and the doc_id -> index lookup live
    # outside the kernel; the per-query doc-embedding gather stays as XLA glue.
    d_sel = doc_embeddings[doc_indices]                                      # (B, D)
    bm25 = bm25_raw.astype(jnp.float32)                                      # (B, N)
    bm25_sel = jnp.take_along_axis(
        bm25, doc_indices.astype(jnp.int32)[:, None], axis=1)                # (B, 1)
    cnt = attention_mask.astype(jnp.float32).sum(axis=1, keepdims=True)      # (B, 1)
    # (B, S, 1) bf16 mask: in-kernel broadcast against (TB, TS, D) is lane-only.
    mask3 = attention_mask.astype(jnp.bfloat16)[:, :, None]
    w = weights.astype(jnp.float32)                                          # (2,)

    vmem_limit = _vmem_limit_bytes()
    auto_tb, auto_ts = _choose_tiles(
        B, S, D, N,
        jnp.dtype(token_embeddings.dtype).itemsize,
        jnp.dtype(mask3.dtype).itemsize,
        jnp.dtype(d_sel.dtype).itemsize,
        vmem_limit)
    tb = tb or auto_tb
    ts = ts or auto_ts
    assert B % tb == 0 and S % ts == 0, (B, tb, S, ts)

    n_seq = S // ts
    tn = min(_round_up(pl.cdiv(N, n_seq), 128), 512)
    tn = min(tn, _round_up(N, 128))
    n_bm = pl.cdiv(N, tn)
    grid_k = max(n_seq, n_bm)
    n_pad = n_bm * tn
    if n_pad != N:
        # -1e30 padding: contributes exp(...) == 0 to the softmax denominator.
        bm25 = jnp.pad(bm25, ((0, 0), (0, n_pad - N)), constant_values=-1e30)

    # Index maps (clamped variants only materialize when the two reductions have
    # different step counts; clamped blocks are never re-DMA'd and compute is
    # skipped via pl.when inside the kernel).
    if n_seq == grid_k:
        tok_map = lambda b, s: (b, s, 0)
    else:
        tok_map = lambda b, s: (b, jnp.minimum(s, n_seq - 1), 0)
    if n_bm == grid_k:
        bm_map = lambda b, s: (b, s)
    else:
        bm_map = lambda b, s: (b, jnp.minimum(s, n_bm - 1))
    bcast_map = lambda b, s: (b, 0)

    cost = pl.CostEstimate(
        flops=int(3 * B * S * D + 8 * B * D + 6 * B * n_pad + 16 * B),
        transcendentals=int(B * n_pad + 5 * B),
        bytes_accessed=int(
            token_embeddings.size * jnp.dtype(token_embeddings.dtype).itemsize
            + mask3.size * 2
            + d_sel.size * jnp.dtype(d_sel.dtype).itemsize
            + B * n_pad * 4 + 3 * B * 4 + 8 + B * 4),
    )

    grid_spec = pltpu.PrefetchScalarGridSpec(
        num_scalar_prefetch=0,
        grid=(B // tb, grid_k),
        in_specs=[
            pl.BlockSpec((tb, ts, D), tok_map),                  # token embeddings
            pl.BlockSpec((tb, ts, 1), tok_map),                  # attention mask
            pl.BlockSpec((tb, D), bcast_map),                    # selected doc embeddings
            pl.BlockSpec((tb, tn), bm_map),                      # bm25 raw-score chunk
            pl.BlockSpec((tb, 1), bcast_map),                    # selected bm25 raw score
            pl.BlockSpec((tb, 1), bcast_map),                    # mask counts (mean denom)
            pl.BlockSpec(memory_space=pltpu.MemorySpace.SMEM),   # weights (2,)
        ],
        out_specs=pl.BlockSpec((tb, 1), bcast_map),
        scratch_shapes=[
            pltpu.VMEM((tb, D), jnp.float32),   # running masked token sum
            pltpu.VMEM((tb, 1), jnp.float32),   # running bm25 row max
            pltpu.VMEM((tb, 1), jnp.float32),   # running bm25 exp-sum
        ],
    )

    out = pl.pallas_call(
        _make_kernel(n_seq, n_bm, grid_k),
        out_shape=jax.ShapeDtypeStruct((B, 1), jnp.float32),
        grid_spec=grid_spec,
        compiler_params=pltpu.CompilerParams(
            dimension_semantics=("parallel", "arbitrary"),
            vmem_limit_bytes=int(vmem_limit),
        ),
        cost_estimate=cost,
    )(token_embeddings, mask3, d_sel, bm25, bm25_sel, cnt, w)
    return out[:, 0]


# --------------------------------------------------------------------------- #
# Pure-JAX reference (mirrors the PyTorch semantics)
# --------------------------------------------------------------------------- #
def query_eval_reference(token_embeddings, attention_mask, doc_embeddings,
                         doc_indices, bm25_raw, weights):
    mask = attention_mask.astype(jnp.float32)
    masked = token_embeddings * mask[:, :, None]
    q = masked.sum(axis=1) / mask.sum(axis=1)[:, None]
    d = doc_embeddings[doc_indices]
    dot = (q * d).sum(-1)
    qn = jnp.maximum(jnp.linalg.norm(q, axis=-1), 1e-8)
    dn = jnp.maximum(jnp.linalg.norm(d, axis=-1), 1e-8)
    dense_sim = (1.0 + dot / (qn * dn)) / 2.0
    p = jax.nn.softmax(bm25_raw, axis=1)
    bm25_sim = jnp.take_along_axis(p, doc_indices[:, None], axis=1)[:, 0]
    sims = jnp.stack([dense_sim, bm25_sim], axis=1)          # (B, 2)
    return sims @ weights


if __name__ == "__main__":
    # B queries, S tokens, D hidden, N documents.
    B, S, D, N = 16, 256, 128, 256

    key = jax.random.PRNGKey(0)
    k_tok, k_doc, k_bm25, k_idx = jax.random.split(key, 4)

    tok_f32 = jax.random.normal(k_tok, (B, S, D), dtype=jnp.float32)
    # prefix attention mask with varying valid lengths (>= 1 valid token per row);
    # stored as bf16 (0/1 values are exact) so the wrapper does not re-cast it.
    lengths = (jnp.arange(B) * 17) % S + 1
    attention_mask = (jnp.arange(S)[None, :] < lengths[:, None]).astype(jnp.bfloat16)
    # "precomputed" document embeddings (stand-in for the dense encoder corpus pass)
    doc_f32 = jax.random.normal(k_doc, (N, D), dtype=jnp.float32)
    # raw BM25 scores of every query against every doc
    bm25_raw = jax.random.uniform(k_bm25, (B, N), dtype=jnp.float32) * 5.0
    # which document each query is scored against
    doc_indices = jax.random.randint(k_idx, (B,), 0, N, dtype=jnp.int32)
    weights = jnp.array([0.5, 0.5], dtype=jnp.float32)

    # dominant HBM streams fed as bf16 (kernel accumulates in f32)
    tok_bf16 = tok_f32.astype(jnp.bfloat16)
    doc_bf16 = doc_f32.astype(jnp.bfloat16)

    # ts=128 forces a 2-step inner reduction so the accumulator / online-softmax
    # path is exercised even at this small demo size (grid = (2, 2) with tb=8).
    out = query_eval_forward(tok_bf16, attention_mask, doc_bf16,
                             doc_indices, bm25_raw, weights, ts=128)
    out = jax.block_until_ready(out)

    # reference sees the same (bf16-quantized) embeddings, math in f32
    ref = query_eval_reference(tok_bf16.astype(jnp.float32), attention_mask,
                               doc_bf16.astype(jnp.float32), doc_indices,
                               bm25_raw, weights)

    assert out.shape == (B,)
    assert jnp.allclose(out, ref, atol=2e-5, rtol=2e-5), (out, ref)
    print("KERNEL_OK")
</pallas_src>

<mosaic_0001>
module attributes {stable_mosaic.version = 11 : i64} {
  func.func @kernel(%arg0: i32, %arg1: i32, %arg2: memref<8x128x128xbf16, #tpu.memory_space<vmem>>, %arg3: memref<8x128x1xbf16, #tpu.memory_space<vmem>>, %arg4: memref<8x128xbf16, #tpu.memory_space<vmem>>, %arg5: memref<8x128xf32, #tpu.memory_space<vmem>>, %arg6: memref<8x1xf32, #tpu.memory_space<vmem>>, %arg7: memref<8x1xf32, #tpu.memory_space<vmem>>, %arg8: memref<2xf32, #tpu.memory_space<smem>>, %arg9: memref<8x1xf32, #tpu.memory_space<vmem>>, %arg10: memref<8x128xf32, #tpu.memory_space<vmem>>, %arg11: memref<8x1xf32, #tpu.memory_space<vmem>>, %arg12: memref<8x1xf32, #tpu.memory_space<vmem>>) attributes {dimension_semantics = [#tpu.dimension_semantics<parallel>, #tpu.dimension_semantics<arbitrary>], iteration_bounds = array<i64: 2, 2>, scalar_prefetch = 0 : i64, scratch_operands = 3 : i64, tpu.core_type = #tpu.core_type<tc>, window_params = [{transform_indices = @transform_0, window_bounds = array<i64: 8, 128, 128>}, {transform_indices = @transform_1, window_bounds = array<i64: 8, 128, 1>}, {transform_indices = @transform_2, window_bounds = array<i64: 8, 128>}, {transform_indices = @transform_3, window_bounds = array<i64: 8, 128>}, {transform_indices = @transform_4, window_bounds = array<i64: 8, 1>}, {transform_indices = @transform_5, window_bounds = array<i64: 8, 1>}, {transform_indices = @transform_6, window_bounds = array<i64: 2>}, {transform_indices = @transform_7, window_bounds = array<i64: 8, 1>}]} {
    %c0_i32 = arith.constant 0 : i32
    %0 = arith.cmpi eq, %arg1, %c0_i32 : i32
    %1 = arith.extui %0 : i1 to i32
    %c0_i32_0 = arith.constant 0 : i32
    %2 = arith.cmpi ne, %1, %c0_i32_0 : i32
    scf.if %2 {
      %cst_25 = arith.constant 0.000000e+00 : f32
      %33 = vector.broadcast %cst_25 : f32 to vector<8x128xf32>
      %c0_26 = arith.constant 0 : index
      %c0_27 = arith.constant 0 : index
      %34 = vector.load %arg10[%c0_26, %c0_27] : memref<8x128xf32, #tpu.memory_space<vmem>>, vector<8x128xf32>
      tpu.vector_store %arg10[%c0_26, %c0_27], %33 {strides = array<i32>} : memref<8x128xf32, #tpu.memory_space<vmem>>, vector<8x128xf32>,
      %cst_28 = arith.constant 0xFF800000 : f32
      %35 = vector.broadcast %cst_28 : f32 to vector<8x1xf32>
      %c0_29 = arith.constant 0 : index
      %c0_30 = arith.constant 0 : index
      %36 = vector.load %arg11[%c0_29, %c0_30] : memref<8x1xf32, #tpu.memory_space<vmem>>, vector<8x1xf32>
      tpu.vector_store %arg11[%c0_29, %c0_30], %35 {strides = array<i32>} : memref<8x1xf32, #tpu.memory_space<vmem>>, vector<8x1xf32>,
      %cst_31 = arith.constant 0.000000e+00 : f32
      %37 = vector.broadcast %cst_31 : f32 to vector<8x1xf32>
      %c0_32 = arith.constant 0 : index
      %c0_33 = arith.constant 0 : index
      %38 = vector.load %arg12[%c0_32, %c0_33] : memref<8x1xf32, #tpu.memory_space<vmem>>, vector<8x1xf32>
      tpu.vector_store %arg12[%c0_32, %c0_33], %37 {strides = array<i32>} : memref<8x1xf32, #tpu.memory_space<vmem>>, vector<8x1xf32>,
    } else {
    }
    %c0 = arith.constant 0 : index
    %c0_1 = arith.constant 0 : index
    %c0_2 = arith.constant 0 : index
    %3 = vector.load %arg2[%c0, %c0_1, %c0_2] : memref<8x128x128xbf16, #tpu.memory_space<vmem>>, vector<8x128x128xbf16>
    %c0_3 = arith.constant 0 : index
    %c0_4 = arith.constant 0 : index
    %c0_5 = arith.constant 0 : index
    %4 = vector.load %arg3[%c0_3, %c0_4, %c0_5] : memref<8x128x1xbf16, #tpu.memory_space<vmem>>, vector<8x128x1xbf16>
    %5 = vector.broadcast %4 : vector<8x128x1xbf16> to vector<8x128x128xbf16>
    %6 = arith.mulf %3, %5 : vector<8x128x128xbf16>
    %7 = arith.extf %6 : vector<8x128x128xbf16> to vector<8x128x128xf32>
    %c0_6 = arith.constant 0 : index
    %c0_7 = arith.constant 0 : index
    %8 = vector.load %arg10[%c0_6, %c0_7] : memref<8x128xf32, #tpu.memory_space<vmem>>, vector<8x128xf32>
    %cst = arith.constant dense<0.000000e+00> : vector<8x128xf32>
    %9 = vector.multi_reduction <add>, %7, %cst [1] : vector<8x128x128xf32> to vector<8x128xf32>
    %10 = arith.addf %8, %9 : vector<8x128xf32>
    %c0_8 = arith.constant 0 : index
    %c0_9 = arith.constant 0 : index
    %11 = vector.load %arg10[%c0_8, %c0_9] : memref<8x128xf32, #tpu.memory_space<vmem>>, vector<8x128xf32>
    tpu.vector_store %arg10[%c0_8, %c0_9], %10 {strides = array<i32>} : memref<8x128xf32, #tpu.memory_space<vmem>>, vector<8x128xf32>,
    %c0_10 = arith.constant 0 : index
    %c0_11 = arith.constant 0 : index
    %12 = vector.load %arg5[%c0_10, %c0_11] : memref<8x128xf32, #tpu.memory_space<vmem>>, vector<8x128xf32>
    %cst_12 = arith.constant dense<0xFF800000> : vector<8xf32>
    %13 = vector.multi_reduction <maximumf>, %12, %cst_12 [1] : vector<8x128xf32> to vector<8xf32>
    %14 = vector.shape_cast %13 : vector<8xf32> to vector<8x1xf32>
    %c0_13 = arith.constant 0 : index
    %c0_14 = arith.constant 0 : index
    %15 = vector.load %arg11[%c0_13, %c0_14] : memref<8x1xf32, #tpu.memory_space<vmem>>, vector<8x1xf32>
    %16 = arith.maximumf %15, %14 : vector<8x1xf32>
    %c0_15 = arith.constant 0 : index
    %c0_16 = arith.constant 0 : index
    %17 = vector.load %arg11[%c0_15, %c0_16] : memref<8x1xf32, #tpu.memory_space<vmem>>, vector<8x1xf32>
    %18 = arith.subf %17, %16 : vector<8x1xf32>
    %19 = math.exp %18 : vector<8x1xf32>
    %c0_17 = arith.constant 0 : index
    %c0_18 = arith.constant 0 : index
    %20 = vector.load %arg12[%c0_17, %c0_18] : memref<8x1xf32, #tpu.memory_space<vmem>>, vector<8x1xf32>
    %21 = arith.mulf %19, %20 : vector<8x1xf32>
    %22 = vector.broadcast %16 : vector<8x1xf32> to vector<8x128xf32>
    %23 = arith.subf %12, %22 : vector<8x128xf32>
    %24 = math.exp %23 : vector<8x128xf32>
    %cst_19 = arith.constant dense<0.000000e+00> : vector<8xf32>
    %25 = vector.multi_reduction <add>, %24, %cst_19 [1] : vector<8x128xf32> to vector<8xf32>
    %26 = vector.shape_cast %25 : vector<8xf32> to vector<8x1xf32>
    %27 = arith.addf %21, %26 : vector<8x1xf32>
    %c0_20 = arith.constant 0 : index
    %c0_21 = arith.constant 0 : index
    %28 = vector.load %arg12[%c0_20, %c0_21] : memref<8x1xf32, #tpu.memory_space<vmem>>, vector<8x1xf32>
    tpu.vector_store %arg12[%c0_20, %c0_21], %27 {strides = array<i32>} : memref<8x1xf32, #tpu.memory_space<vmem>>, vector<8x1xf32>,
    %c0_22 = arith.constant 0 : index
    %c0_23 = arith.constant 0 : index
    %29 = vector.load %arg11[%c0_22, %c0_23] : memref<8x1xf32, #tpu.memory_space<vmem>>, vector<8x1xf32>
    tpu.vector_store %arg11[%c0_22, %c0_23], %16 {strides = array<i32>} : memref<8x1xf32, #tpu.memory_space<vmem>>, vector<8x1xf32>,
    %c1_i32 = arith.constant 1 : i32
    %30 = arith.cmpi eq, %arg1, %c1_i32 : i32
    %31 = arith.extui %30 : i1 to i32
    %c0_i32_24 = arith.constant 0 : i32
    %32 = arith.cmpi ne, %31, %c0_i32_24 : i32
    scf.if %32 {
      %c0_25 = arith.constant 0 : index
      %c0_26 = arith.constant 0 : index
      %33 = vector.load %arg7[%c0_25, %c0_26] : memref<8x1xf32, #tpu.memory_space<vmem>>, vector<8x1xf32>
      %34 = tpu.reciprocal %33 : vector<8x1xf32> -> vector<8x1xf32>
      %c0_27 = arith.constant 0 : index
      %c0_28 = arith.constant 0 : index
      %35 = vector.load %arg10[%c0_27, %c0_28] : memref<8x128xf32, #tpu.memory_space<vmem>>, vector<8x128xf32>
      %36 = vector.broadcast %34 : vector<8x1xf32> to vector<8x128xf32>
      %37 = arith.mulf %35, %36 : vector<8x128xf32>
      %c0_29 = arith.constant 0 : index
      %c0_30 = arith.constant 0 : index
      %38 = vector.load %arg4[%c0_29, %c0_30] : memref<8x128xbf16, #tpu.memory_space<vmem>>, vector<8x128xbf16>
      %39 = arith.extf %38 : vector<8x128xbf16> to vector<8x128xf32>
      %40 = arith.mulf %37, %39 : vector<8x128xf32>
      %cst_31 = arith.constant dense<0.000000e+00> : vector<8xf32>
      %41 = vector.multi_reduction <add>, %40, %cst_31 [1] : vector<8x128xf32> to vector<8xf32>
      %42 = vector.shape_cast %41 : vector<8xf32> to vector<8x1xf32>
      %43 = arith.mulf %37, %37 : vector<8x128xf32>
      %cst_32 = arith.constant dense<0.000000e+00> : vector<8xf32>
      %44 = vector.multi_reduction <add>, %43, %cst_32 [1] : vector<8x128xf32> to vector<8xf32>
      %45 = vector.shape_cast %44 : vector<8xf32> to vector<8x1xf32>
      %46 = arith.mulf %39, %39 : vector<8x128xf32>
      %cst_33 = arith.constant dense<0.000000e+00> : vector<8xf32>
      %47 = vector.multi_reduction <add>, %46, %cst_33 [1] : vector<8x128xf32> to vector<8xf32>
      %48 = vector.shape_cast %47 : vector<8xf32> to vector<8x1xf32>
      %cst_34 = arith.constant 1.000000e-16 : f32
      %49 = vector.broadcast %cst_34 : f32 to vector<8x1xf32>
      %50 = arith.maximumf %45, %49 : vector<8x1xf32>
      %51 = math.rsqrt %50 : vector<8x1xf32>
      %cst_35 = arith.constant 1.000000e-16 : f32
      %52 = vector.broadcast %cst_35 : f32 to vector<8x1xf32>
      %53 = arith.maximumf %48, %52 : vector<8x1xf32>
      %54 = math.rsqrt %53 : vector<8x1xf32>
      %55 = arith.mulf %51, %54 : vector<8x1xf32>
      %56 = arith.mulf %42, %55 : vector<8x1xf32>
      %cst_36 = arith.constant 1.000000e+00 : f32
      %57 = vector.broadcast %cst_36 : f32 to vector<8x1xf32>
      %58 = arith.addf %57, %56 : vector<8x1xf32>
      %cst_37 = arith.constant 5.000000e-01 : f32
      %59 = vector.broadcast %cst_37 : f32 to vector<8x1xf32>
      %60 = arith.mulf %59, %58 : vector<8x1xf32>
      %c0_38 = arith.constant 0 : index
      %c0_39 = arith.constant 0 : index
      %61 = vector.load %arg6[%c0_38, %c0_39] : memref<8x1xf32, #tpu.memory_space<vmem>>, vector<8x1xf32>
      %c0_40 = arith.constant 0 : index
      %c0_41 = arith.constant 0 : index
      %62 = vector.load %arg11[%c0_40, %c0_41] : memref<8x1xf32, #tpu.memory_space<vmem>>, vector<8x1xf32>
      %63 = arith.subf %61, %62 : vector<8x1xf32>
      %64 = math.exp %63 : vector<8x1xf32>
      %c0_42 = arith.constant 0 : index
      %c0_43 = arith.constant 0 : index
      %65 = vector.load %arg12[%c0_42, %c0_43] : memref<8x1xf32, #tpu.memory_space<vmem>>, vector<8x1xf32>
      %66 = tpu.reciprocal %65 : vector<8x1xf32> -> vector<8x1xf32>
      %67 = arith.mulf %64, %66 : vector<8x1xf32>
      %c0_44 = arith.constant 0 : index
      %68 = memref.load %arg8[%c0_44] : memref<2xf32, #tpu.memory_space<smem>>
      %69 = vector.broadcast %68 : f32 to vector<8x1xf32>
      %70 = arith.mulf %69, %60 : vector<8x1xf32>
      %c1 = arith.constant 1 : index
      %71 = memref.load %arg8[%c1] : memref<2xf32, #tpu.memory_space<smem>>
      %72 = vector.broadcast %71 : f32 to vector<8x1xf32>
      %73 = arith.mulf %72, %67 : vector<8x1xf32>
      %74 = arith.addf %70, %73 : vector<8x1xf32>
      %c0_45 = arith.constant 0 : index
      %c0_46 = arith.constant 0 : index
      %75 = vector.load %arg9[%c0_45, %c0_46] : memref<8x1xf32, #tpu.memory_space<vmem>>, vector<8x1xf32>
      tpu.vector_store %arg9[%c0_45, %c0_46], %74 {strides = array<i32>} : memref<8x1xf32, #tpu.memory_space<vmem>>, vector<8x1xf32>,
    } else {
    }
    return
  }
  func.func @transform_0(%arg0: i32, %arg1: i32) -> (i32, i32, i32) {
    %c0_i32 = arith.constant 0 : i32
    %c0_i32_0 = arith.constant 0 : i32
    return %arg0, %arg1, %c0_i32 : i32, i32, i32
  }
  func.func @transform_1(%arg0: i32, %arg1: i32) -> (i32, i32, i32) {
    %c0_i32 = arith.constant 0 : i32
    %c0_i32_0 = arith.constant 0 : i32
    return %arg0, %arg1, %c0_i32 : i32, i32, i32
  }
  func.func @transform_2(%arg0: i32, %arg1: i32) -> (i32, i32) {
    %c0_i32 = arith.constant 0 : i32
    %c0_i32_0 = arith.constant 0 : i32
    return %arg0, %c0_i32 : i32, i32
  }
  func.func @transform_3(%arg0: i32, %arg1: i32) -> (i32, i32) {
    %c0_i32 = arith.constant 0 : i32
    return %arg0, %arg1 : i32, i32
  }
  func.func @transform_4(%arg0: i32, %arg1: i32) -> (i32, i32) {
    %c0_i32 = arith.constant 0 : i32
    %c0_i32_0 = arith.constant 0 : i32
    return %arg0, %c0_i32 : i32, i32
  }
  func.func @transform_5(%arg0: i32, %arg1: i32) -> (i32, i32) {
    %c0_i32 = arith.constant 0 : i32
    %c0_i32_0 = arith.constant 0 : i32
    return %arg0, %c0_i32 : i32, i32
  }
  func.func @transform_6(%arg0: i32, %arg1: i32) -> i32 {
    %c0_i32 = arith.constant 0 : i32
    %c0_i32_0 = arith.constant 0 : i32
    return %c0_i32 : i32
  }
  func.func @transform_7(%arg0: i32, %arg1: i32) -> (i32, i32) {
    %c0_i32 = arith.constant 0 : i32
    %c0_i32_0 = arith.constant 0 : i32
    return %arg0, %c0_i32 : i32, i32
  }
}

</mosaic_0001>

<bundles_post_ra>
// kernel: tpu_custom_call.1
= control target key start
LH: loop header
LB: loop body
LE: loop exit
PB: predicated region body
PF: predicated region fallthrough
CT: control target
= control target key end

     0   :  { %s5518_s0 = inlined_call_operand.vmem [shape: bf16[16,256,128], index: 0, kind: input, shape index: {}]   ;;  %s5519_s1 = inlined_call_operand.vmem [shape: bf16[16,256,1], index: 1, kind: input, shape index: {}]   ;;  %s5520_s2 = inlined_call_operand.hbm [shape: bf16[16,128], index: 2, kind: input, shape index: {}]   ;;  %s5521_s3 = inlined_call_operand.vmem [shape: f32[16,256], index: 3, kind: input, shape index: {}]   ;;  %s5522_s4 = inlined_call_operand.vmem [shape: f32[16,1], index: 4, kind: input, shape index: {}]   ;;  %s5523_s5 = inlined_call_operand.vmem [shape: f32[16,1], index: 5, kind: input, shape index: {}]   ;;  %s5524_s6 = inlined_call_operand.vmem [shape: f32[2], index: 6, kind: input, shape index: {}]   ;;  %s5525_s7 = inlined_call_operand.vmem [shape: f32[16,1], index: 7, kind: output, shape index: {}]  }
   0x1   :  { %5528 = sst [smem:[#allocation17_spill]] %s5518_s0 }
   0x2   :  { %5529 = sst [smem:[#allocation18_spill]] %s5519_s1 }
   0x3   :  { %5530 = sst [smem:[#allocation19_spill]] %s5520_s2 }
   0x4   :  { %5531 = sst [smem:[#allocation20_spill]] %s5524_s6 }
   0x5   :  { %5532 = sst [smem:[#allocation21_spill]] %s5525_s7 }
   0x6   :  { %12 = vsyncpa [#allocation8], 0 }
   0x7   :  { %14 = vsyncpa [#allocation8 + $0x1], 0 }
   0x8   :  { %15 = vsyncpa [#allocation9], 0  ;;  %s4666_s24 = smov 0   ;;  %s4668_s25 = smov 0  }
   0x9   :  { %s4670_s26 = smov 0   ;;  %s4672_s27 = smov 0  }
   0xa   :  { %s4674_s28 = smov 0   ;;  %s4676_s29 = smov 0  }
   0xb   :  { %s4678_s30 = smov 0   ;;  %s4680_s8 = smov 0  }
   0xc   :  { %s4682_s9 = smov 0   ;;  %s4684_s10 = smov 0  }
   0xd LB: > { %s4019_s11 = sadd.s32 4294967295, %s4618_s10   ;;  %s30_s12 = sadd.s32 1, %s4610_s8  ;;  %s4618_s10 = sphi %s4684_s10, %s21_s10   ;;  %s4614_s9 = sphi %s4682_s9, %s5563_s9   ;;  %s4610_s8 = sphi %s4680_s8, %s5562_s8   ;;  %s4606_s30 = sphi %s4678_s30, %s5561_s30   ;;  %s4602_s29 = sphi %s4676_s29, %s5560_s29   ;;  %s4598_s28 = sphi %s4674_s28, %s5559_s28   ;;  %s4594_s27 = sphi %s4672_s27, %s5558_s27   ;;  %s4590_s26 = sphi %s4670_s26, %s5557_s26   ;;  %s4586_s25 = sphi %s4668_s25, %s5556_s25   ;;  %s4582_s24 = sphi %s4666_s24, %s5555_s24  }
   0xe   : > { %p31_p0 = scmp.ge.s32.totalorder %s30_s12, 2  ;;  %s33_s13 = sadd.s32 1, %s4614_s9 }
   0xf   : > { %s42_s14 = sadd.s32 1, %s4598_s28  ;;  %p49_p1 = scmp.ne.s32.totalorder %s4598_s28, %s4594_s27 }
  0x10   : > { %s5565_s12 = smov (%p31_p0, %s30_s12), 0  ;;  %s5567_s13 = smov (!%p31_p0, %s33_s13), %s4614_s9 }
  0x11   : > { %5533 = sst [smem:[#allocation13_spill]] %s5565_s12  ;;  %s38_s15 = ssub.s32 %s4610_s8, %s5565_s12 }
  0x12   : > { %p50_p2 = scmp.eq.s32.totalorder %s4618_s10, 0  ;;  %p35_p3 = scmp.ge.s32.totalorder %s5567_s13, 2 }
  0x13   : > { %s96_s16 = sadd.s32 1, %s4590_s26  ;;  %p103_p5 = scmp.ne.s32.totalorder %s4590_s26, %s4586_s25 }
  0x14   : > { %p4729_p4 = por %p50_p2, %p49_p1  ;;  %s5569_s13 = smov (%p35_p3, %s5567_s13), 0 }
  0x15   : > { %5535 = sst [smem:[#allocation14_spill]] %s5569_s13  ;;  %p4737_p6 = por %p103_p5, %p50_p2 }
  0x16   : > { %p109_p7 = scmp.ne.s32.totalorder %s4586_s25, %s4582_s24  ;;  %s37_s19 = ssub.s32 %s4614_s9, %s5569_s13 }
  0x17   : > { %p4745_p8 = scmp.eq.s32.totalorder %s4019_s11, 0  ;;  %s39_s21 = sor.u32 %s38_s15, %s37_s19 }
  0x18   : > { %p94_p9 = scmp.eq.s32.totalorder %s37_s19, 0  ;;  %p40_p10 = scmp.eq.s32.totalorder %s39_s21, 0 }
  0x19   : > { %p4751_p11 = por %p4745_p8, %p109_p7  ;;  %p4021_p12 = scmp.ge.s32.totalorder %s4618_s10, 1 }
  0x1a   : > { %s4756_s23 = scalar_select %p94_p9, %s4590_s26, %s96_s16  }
  0x1b   : > { %s4759_s12 = scalar_select %p40_p10, %s4598_s28, %s42_s14  }
  0x1c   : > { %5539 = sst [smem:[#allocation15_spill]] %s4756_s23  ;;  %p247_p13 = scmp.lt.s32.totalorder %s4618_s10, 5 }
  0x1d   : > { %5540 = sst [smem:[#allocation16_spill]] %s4759_s12  ;;  %s4620_s16 = smov [#allocation10]  }
  0x1e   : > { %p4763_p0 = pnand %p4021_p12, %p247_p13  ;;  %s5542_s6 = sld [smem:[#allocation20_spill]] }
  0x1f   : > { %p4023_p3 = scmp.ge.s32.totalorder %s4618_s10, 4 }
  0x20   : > { %p4378_p1 = pneg %p4763_p0 }
  0x21   : > { %266 = sbr.rel (%p4023_p3) target bundleno = 196 (0xc4), region = 20 }
  0x22   : > { %p4379_p2 = pnand %p4378_p1, %p4745_p8 }
  0x24   : > { %s259_s15 = sshll.u32 %s5542_s6, 4  ;;  %s260_s15 = int_to_ptr.vmem [resolvable:$true] %s259_s15 }
  0x25   : > { %4381 = dma.vmem_to_smem (!%p4379_p2), %s260_s15, 16, %s4620_s16, [#allocation9]  }
  0x26   : > { %269 = sbr.rel (!%p4729_p4) target bundleno = 112 (0x70), region = 24  ;;  %s271_s14 = sand.u32 (%p4729_p4), 1, %s4598_s28  }
  0x27   : > { %s4026_s13 = sshll.u32 (%p4729_p4), %s4610_s8, 4  ;;  %s4024_s19 = sshll.u32 (%p4729_p4), %s271_s14, 9 }
  0x28   : > { %s4051_s21 = sshll.u32 (%p4729_p4), %s4614_s9, 8  ;;  %s5543_s0 = sld [smem:[#allocation17_spill]] (%p4729_p4) }
  0x29   : > { %s277_s11 = sadd.s32 (%p4729_p4), %s4051_s21, %s4026_s13  ;;  %s4788_s15 = scalar_lea.vmem (%p4729_p4), [#allocation5], %s4024_s19 }
  0x2a   : > { %s4028_s6 = sshll.u32 (%p4729_p4), %s277_s11, 2 }
  0x2e   : > { %s4783_s7 = scalar_lea.vmem %s5543_s0, %s4028_s6 }
  0x2f   : > { %v296_v0 = vld [vmem:[%s4783_s7] sm:$0xff]   ;;  %v300_v1 = vld [vmem:[%s4783_s7 + $0x8] sm:$0xff]   ;;  %v304_v2 = vld [vmem:[%s4783_s7 + $0x10] sm:$0xff]  }
  0x30   : > { %297 = vst [vmem:[%s4788_s15] sm:$0xff] %v296_v0   ;;  %v308_v3 = vld [vmem:[%s4783_s7 + $0x18] sm:$0xff]   ;;  %v312_v4 = vld [vmem:[%s4783_s7 + $0x20] sm:$0xff]   ;;  %v316_v5 = vld [vmem:[%s4783_s7 + $0x28] sm:$0xff]  }
  0x31   : > { %301 = vst [vmem:[%s4788_s15 + $0x8] sm:$0xff] %v300_v1   ;;  %v320_v6 = vld [vmem:[%s4783_s7 + $0x30] sm:$0xff]   ;;  %v324_v7 = vld [vmem:[%s4783_s7 + $0x38] sm:$0xff]   ;;  %v328_v8 = vld [vmem:[%s4783_s7 + $0x80] sm:$0xff]  }
  0x32   : > { %305 = vst [vmem:[%s4788_s15 + $0x10] sm:$0xff] %v304_v2   ;;  %v332_v9 = vld [vmem:[%s4783_s7 + $0x88] sm:$0xff]   ;;  %v336_v10 = vld [vmem:[%s4783_s7 + $0x90] sm:$0xff]   ;;  %v340_v11 = vld [vmem:[%s4783_s7 + $0x98] sm:$0xff]  }
  0x33   : > { %309 = vst [vmem:[%s4788_s15 + $0x18] sm:$0xff] %v308_v3   ;;  %v344_v12 = vld [vmem:[%s4783_s7 + $0xa0] sm:$0xff]   ;;  %v348_v13 = vld [vmem:[%s4783_s7 + $0xa8] sm:$0xff]   ;;  %v352_v14 = vld [vmem:[%s4783_s7 + $0xb0] sm:$0xff]  }
  0x34   : > { %313 = vst [vmem:[%s4788_s15 + $0x20] sm:$0xff] %v312_v4   ;;  %v356_v15 = vld [vmem:[%s4783_s7 + $0xb8] sm:$0xff]   ;;  %v360_v16 = vld [vmem:[%s4783_s7 + $0x100] sm:$0xff]   ;;  %v364_v17 = vld [vmem:[%s4783_s7 + $0x108] sm:$0xff]  }
  0x35   : > { %317 = vst [vmem:[%s4788_s15 + $0x28] sm:$0xff] %v316_v5   ;;  %v368_v18 = vld [vmem:[%s4783_s7 + $0x110] sm:$0xff]   ;;  %v372_v19 = vld [vmem:[%s4783_s7 + $0x118] sm:$0xff]   ;;  %v376_v20 = vld [vmem:[%s4783_s7 + $0x120] sm:$0xff]  }
  0x36   : > { %321 = vst [vmem:[%s4788_s15 + $0x30] sm:$0xff] %v320_v6   ;;  %v380_v21 = vld [vmem:[%s4783_s7 + $0x128] sm:$0xff]   ;;  %v384_v22 = vld [vmem:[%s4783_s7 + $0x130] sm:$0xff]   ;;  %v388_v23 = vld [vmem:[%s4783_s7 + $0x138] sm:$0xff]  }
  0x37   : > { %325 = vst [vmem:[%s4788_s15 + $0x38] sm:$0xff] %v324_v7   ;;  %v392_v24 = vld [vmem:[%s4783_s7 + $0x180] sm:$0xff]   ;;  %v396_v25 = vld [vmem:[%s4783_s7 + $0x188] sm:$0xff]   ;;  %v400_v26 = vld [vmem:[%s4783_s7 + $0x190] sm:$0xff]  }
  0x38   : > { %329 = vst [vmem:[%s4788_s15 + $0x40] sm:$0xff] %v328_v8   ;;  %v404_v27 = vld [vmem:[%s4783_s7 + $0x198] sm:$0xff]   ;;  %v408_v28 = vld [vmem:[%s4783_s7 + $0x1a0] sm:$0xff]   ;;  %v412_v29 = vld [vmem:[%s4783_s7 + $0x1a8] sm:$0xff]  }
  0x39   : > { %333 = vst [vmem:[%s4788_s15 + $0x48] sm:$0xff] %v332_v9   ;;  %v416_v30 = vld [vmem:[%s4783_s7 + $0x1b0] sm:$0xff]   ;;  %v420_v31 = vld [vmem:[%s4783_s7 + $0x1b8] sm:$0xff]   ;;  %v424_v32 = vld [vmem:[%s4783_s7 + $0x200] sm:$0xff]  }
  0x3a   : > { %337 = vst [vmem:[%s4788_s15 + $0x50] sm:$0xff] %v336_v10   ;;  %v428_v33 = vld [vmem:[%s4783_s7 + $0x208] sm:$0xff]   ;;  %v432_v34 = vld [vmem:[%s4783_s7 + $0x210] sm:$0xff]   ;;  %v436_v35 = vld [vmem:[%s4783_s7 + $0x218] sm:$0xff]  }
  0x3b   : > { %341 = vst [vmem:[%s4788_s15 + $0x58] sm:$0xff] %v340_v11   ;;  %v440_v36 = vld [vmem:[%s4783_s7 + $0x220] sm:$0xff]   ;;  %v444_v37 = vld [vmem:[%s4783_s7 + $0x228] sm:$0xff]   ;;  %v448_v38 = vld [vmem:[%s4783_s7 + $0x230] sm:$0xff]  }
  0x3c   : > { %345 = vst [vmem:[%s4788_s15 + $0x60] sm:$0xff] %v344_v12   ;;  %v452_v39 = vld [vmem:[%s4783_s7 + $0x238] sm:$0xff]   ;;  %v456_v40 = vld [vmem:[%s4783_s7 + $0x280] sm:$0xff]   ;;  %v460_v41 = vld [vmem:[%s4783_s7 + $0x288] sm:$0xff]  }
  0x3d   : > { %349 = vst [vmem:[%s4788_s15 + $0x68] sm:$0xff] %v348_v13   ;;  %v464_v42 = vld [vmem:[%s4783_s7 + $0x290] sm:$0xff]   ;;  %v468_v43 = vld [vmem:[%s4783_s7 + $0x298] sm:$0xff]   ;;  %v472_v44 = vld [vmem:[%s4783_s7 + $0x2a0] sm:$0xff]  }
  0x3e   : > { %353 = vst [vmem:[%s4788_s15 + $0x70] sm:$0xff] %v352_v14   ;;  %v476_v45 = vld [vmem:[%s4783_s7 + $0x2a8] sm:$0xff]   ;;  %v480_v46 = vld [vmem:[%s4783_s7 + $0x2b0] sm:$0xff]   ;;  %v484_v47 = vld [vmem:[%s4783_s7 + $0x2b8] sm:$0xff]  }
  0x3f   : > { %357 = vst [vmem:[%s4788_s15 + $0x78] sm:$0xff] %v356_v15   ;;  %v488_v48 = vld [vmem:[%s4783_s7 + $0x300] sm:$0xff]   ;;  %v492_v49 = vld [vmem:[%s4783_s7 + $0x308] sm:$0xff]   ;;  %v496_v50 = vld [vmem:[%s4783_s7 + $0x310] sm:$0xff]  }
  0x40   : > { %361 = vst [vmem:[%s4788_s15 + $0x80] sm:$0xff] %v360_v16   ;;  %v500_v51 = vld [vmem:[%s4783_s7 + $0x318] sm:$0xff]   ;;  %v504_v52 = vld [vmem:[%s4783_s7 + $0x320] sm:$0xff]   ;;  %v508_v53 = vld [vmem:[%s4783_s7 + $0x328] sm:$0xff]  }
  0x41   : > { %365 = vst [vmem:[%s4788_s15 + $0x88] sm:$0xff] %v364_v17   ;;  %v512_v54 = vld [vmem:[%s4783_s7 + $0x330] sm:$0xff]   ;;  %v516_v55 = vld [vmem:[%s4783_s7 + $0x338] sm:$0xff]   ;;  %v520_v56 = vld [vmem:[%s4783_s7 + $0x380] sm:$0xff]  }
  0x42   : > { %369 = vst [vmem:[%s4788_s15 + $0x90] sm:$0xff] %v368_v18   ;;  %v524_v57 = vld [vmem:[%s4783_s7 + $0x388] sm:$0xff]   ;;  %v528_v58 = vld [vmem:[%s4783_s7 + $0x390] sm:$0xff]   ;;  %v532_v59 = vld [vmem:[%s4783_s7 + $0x398] sm:$0xff]  }
  0x43   : > { %373 = vst [vmem:[%s4788_s15 + $0x98] sm:$0xff] %v372_v19   ;;  %v536_v60 = vld [vmem:[%s4783_s7 + $0x3a0] sm:$0xff]   ;;  %v540_v61 = vld [vmem:[%s4783_s7 + $0x3a8] sm:$0xff]   ;;  %v544_v62 = vld [vmem:[%s4783_s7 + $0x3b0] sm:$0xff]  }
  0x44   : > { %377 = vst [vmem:[%s4788_s15 + $0xa0] sm:$0xff] %v376_v20   ;;  %v548_v63 = vld [vmem:[%s4783_s7 + $0x3b8] sm:$0xff]  }
  0x45   : > { %381 = vst [vmem:[%s4788_s15 + $0xa8] sm:$0xff] %v380_v21  }
  0x46   : > { %385 = vst [vmem:[%s4788_s15 + $0xb0] sm:$0xff] %v384_v22  }
  0x47   : > { %389 = vst [vmem:[%s4788_s15 + $0xb8] sm:$0xff] %v388_v23  }
  0x48   : > { %393 = vst [vmem:[%s4788_s15 + $0xc0] sm:$0xff] %v392_v24  }
  0x49   : > { %397 = vst [vmem:[%s4788_s15 + $0xc8] sm:$0xff] %v396_v25  }
  0x4a   : > { %401 = vst [vmem:[%s4788_s15 + $0xd0] sm:$0xff] %v400_v26  }
  0x4b   : > { %405 = vst [vmem:[%s4788_s15 + $0xd8] sm:$0xff] %v404_v27  }
  0x4c   : > { %409 = vst [vmem:[%s4788_s15 + $0xe0] sm:$0xff] %v408_v28  }
  0x4d   : > { %413 = vst [vmem:[%s4788_s15 + $0xe8] sm:$0xff] %v412_v29  }
  0x4e   : > { %417 = vst [vmem:[%s4788_s15 + $0xf0] sm:$0xff] %v416_v30  }
  0x4f   : > { %421 = vst [vmem:[%s4788_s15 + $0xf8] sm:$0xff] %v420_v31  }
  0x50   : > { %425 = vst [vmem:[%s4788_s15 + $0x100] sm:$0xff] %v424_v32  }
  0x51   : > { %429 = vst [vmem:[%s4788_s15 + $0x108] sm:$0xff] %v428_v33  }
  0x52   : > { %433 = vst [vmem:[%s4788_s15 + $0x110] sm:$0xff] %v432_v34  }
  0x53   : > { %437 = vst [vmem:[%s4788_s15 + $0x118] sm:$0xff] %v436_v35  }
  0x54   : > { %441 = vst [vmem:[%s4788_s15 + $0x120] sm:$0xff] %v440_v36  }
  0x55   : > { %445 = vst [vmem:[%s4788_s15 + $0x128] sm:$0xff] %v444_v37  }
  0x56   : > { %449 = vst [vmem:[%s4788_s15 + $0x130] sm:$0xff] %v448_v38  }
  0x57   : > { %453 = vst [vmem:[%s4788_s15 + $0x138] sm:$0xff] %v452_v39  }
  0x58   : > { %457 = vst [vmem:[%s4788_s15 + $0x140] sm:$0xff] %v456_v40  }
  0x59   : > { %461 = vst [vmem:[%s4788_s15 + $0x148] sm:$0xff] %v460_v41  }
  0x5a   : > { %465 = vst [vmem:[%s4788_s15 + $0x150] sm:$0xff] %v464_v42  }
  0x5b   : > { %469 = vst [vmem:[%s4788_s15 + $0x158] sm:$0xff] %v468_v43  }
  0x5c   : > { %473 = vst [vmem:[%s4788_s15 + $0x160] sm:$0xff] %v472_v44  }
  0x5d   : > { %477 = vst [vmem:[%s4788_s15 + $0x168] sm:$0xff] %v476_v45  }
  0x5e   : > { %481 = vst [vmem:[%s4788_s15 + $0x170] sm:$0xff] %v480_v46  }
  0x5f   : > { %485 = vst [vmem:[%s4788_s15 + $0x178] sm:$0xff] %v484_v47  }
  0x60   : > { %489 = vst [vmem:[%s4788_s15 + $0x180] sm:$0xff] %v488_v48  }
  0x61   : > { %493 = vst [vmem:[%s4788_s15 + $0x188] sm:$0xff] %v492_v49  }
  0x62   : > { %497 = vst [vmem:[%s4788_s15 + $0x190] sm:$0xff] %v496_v50  }
  0x63   : > { %501 = vst [vmem:[%s4788_s15 + $0x198] sm:$0xff] %v500_v51  }
  0x64   : > { %505 = vst [vmem:[%s4788_s15 + $0x1a0] sm:$0xff] %v504_v52  }
  0x65   : > { %509 = vst [vmem:[%s4788_s15 + $0x1a8] sm:$0xff] %v508_v53  }
  0x66   : > { %513 = vst [vmem:[%s4788_s15 + $0x1b0] sm:$0xff] %v512_v54  }
  0x67   : > { %517 = vst [vmem:[%s4788_s15 + $0x1b8] sm:$0xff] %v516_v55  }
  0x68   : > { %521 = vst [vmem:[%s4788_s15 + $0x1c0] sm:$0xff] %v520_v56  }
  0x69   : > { %525 = vst [vmem:[%s4788_s15 + $0x1c8] sm:$0xff] %v524_v57  }
  0x6a   : > { %529 = vst [vmem:[%s4788_s15 + $0x1d0] sm:$0xff] %v528_v58  }
  0x6b   : > { %533 = vst [vmem:[%s4788_s15 + $0x1d8] sm:$0xff] %v532_v59  }
  0x6c   : > { %537 = vst [vmem:[%s4788_s15 + $0x1e0] sm:$0xff] %v536_v60  }
  0x6d   : > { %541 = vst [vmem:[%s4788_s15 + $0x1e8] sm:$0xff] %v540_v61  }
  0x6e   : > { %545 = vst [vmem:[%s4788_s15 + $0x1f0] sm:$0xff] %v544_v62  }
  0x6f   : > { %549 = vst [vmem:[%s4788_s15 + $0x1f8] sm:$0xff] %v548_v63  }
  0x70 PF: > { %831 = sbr.rel (!%p4729_p4) target bundleno = 186 (0xba), region = 65  ;;  %s833_s6 = sand.u32 (%p4729_p4), 1, %s4598_s28  }
  0x71   : > { %s4031_s12 = sshll.u32 (%p4729_p4), %s4610_s8, 4  ;;  %s4029_s23 = sshll.u32 (%p4729_p4), %s833_s6, 9 }
  0x72   : > { %s4052_s16 = sshll.u32 (%p4729_p4), %s4614_s9, 8  ;;  %s5544_s1 = sld [smem:[#allocation18_spill]] (%p4729_p4) }
  0x73   : > { %s839_s14 = sadd.s32 (%p4729_p4), %s4052_s16, %s4031_s12  ;;  %s4928_s17 = scalar_lea.vmem (%p4729_p4), [#allocation6], %s4029_s23 }
  0x74   : > { %s4033_s13 = sshll.u32 (%p4729_p4), %s839_s14, 2 }
  0x78   : > { %s4923_s7 = scalar_lea.vmem %s5544_s1, %s4033_s13 }
  0x79   : > { %v858_v0 = vld [vmem:[%s4923_s7] sm:$0xff]   ;;  %v862_v1 = vld [vmem:[%s4923_s7 + $0x8] sm:$0xff]   ;;  %v866_v2 = vld [vmem:[%s4923_s7 + $0x10] sm:$0xff]  }
  0x7a   : > { %859 = vst [vmem:[%s4928_s17] sm:$0xff] %v858_v0   ;;  %v870_v3 = vld [vmem:[%s4923_s7 + $0x18] sm:$0xff]   ;;  %v874_v4 = vld [vmem:[%s4923_s7 + $0x20] sm:$0xff]   ;;  %v878_v5 = vld [vmem:[%s4923_s7 + $0x28] sm:$0xff]  }
  0x7b   : > { %863 = vst [vmem:[%s4928_s17 + $0x8] sm:$0xff] %v862_v1   ;;  %v882_v6 = vld [vmem:[%s4923_s7 + $0x30] sm:$0xff]   ;;  %v886_v7 = vld [vmem:[%s4923_s7 + $0x38] sm:$0xff]   ;;  %v890_v8 = vld [vmem:[%s4923_s7 + $0x80] sm:$0xff]  }
  0x7c   : > { %867 = vst [vmem:[%s4928_s17 + $0x10] sm:$0xff] %v866_v2   ;;  %v894_v9 = vld [vmem:[%s4923_s7 + $0x88] sm:$0xff]   ;;  %v898_v10 = vld [vmem:[%s4923_s7 + $0x90] sm:$0xff]   ;;  %v902_v11 = vld [vmem:[%s4923_s7 + $0x98] sm:$0xff]  }
  0x7d   : > { %871 = vst [vmem:[%s4928_s17 + $0x18] sm:$0xff] %v870_v3   ;;  %v906_v12 = vld [vmem:[%s4923_s7 + $0xa0] sm:$0xff]   ;;  %v910_v13 = vld [vmem:[%s4923_s7 + $0xa8] sm:$0xff]   ;;  %v914_v14 = vld [vmem:[%s4923_s7 + $0xb0] sm:$0xff]  }
  0x7e   : > { %875 = vst [vmem:[%s4928_s17 + $0x20] sm:$0xff] %v874_v4   ;;  %v918_v15 = vld [vmem:[%s4923_s7 + $0xb8] sm:$0xff]   ;;  %v922_v16 = vld [vmem:[%s4923_s7 + $0x100] sm:$0xff]   ;;  %v926_v17 = vld [vmem:[%s4923_s7 + $0x108] sm:$0xff]  }
  0x7f   : > { %879 = vst [vmem:[%s4928_s17 + $0x28] sm:$0xff] %v878_v5   ;;  %v930_v18 = vld [vmem:[%s4923_s7 + $0x110] sm:$0xff]   ;;  %v934_v19 = vld [vmem:[%s4923_s7 + $0x118] sm:$0xff]   ;;  %v938_v20 = vld [vmem:[%s4923_s7 + $0x120] sm:$0xff]  }
  0x80   : > { %883 = vst [vmem:[%s4928_s17 + $0x30] sm:$0xff] %v882_v6   ;;  %v942_v21 = vld [vmem:[%s4923_s7 + $0x128] sm:$0xff]   ;;  %v946_v22 = vld [vmem:[%s4923_s7 + $0x130] sm:$0xff]   ;;  %v950_v23 = vld [vmem:[%s4923_s7 + $0x138] sm:$0xff]  }
  0x81   : > { %887 = vst [vmem:[%s4928_s17 + $0x38] sm:$0xff] %v886_v7   ;;  %v954_v24 = vld [vmem:[%s4923_s7 + $0x180] sm:$0xff]   ;;  %v958_v25 = vld [vmem:[%s4923_s7 + $0x188] sm:$0xff]   ;;  %v962_v26 = vld [vmem:[%s4923_s7 + $0x190] sm:$0xff]  }
  0x82   : > { %891 = vst [vmem:[%s4928_s17 + $0x40] sm:$0xff] %v890_v8   ;;  %v966_v27 = vld [vmem:[%s4923_s7 + $0x198] sm:$0xff]   ;;  %v970_v28 = vld [vmem:[%s4923_s7 + $0x1a0] sm:$0xff]   ;;  %v974_v29 = vld [vmem:[%s4923_s7 + $0x1a8] sm:$0xff]  }
  0x83   : > { %895 = vst [vmem:[%s4928_s17 + $0x48] sm:$0xff] %v894_v9   ;;  %v978_v30 = vld [vmem:[%s4923_s7 + $0x1b0] sm:$0xff]   ;;  %v982_v31 = vld [vmem:[%s4923_s7 + $0x1b8] sm:$0xff]   ;;  %v986_v32 = vld [vmem:[%s4923_s7 + $0x200] sm:$0xff]  }
  0x84   : > { %899 = vst [vmem:[%s4928_s17 + $0x50] sm:$0xff] %v898_v10   ;;  %v990_v33 = vld [vmem:[%s4923_s7 + $0x208] sm:$0xff]   ;;  %v994_v34 = vld [vmem:[%s4923_s7 + $0x210] sm:$0xff]   ;;  %v998_v35 = vld [vmem:[%s4923_s7 + $0x218] sm:$0xff]  }
  0x85   : > { %903 = vst [vmem:[%s4928_s17 + $0x58] sm:$0xff] %v902_v11   ;;  %v1002_v36 = vld [vmem:[%s4923_s7 + $0x220] sm:$0xff]   ;;  %v1006_v37 = vld [vmem:[%s4923_s7 + $0x228] sm:$0xff]   ;;  %v1010_v38 = vld [vmem:[%s4923_s7 + $0x230] sm:$0xff]  }
  0x86   : > { %907 = vst [vmem:[%s4928_s17 + $0x60] sm:$0xff] %v906_v12   ;;  %v1014_v39 = vld [vmem:[%s4923_s7 + $0x238] sm:$0xff]   ;;  %v1018_v40 = vld [vmem:[%s4923_s7 + $0x280] sm:$0xff]   ;;  %v1022_v41 = vld [vmem:[%s4923_s7 + $0x288] sm:$0xff]  }
  0x87   : > { %911 = vst [vmem:[%s4928_s17 + $0x68] sm:$0xff] %v910_v13   ;;  %v1026_v42 = vld [vmem:[%s4923_s7 + $0x290] sm:$0xff]   ;;  %v1030_v43 = vld [vmem:[%s4923_s7 + $0x298] sm:$0xff]   ;;  %v1034_v44 = vld [vmem:[%s4923_s7 + $0x2a0] sm:$0xff]  }
  0x88   : > { %915 = vst [vmem:[%s4928_s17 + $0x70] sm:$0xff] %v914_v14   ;;  %v1038_v45 = vld [vmem:[%s4923_s7 + $0x2a8] sm:$0xff]   ;;  %v1042_v46 = vld [vmem:[%s4923_s7 + $0x2b0] sm:$0xff]   ;;  %v1046_v47 = vld [vmem:[%s4923_s7 + $0x2b8] sm:$0xff]  }
  0x89   : > { %919 = vst [vmem:[%s4928_s17 + $0x78] sm:$0xff] %v918_v15   ;;  %v1050_v48 = vld [vmem:[%s4923_s7 + $0x300] sm:$0xff]   ;;  %v1054_v49 = vld [vmem:[%s4923_s7 + $0x308] sm:$0xff]   ;;  %v1058_v50 = vld [vmem:[%s4923_s7 + $0x310] sm:$0xff]  }
  0x8a   : > { %923 = vst [vmem:[%s4928_s17 + $0x80] sm:$0xff] %v922_v16   ;;  %v1062_v51 = vld [vmem:[%s4923_s7 + $0x318] sm:$0xff]   ;;  %v1066_v52 = vld [vmem:[%s4923_s7 + $0x320] sm:$0xff]   ;;  %v1070_v53 = vld [vmem:[%s4923_s7 + $0x328] sm:$0xff]  }
  0x8b   : > { %927 = vst [vmem:[%s4928_s17 + $0x88] sm:$0xff] %v926_v17   ;;  %v1074_v54 = vld [vmem:[%s4923_s7 + $0x330] sm:$0xff]   ;;  %v1078_v55 = vld [vmem:[%s4923_s7 + $0x338] sm:$0xff]   ;;  %v1082_v56 = vld [vmem:[%s4923_s7 + $0x380] sm:$0xff]  }
  0x8c   : > { %931 = vst [vmem:[%s4928_s17 + $0x90] sm:$0xff] %v930_v18   ;;  %v1086_v57 = vld [vmem:[%s4923_s7 + $0x388] sm:$0xff]   ;;  %v1090_v58 = vld [vmem:[%s4923_s7 + $0x390] sm:$0xff]   ;;  %v1094_v59 = vld [vmem:[%s4923_s7 + $0x398] sm:$0xff]  }
  0x8d   : > { %935 = vst [vmem:[%s4928_s17 + $0x98] sm:$0xff] %v934_v19   ;;  %v1098_v60 = vld [vmem:[%s4923_s7 + $0x3a0] sm:$0xff]   ;;  %v1102_v61 = vld [vmem:[%s4923_s7 + $0x3a8] sm:$0xff]   ;;  %v1106_v62 = vld [vmem:[%s4923_s7 + $0x3b0] sm:$0xff]  }
  0x8e   : > { %939 = vst [vmem:[%s4928_s17 + $0xa0] sm:$0xff] %v938_v20   ;;  %v1110_v63 = vld [vmem:[%s4923_s7 + $0x3b8] sm:$0xff]  }
  0x8f   : > { %943 = vst [vmem:[%s4928_s17 + $0xa8] sm:$0xff] %v942_v21  }
  0x90   : > { %947 = vst [vmem:[%s4928_s17 + $0xb0] sm:$0xff] %v946_v22  }
  0x91   : > { %951 = vst [vmem:[%s4928_s17 + $0xb8] sm:$0xff] %v950_v23  }
  0x92   : > { %955 = vst [vmem:[%s4928_s17 + $0xc0] sm:$0xff] %v954_v24  }
  0x93   : > { %959 = vst [vmem:[%s4928_s17 + $0xc8] sm:$0xff] %v958_v25  }
  0x94   : > { %963 = vst [vmem:[%s4928_s17 + $0xd0] sm:$0xff] %v962_v26  }
  0x95   : > { %967 = vst [vmem:[%s4928_s17 + $0xd8] sm:$0xff] %v966_v27  }
  0x96   : > { %971 = vst [vmem:[%s4928_s17 + $0xe0] sm:$0xff] %v970_v28  }
  0x97   : > { %975 = vst [vmem:[%s4928_s17 + $0xe8] sm:$0xff] %v974_v29  }
  0x98   : > { %979 = vst [vmem:[%s4928_s17 + $0xf0] sm:$0xff] %v978_v30  }
  0x99   : > { %983 = vst [vmem:[%s4928_s17 + $0xf8] sm:$0xff] %v982_v31  }
  0x9a   : > { %987 = vst [vmem:[%s4928_s17 + $0x100] sm:$0xff] %v986_v32  }
  0x9b   : > { %991 = vst [vmem:[%s4928_s17 + $0x108] sm:$0xff] %v990_v33  }
  0x9c   : > { %995 = vst [vmem:[%s4928_s17 + $0x110] sm:$0xff] %v994_v34  }
  0x9d   : > { %999 = vst [vmem:[%s4928_s17 + $0x118] sm:$0xff] %v998_v35  }
  0x9e   : > { %1003 = vst [vmem:[%s4928_s17 + $0x120] sm:$0xff] %v1002_v36  }
  0x9f   : > { %1007 = vst [vmem:[%s4928_s17 + $0x128] sm:$0xff] %v1006_v37  }
  0xa0   : > { %1011 = vst [vmem:[%s4928_s17 + $0x130] sm:$0xff] %v1010_v38  }
  0xa1   : > { %1015 = vst [vmem:[%s4928_s17 + $0x138] sm:$0xff] %v1014_v39  }
  0xa2   : > { %1019 = vst [vmem:[%s4928_s17 + $0x140] sm:$0xff] %v1018_v40  }
  0xa3   : > { %1023 = vst [vmem:[%s4928_s17 + $0x148] sm:$0xff] %v1022_v41  }
  0xa4   : > { %1027 = vst [vmem:[%s4928_s17 + $0x150] sm:$0xff] %v1026_v42  }
  0xa5   : > { %1031 = vst [vmem:[%s4928_s17 + $0x158] sm:$0xff] %v1030_v43  }
  0xa6   : > { %1035 = vst [vmem:[%s4928_s17 + $0x160] sm:$0xff] %v1034_v44  }
  0xa7   : > { %1039 = vst [vmem:[%s4928_s17 + $0x168] sm:$0xff] %v1038_v45  }
  0xa8   : > { %1043 = vst [vmem:[%s4928_s17 + $0x170] sm:$0xff] %v1042_v46  }
  0xa9   : > { %1047 = vst [vmem:[%s4928_s17 + $0x178] sm:$0xff] %v1046_v47  }
  0xaa   : > { %1051 = vst [vmem:[%s4928_s17 + $0x180] sm:$0xff] %v1050_v48  }
  0xab   : > { %1055 = vst [vmem:[%s4928_s17 + $0x188] sm:$0xff] %v1054_v49  }
  0xac   : > { %1059 = vst [vmem:[%s4928_s17 + $0x190] sm:$0xff] %v1058_v50  }
  0xad   : > { %1063 = vst [vmem:[%s4928_s17 + $0x198] sm:$0xff] %v1062_v51  }
  0xae   : > { %1067 = vst [vmem:[%s4928_s17 + $0x1a0] sm:$0xff] %v1066_v52  }
  0xaf   : > { %1071 = vst [vmem:[%s4928_s17 + $0x1a8] sm:$0xff] %v1070_v53  }
  0xb0   : > { %1075 = vst [vmem:[%s4928_s17 + $0x1b0] sm:$0xff] %v1074_v54  }
  0xb1   : > { %1079 = vst [vmem:[%s4928_s17 + $0x1b8] sm:$0xff] %v1078_v55  }
  0xb2   : > { %1083 = vst [vmem:[%s4928_s17 + $0x1c0] sm:$0xff] %v1082_v56  }
  0xb3   : > { %1087 = vst [vmem:[%s4928_s17 + $0x1c8] sm:$0xff] %v1086_v57  }
  0xb4   : > { %1091 = vst [vmem:[%s4928_s17 + $0x1d0] sm:$0xff] %v1090_v58  }
  0xb5   : > { %1095 = vst [vmem:[%s4928_s17 + $0x1d8] sm:$0xff] %v1094_v59  }
  0xb6   : > { %1099 = vst [vmem:[%s4928_s17 + $0x1e0] sm:$0xff] %v1098_v60  }
  0xb7   : > { %1103 = vst [vmem:[%s4928_s17 + $0x1e8] sm:$0xff] %v1102_v61  }
  0xb8   : > { %1107 = vst [vmem:[%s4928_s17 + $0x1f0] sm:$0xff] %v1106_v62  }
  0xb9   : > { %1111 = vst [vmem:[%s4928_s17 + $0x1f8] sm:$0xff] %v1110_v63  }
  0xba PF: > { %s1394_s11 = sand.u32 1, %s4590_s26   ;;  %s4035_s15 = sshll.u32 %s4614_s9, 2 }
  0xbb   : > { %s4034_s6 = sshll.u32 %s1394_s11, 2  ;;  %s5545_s2 = sld [smem:[#allocation19_spill]] }
  0xbc   : > { %s1398_s13 = scalar_lea.vmem [#allocation7], %s4034_s6  ;;  %s1395_s21 = scalar_lea.sflag [#allocation8], %s1394_s11 }
  0xbd   : > { %s1406_s19 = sshll.u32 %s1398_s13, 4  ;;  %s1407_s19 = int_to_ptr.vmem [resolvable:$true] %s1406_s19 }
  0xc1   : > { %s1402_s16 = scalar_lea.hbm %s5545_s2, %s4035_s15 }
  0xc2   : > { %s1404_s14 = sshll.u32 %s1402_s16, 4  ;;  %s1405_s14 = int_to_ptr.hbm [resolvable:$true] %s1404_s14 }
  0xc3   : > { %4374 = dma.hbm_to_vmem [thread:$0]  (%p4737_p6), %s1405_s14, 64, %s1407_s19, %s1395_s21  }
  0xc4 PF: > { %1440 = sbr.rel (%p4763_p0) target bundleno = 1068 (0x42c), region = 122  ;;  %s1443_s7 = sand.u32 (!%p4763_p0), 1, %s4594_s27  }
  0xc5   : > { %s1456_s17 = sand.u32 (!%p4763_p0), 1, %s4586_s25   ;;  %s4037_s0 = sshll.u32 (!%p4763_p0), %s1443_s7, 9 }
  0xc6   : > { %s5066_s12 = sshll.u32 (!%p4763_p0), %s1456_s17, 2  ;;  %s5068_s15 = scalar_lea.vmem (!%p4763_p0), [#allocation5], %s4037_s0 }
  0xc7   : > { %s5070_s6 = scalar_lea.vmem (!%p4763_p0), [#allocation6], %s4037_s0  ;;  %s1457_s11 = scalar_lea.sflag (!%p4763_p0), [#allocation8], %s1456_s17 }
  0xc9   : > { %4573 = dma.done.wait (%p4751_p11), %s1457_s11, 64  }
  0xca   : > { %4575 = vsyncadd (%p4751_p11), %s1457_s11, 4294967232 }
  0xcb   : > { %4577 = dma.done.wait (%p4745_p8), [#allocation9], 16  }
  0xcc   : > { %4579 = vsyncadd (%p4745_p8), [#allocation9], 4294967280 }
  0xcd   : > { %1471 = sfence }
  0xce   : > { %p1525_p4 = scmp.lt.s32.totalorder %s4606_s30, 1  ;;  %p1527_p5 = scmp.lt.s32.totalorder %s4602_s29, 1 }
  0xcf   : > { %s5546_s1 = sld [smem:[#allocation21_spill]]  ;;  %p4046_p6 = scmp.ne.s32.totalorder %s4602_s29, 0 }
  0xd0   : > { %s5571_s30 = smov (!%p1525_p4, %s4606_s30), 1 }
  0xd1   : > { %s1528_s0 = scalar_select %p1527_p5, %s4602_s29, 1 }
  0xd2   : > { %s4041_s27 = sshll.u32 %s5571_s30, 1  ;;  %s5085_s24 = sshll.u32 %s5571_s30, 3 }
  0xd3   : > { %s1530_s22 = sadd.s32 %s4041_s27, %s1528_s0  ;;  %s1536_s20 = scalar_lea.vmem %s5522_s4, %s5085_s24 }
  0xd4   : > { %s4042_s14 = sshll.u32 %s1530_s22, 3  ;;  %s1540_s21 = scalar_lea.vmem %s5523_s5, %s5085_s24 }
  0xd5   : > { %s5098_s11 = scalar_lea.vmem %s5521_s3, %s4042_s14  ;;  %s1544_s2 = scalar_lea.vmem %s5546_s1, %s5085_s24 }
  0xd6   : > { %1548 = sbr.rel (%p4046_p6) target bundleno = 223 (0xdf), region = 142 }
  0xdb   : > { %vm1550_vm0 = vcmask 7168   ;;  %v4621_v0 = vmov 0.0   ;;  %v4622_v1 = vmov -inf  }
  0xdc   : > { %1549 = vst [vmem:[#allocation2] sm:$0xff] %v4621_v0 }
  0xdd   : > { %1551 = vst.msk [vmem:[#allocation3] sm:$0xff] %vm1550_vm0, %v4622_v1 }
  0xde   : > { %1552 = vst.msk [vmem:[#allocation4] sm:$0xff] %vm1550_vm0, %v4621_v0 }
  0xdf PF: > { %v3731_v2 = vld [vmem:[%s5098_s11] sm:$0xff]  ;;  %v1681_v4 = vld [vmem:[%s5070_s6] sm:$0xf]  ;;  %v4623_v5 = vmov 0   ;;  %v1682_v7 = vld [vmem:[%s5070_s6 + $0x4] sm:$0xf] }
  0xe0   : > { %v1683_v3 = vld [vmem:[%s5070_s6 + $0x8] sm:$0xf]  ;;  %3732 = vmax.xlane.f32.xlu2 %v3731_v2  ;;  %4471 = vset.pattern.permute.xlu1 %v4623_v5  ;;  %v1684_v6 = vld [vmem:[%s5070_s6 + $0xc] sm:$0xf]  ;;  %v1688_v8 = vld [vmem:[%s5070_s6 + $0x1c] sm:$0xf] }
  0xe1   : > { %4470 = vset.pattern.permute.xlu0 %v4623_v5  ;;  %1829 = vperm.xlu1 %4471, %v1683_v3   ;;  %v1687_v9 = vld [vmem:[%s5070_s6 + $0x18] sm:$0xf]  ;;  %v1685_v10 = vld [vmem:[%s5070_s6 + $0x10] sm:$0xf]  ;;  %v1691_v11 = vld [vmem:[%s5070_s6 + $0x28] sm:$0xf] }
  0xe2   : > { %1811 = vperm.xlu0 %4470, %v1681_v4   ;;  %4472 = vset.pattern.permute.xlu2 %v4623_v5  ;;  %v1690_v12 = vld [vmem:[%s5070_s6 + $0x24] sm:$0xf]  ;;  %v1686_v13 = vld [vmem:[%s5070_s6 + $0x14] sm:$0xf]  ;;  %v1693_v15 = vld [vmem:[%s5070_s6 + $0x30] sm:$0xf] }
  0xe3   : > { %v1694_v14 = vld [vmem:[%s5070_s6 + $0x34] sm:$0xf]  ;;  %v1689_v16 = vld [vmem:[%s5070_s6 + $0x20] sm:$0xf]  ;;  %v1696_v18 = vld [vmem:[%s5070_s6 + $0x3c] sm:$0xf] }
  0xe4   : > { %v1697_v17 = vld [vmem:[%s5070_s6 + $0x40] sm:$0xf]  ;;  %v1692_v19 = vld [vmem:[%s5070_s6 + $0x2c] sm:$0xf]  ;;  %v1699_v21 = vld [vmem:[%s5070_s6 + $0x48] sm:$0xf] }
  0xe5   : > { %v1700_v20 = vld [vmem:[%s5070_s6 + $0x4c] sm:$0xf]  ;;  %v1695_v22 = vld [vmem:[%s5070_s6 + $0x38] sm:$0xf]  ;;  %v1702_v24 = vld [vmem:[%s5070_s6 + $0x54] sm:$0xf] }
  0xe6   : > { %v1703_v23 = vld [vmem:[%s5070_s6 + $0x58] sm:$0xf]  ;;  %v1698_v25 = vld [vmem:[%s5070_s6 + $0x44] sm:$0xf]  ;;  %v1705_v27 = vld [vmem:[%s5070_s6 + $0x60] sm:$0xf] }
  0xe7   : > { %v1706_v26 = vld [vmem:[%s5070_s6 + $0x64] sm:$0xf]  ;;  %v1701_v28 = vld [vmem:[%s5070_s6 + $0x50] sm:$0xf]  ;;  %v1708_v30 = vld [vmem:[%s5070_s6 + $0x6c] sm:$0xf] }
  0xe8   : > { %v1709_v29 = vld [vmem:[%s5070_s6 + $0x70] sm:$0xf]  ;;  %v1704_v31 = vld [vmem:[%s5070_s6 + $0x5c] sm:$0xf]  ;;  %v1711_v33 = vld [vmem:[%s5070_s6 + $0x78] sm:$0xf] }
  0xe9   : > { %1838 = vperm.xlu1 %4471, %v1684_v6   ;;  %v1712_v32 = vld [vmem:[%s5070_s6 + $0x7c] sm:$0xf]  ;;  %v1707_v34 = vld [vmem:[%s5070_s6 + $0x68] sm:$0xf]  ;;  %v1714_v36 = vld [vmem:[%s5070_s6 + $0x84] sm:$0xf] }
  0xea   : > { %1820 = vperm.xlu0 %4470, %v1682_v7   ;;  %v1715_v35 = vld [vmem:[%s5070_s6 + $0x88] sm:$0xf]  ;;  %v1710_v37 = vld [vmem:[%s5070_s6 + $0x74] sm:$0xf]  ;;  %v1717_v39 = vld [vmem:[%s5070_s6 + $0x90] sm:$0xf] }
  0xeb   : > { %v1718_v38 = vld [vmem:[%s5070_s6 + $0x94] sm:$0xf]  ;;  %v1713_v40 = vld [vmem:[%s5070_s6 + $0x80] sm:$0xf]  ;;  %v1720_v42 = vld [vmem:[%s5070_s6 + $0x9c] sm:$0xf] }
  0xec   : > { %v1721_v41 = vld [vmem:[%s5070_s6 + $0xa0] sm:$0xf]  ;;  %v1716_v43 = vld [vmem:[%s5070_s6 + $0x8c] sm:$0xf]  ;;  %v1723_v45 = vld [vmem:[%s5070_s6 + $0xa8] sm:$0xf] }
  0xed   : > { %v1724_v44 = vld [vmem:[%s5070_s6 + $0xac] sm:$0xf]  ;;  %v4624_v46 = vmov 839922192   ;;  %v5148_v48 = vld [vmem:[#allocation3] sm:$0xff]  ;;  %vm3752_vm1 = vcmask 7168  }
  0xee   : > { %v1815_v47 = vunpack.c.l.s4 %v4624_v46  ;;  %v1719_v54 = vld [vmem:[%s5070_s6 + $0x98] sm:$0xf]  ;;  %v1726_v57 = vld [vmem:[%s5070_s6 + $0xb4] sm:$0xf]  ;;  %v4054_v59 = vld [vmem:[%s5068_s15] sm:$0xff]   ;;  %vm3714_vm2 = vcmask 1041409  }
  0xef   : > { %v1727_v55 = vld [vmem:[%s5070_s6 + $0xb8] sm:$0xf]  ;;  %v4309_v60 = vld [vmem:[%s5068_s15 + $0x8] sm:$0xff]   ;;  %v4055_v61 = vunpack.c.l.bf16 %v4054_v59  ;;  %v4056_v6 = vunpack.c.h.bf16 %v4054_v59  ;;  %vm3716_vm3 = vcmask 1042434   ;;  %vm3718_vm4 = vcmask 1043459   ;;  %p4047_p7 = scmp.ne.s32.totalorder %s4602_s29, 1 }
  0xf0   : > { %v5153_v52 = vunpack.c.0.s8 %v1815_v47  ;;  %v4059_v1 = vunpack.c.l.bf16 %v4309_v60  ;;  %v4060_v3 = vunpack.c.h.bf16 %v4309_v60  ;;  %vm3720_vm5 = vcmask 1044484   ;;  %s4048_s18 = sld [smem:[#allocation10 + $0x1]] (!%p4047_p7) }
  0xf1   : > { %1874 = vperm.xlu1 %4471, %v1688_v8   ;;  %v1722_v8 = vld [vmem:[%s5070_s6 + $0xa4] sm:$0xf]  ;;  %vm3722_vm6 = vcmask 1045509   ;;  %vm3724_vm7 = vcmask 1046534   ;;  %vm3726_vm8 = vcmask 1047559   ;;  %s3839_s0 = sld [smem:[#allocation10]] (!%p4047_p7) }
  0xf2   : > { %1865 = vperm.xlu0 %4470, %v1687_v9  }
  0xf8   : > { %1847 = vperm.xlu2 %4472, %v1685_v10  }
  0xf9   : > { %1901 = vperm.xlu1 %4471, %v1691_v11   ;;  %v1730_v11 = vld [vmem:[%s5070_s6 + $0xc4] sm:$0xf] }
  0xfa   : > { %1892 = vperm.xlu0 %4470, %v1690_v12  }
 0x100   : > { %1856 = vperm.xlu2 %4472, %v1686_v13   ;;  %v4310_v13 = vld [vmem:[%s5068_s15 + $0x10] sm:$0xff]  }
 0x101   : > { %1928 = vperm.xlu1 %4471, %v1694_v14  }
 0x102   : > { %1919 = vperm.xlu0 %4470, %v1693_v15   ;;  %v1729_v15 = vld [vmem:[%s5070_s6 + $0xc0] sm:$0xf] }
 0x108   : > { %1883 = vperm.xlu2 %4472, %v1689_v16  }
 0x109   : > { %1955 = vperm.xlu1 %4471, %v1697_v17  }
 0x10a   : > { %1946 = vperm.xlu0 %4470, %v1696_v18  }
 0x110   : > { %1910 = vperm.xlu2 %4472, %v1692_v19   ;;  %v4311_v19 = vld [vmem:[%s5068_s15 + $0x18] sm:$0xff]  }
 0x111   : > { %1982 = vperm.xlu1 %4471, %v1700_v20   ;;  %v4063_v20 = vunpack.c.l.bf16 %v4310_v13 }
 0x112   : > { %1973 = vperm.xlu0 %4470, %v1699_v21  }
 0x118   : > { %1937 = vperm.xlu2 %4472, %v1695_v22  }
 0x119   : > { %2009 = vperm.xlu1 %4471, %v1703_v23  }
 0x11a   : > { %2000 = vperm.xlu0 %4470, %v1702_v24  }
 0x120   : > { %1964 = vperm.xlu2 %4472, %v1698_v25  }
 0x121   : > { %2036 = vperm.xlu1 %4471, %v1706_v26   ;;  %v4064_v26 = vunpack.c.h.bf16 %v4310_v13 }
 0x122   : > { %2027 = vperm.xlu0 %4470, %v1705_v27  }
 0x128   : > { %1991 = vperm.xlu2 %4472, %v1701_v28   ;;  %v4068_v28 = vunpack.c.h.bf16 %v4311_v19 }
 0x129   : > { %2063 = vperm.xlu1 %4471, %v1709_v29  }
 0x12a   : > { %2054 = vperm.xlu0 %4470, %v1708_v30  }
 0x130   : > { %2018 = vperm.xlu2 %4472, %v1704_v31  }
 0x131   : > { %2090 = vperm.xlu1 %4471, %v1712_v32  }
 0x132   : > { %2081 = vperm.xlu0 %4470, %v1711_v33   ;;  %v4067_v33 = vunpack.c.l.bf16 %v4311_v19 }
 0x138   : > { %2045 = vperm.xlu2 %4472, %v1707_v34  }
 0x139   : > { %2117 = vperm.xlu1 %4471, %v1715_v35   ;;  %v1725_v35 = vld [vmem:[%s5070_s6 + $0xb0] sm:$0xf] }
 0x13a   : > { %2108 = vperm.xlu0 %4470, %v1714_v36  }
 0x140   : > { %2072 = vperm.xlu2 %4472, %v1710_v37  }
 0x141   : > { %2144 = vperm.xlu1 %4471, %v1718_v38  }
 0x142   : > { %2135 = vperm.xlu0 %4470, %v1717_v39   ;;  %v1733_v39 = vld [vmem:[%s5070_s6 + $0xd0] sm:$0xf] }
 0x148   : > { %2099 = vperm.xlu2 %4472, %v1713_v40  }
 0x149   : > { %2171 = vperm.xlu1 %4471, %v1721_v41  }
 0x14a   : > { %2162 = vperm.xlu0 %4470, %v1720_v42  }
 0x150   : > { %2126 = vperm.xlu2 %4472, %v1716_v43   ;;  %v1732_v43 = vld [vmem:[%s5070_s6 + $0xcc] sm:$0xf] }
 0x151   : > { %2198 = vperm.xlu1 %4471, %v1724_v44  }
 0x152   : > { %2189 = vperm.xlu0 %4470, %v1723_v45  }
 0x153   : > { %v3733_v49 = vpop.xlane.xlu2 %3732  ;;  %v1830_v50 = vpop.permute.xlu1 %1829 }
 0x154   : > { %v5151_v51 = vmax.f32 %v5148_v48, %v3733_v49  ;;  %v1812_v53 = vpop.permute.xlu0 %1811  ;;  %v1835_v58 = vperm.slane %v1830_v50, %v5153_v52  ;;  %v4312_v50 = vld [vmem:[%s5068_s15 + $0x20] sm:$0xff]  }
 0x155   : > { %v1817_v56 = vperm.slane %v1812_v53, %v5153_v52  ;;  %v4071_v60 = vunpack.c.l.bf16 %v4312_v50 }
 0x156   : > { %3754 = vst.msk [vmem:[#allocation3] sm:$0xff] %vm3752_vm1, %v5151_v51  ;;  %v3091_v2 = vunpack.c.l.bf16 %v1835_v58 }
 0x157   : > { %v3089_v62 = vunpack.c.l.bf16 %v1817_v56 }
 0x158   : > { %2153 = vperm.xlu2 %4472, %v1719_v54   ;;  %v3219_v16 = vmul.f32 %v4059_v1, %v3091_v2  ;;  %v1728_v1 = vld [vmem:[%s5070_s6 + $0xbc] sm:$0xf] }
 0x159   : > { %2225 = vperm.xlu1 %4471, %v1727_v55   ;;  %v3217_v12 = vmul.f32 %v4055_v61, %v3089_v62 }
 0x15a   : > { %2216 = vperm.xlu0 %4470, %v1726_v57  }
 0x15b   : > { %v1848_v63 = vpop.permute.xlu2 %1847  ;;  %v1839_v0 = vpop.permute.xlu1 %1838 }
 0x15c   : > { %v1844_v4 = vperm.slane %v1839_v0, %v5153_v52  ;;  %v1821_v5 = vpop.permute.xlu0 %1820  ;;  %v1853_v9 = vperm.slane %v1848_v63, %v5153_v52  ;;  %v4072_v63 = vunpack.c.h.bf16 %v4312_v50 }
 0x15d   : > { %v1826_v7 = vperm.slane %v1821_v5, %v5153_v52 }
 0x15e   : > { %v3092_v10 = vunpack.c.l.bf16 %v1844_v4  ;;  %v3093_v21 = vunpack.c.l.bf16 %v1853_v9  ;;  %v1736_v4 = vld [vmem:[%s5070_s6 + $0xdc] sm:$0xf] }
 0x15f   : > { %v3090_v14 = vunpack.c.l.bf16 %v1826_v7 }
 0x160   : > { %v3220_v17 = vmul.f32 %v4060_v3, %v3092_v10  ;;  %2180 = vperm.xlu2 %4472, %v1722_v8   ;;  %v3221_v36 = vmul.f32 %v4063_v20, %v3093_v21  ;;  %v4313_v10 = vld [vmem:[%s5068_s15 + $0x28] sm:$0xff]  }
 0x161   : > { %v3218_v18 = vmul.f32 %v4056_v6, %v3090_v14  ;;  %2252 = vperm.xlu1 %4471, %v1730_v11   ;;  %v1735_v6 = vld [vmem:[%s5070_s6 + $0xd8] sm:$0xf]  ;;  %v4076_v19 = vunpack.c.h.bf16 %v4313_v10 }
 0x162   : > { %v3346_v22 = vpack.c.bf16 %v3220_v17, %v3219_v16  ;;  %2243 = vperm.xlu0 %4470, %v1729_v15   ;;  %v4075_v16 = vunpack.c.l.bf16 %v4313_v10 }
 0x163   : > { %v3345_v23 = vpack.c.bf16 %v3218_v18, %v3217_v12  ;;  %v1857_v24 = vpop.permute.xlu2 %1856  ;;  %v1875_v25 = vpop.permute.xlu1 %1874  ;;  %v4314_v12 = vld [vmem:[%s5068_s15 + $0x30] sm:$0xff]  }
 0x164   : > { %v1862_v27 = vperm.slane %v1857_v24, %v5153_v52  ;;  %v1880_v29 = vperm.slane %v1875_v25, %v5153_v52  ;;  %v1866_v30 = vpop.permute.xlu0 %1865  ;;  %v3411_v40 = vunpack.c.l.bf16 %v3346_v22  ;;  %v3412_v46 = vunpack.c.h.bf16 %v3346_v22 }
 0x165   : > { %v3409_v31 = vunpack.c.l.bf16 %v3345_v23  ;;  %v3410_v32 = vunpack.c.h.bf16 %v3345_v23  ;;  %v1871_v34 = vperm.slane %v1866_v30, %v5153_v52  ;;  %v4080_v21 = vunpack.c.h.bf16 %v4314_v12 }
 0x166   : > { %v3094_v37 = vunpack.c.l.bf16 %v1862_v27  ;;  %v3096_v38 = vunpack.c.l.bf16 %v1880_v29  ;;  %v4079_v29 = vunpack.c.l.bf16 %v4314_v12 }
 0x167   : > { %v3538_v41 = vadd.f32 %v3410_v32, %v3409_v31  ;;  %v3095_v42 = vunpack.c.l.bf16 %v1871_v34  ;;  %v1731_v31 = vld [vmem:[%s5070_s6 + $0xc8] sm:$0xf] }
 0x168   : > { %v3222_v44 = vmul.f32 %v4064_v26, %v3094_v37  ;;  %v3224_v45 = vmul.f32 %v4068_v28, %v3096_v38  ;;  %2207 = vperm.xlu2 %4472, %v1725_v35   ;;  %v1739_v34 = vld [vmem:[%s5070_s6 + $0xe8] sm:$0xf]  ;;  %v1738_v37 = vld [vmem:[%s5070_s6 + $0xe4] sm:$0xf] }
 0x169   : > { %v3539_v47 = vadd.f32 %v3538_v41, %v3411_v40  ;;  %v3223_v49 = vmul.f32 %v4067_v33, %v3095_v42  ;;  %2279 = vperm.xlu1 %4471, %v1733_v39  }
 0x16a   : > { %v3347_v53 = vpack.c.bf16 %v3222_v44, %v3221_v36  ;;  %2270 = vperm.xlu0 %4470, %v1732_v43   ;;  %v4315_v43 = vld [vmem:[%s5068_s15 + $0x38] sm:$0xff]  }
 0x16b   : > { %v3540_v54 = vadd.f32 %v3539_v47, %v3412_v46  ;;  %v3348_v55 = vpack.c.bf16 %v3224_v45, %v3223_v49  ;;  %v1884_v56 = vpop.permute.xlu2 %1883  ;;  %v1902_v57 = vpop.permute.xlu1 %1901  ;;  %v4083_v50 = vunpack.c.l.bf16 %v4315_v43 }
 0x16c   : > { %v3413_v58 = vunpack.c.l.bf16 %v3347_v53  ;;  %v3414_v59 = vunpack.c.h.bf16 %v3347_v53  ;;  %v1889_v61 = vperm.slane %v1884_v56, %v5153_v52  ;;  %v1893_v62 = vpop.permute.xlu0 %1892  ;;  %v1907_v11 = vperm.slane %v1902_v57, %v5153_v52  ;;  %v1734_v57 = vld [vmem:[%s5070_s6 + $0xd4] sm:$0xf] }
 0x16d   : > { %v1898_v0 = vperm.slane %v1893_v62, %v5153_v52  ;;  %v3415_v8 = vunpack.c.l.bf16 %v3348_v55  ;;  %v3416_v14 = vunpack.c.h.bf16 %v3348_v55  ;;  %v4084_v55 = vunpack.c.h.bf16 %v4315_v43 }
 0x16e   : > { %v3541_v2 = vadd.f32 %v3540_v54, %v3413_v58  ;;  %v3097_v3 = vunpack.c.l.bf16 %v1889_v61  ;;  %v3099_v23 = vunpack.c.l.bf16 %v1907_v11  ;;  %v1742_v61 = vld [vmem:[%s5070_s6 + $0xf4] sm:$0xf] }
 0x16f   : > { %v3098_v5 = vunpack.c.l.bf16 %v1898_v0 }
 0x170   : > { %v3542_v7 = vadd.f32 %v3541_v2, %v3414_v59  ;;  %v3225_v9 = vmul.f32 %v4071_v60, %v3097_v3  ;;  %2234 = vperm.xlu2 %4472, %v1728_v1   ;;  %v3227_v38 = vmul.f32 %v4075_v16, %v3099_v23  ;;  %v4316_v3 = vld [vmem:[%s5068_s15 + $0x40] sm:$0xff]  }
 0x171   : > { %v3226_v13 = vmul.f32 %v4072_v63, %v3098_v5  ;;  %2306 = vperm.xlu1 %4471, %v1736_v4   ;;  %v1741_v63 = vld [vmem:[%s5070_s6 + $0xf0] sm:$0xf]  ;;  %v4317_v5 = vld [vmem:[%s5068_s15 + $0x48] sm:$0xff]   ;;  %v4088_v12 = vunpack.c.h.bf16 %v4316_v3 }
 0x172   : > { %v3543_v15 = vadd.f32 %v3542_v7, %v3415_v8  ;;  %2297 = vperm.xlu0 %4470, %v1735_v6  }
 0x173   : > { %v3349_v17 = vpack.c.bf16 %v3226_v13, %v3225_v9  ;;  %v1911_v18 = vpop.permute.xlu2 %1910  ;;  %v1929_v20 = vpop.permute.xlu1 %1928  ;;  %v4087_v9 = vunpack.c.l.bf16 %v4316_v3 }
 0x174   : > { %v3544_v22 = vadd.f32 %v3543_v15, %v3416_v14  ;;  %v1916_v24 = vperm.slane %v1911_v18, %v5153_v52  ;;  %v1934_v25 = vperm.slane %v1929_v20, %v5153_v52  ;;  %v1920_v26 = vpop.permute.xlu0 %1919  ;;  %v4092_v14 = vunpack.c.h.bf16 %v4317_v5 }
 0x175   : > { %v3417_v27 = vunpack.c.l.bf16 %v3349_v17  ;;  %v3418_v28 = vunpack.c.h.bf16 %v3349_v17  ;;  %v1925_v30 = vperm.slane %v1920_v26, %v5153_v52 }
 0x176   : > { %v3100_v32 = vunpack.c.l.bf16 %v1916_v24  ;;  %v3102_v33 = vunpack.c.l.bf16 %v1934_v25  ;;  %v1737_v24 = vld [vmem:[%s5070_s6 + $0xe0] sm:$0xf] }
 0x177   : > { %v3545_v35 = vadd.f32 %v3544_v22, %v3417_v27  ;;  %v3101_v36 = vunpack.c.l.bf16 %v1925_v30  ;;  %v4091_v22 = vunpack.c.l.bf16 %v4317_v5  ;;  %v1745_v27 = vld [vmem:[%s5070_s6 + $0x100] sm:$0xf]  ;;  %v1744_v30 = vld [vmem:[%s5070_s6 + $0xfc] sm:$0xf] }
 0x178   : > { %v3228_v39 = vmul.f32 %v4076_v19, %v3100_v32  ;;  %v3230_v40 = vmul.f32 %v4080_v21, %v3102_v33  ;;  %2261 = vperm.xlu2 %4472, %v1731_v31  }
 0x179   : > { %v3546_v41 = vadd.f32 %v3545_v35, %v3418_v28  ;;  %v3229_v42 = vmul.f32 %v4079_v29, %v3101_v36  ;;  %2333 = vperm.xlu1 %4471, %v1739_v34   ;;  %v4318_v36 = vld [vmem:[%s5068_s15 + $0x50] sm:$0xff]  }
 0x17a   : > { %v3350_v44 = vpack.c.bf16 %v3228_v39, %v3227_v38  ;;  %2324 = vperm.xlu0 %4470, %v1738_v37   ;;  %v4095_v43 = vunpack.c.l.bf16 %v4318_v36 }
 0x17b   : > { %v3351_v45 = vpack.c.bf16 %v3230_v40, %v3229_v42  ;;  %v1938_v46 = vpop.permute.xlu2 %1937  ;;  %v1956_v47 = vpop.permute.xlu1 %1955 }
 0x17c   : > { %v3419_v49 = vunpack.c.l.bf16 %v3350_v44  ;;  %v1943_v53 = vperm.slane %v1938_v46, %v5153_v52  ;;  %v1947_v54 = vpop.permute.xlu0 %1946  ;;  %v3420_v58 = vunpack.c.h.bf16 %v3350_v44  ;;  %v1961_v4 = vperm.slane %v1956_v47, %v5153_v52 }
 0x17d   : > { %v1952_v56 = vperm.slane %v1947_v54, %v5153_v52  ;;  %v3421_v1 = vunpack.c.l.bf16 %v3351_v45  ;;  %v3422_v7 = vunpack.c.h.bf16 %v3351_v45  ;;  %v4096_v46 = vunpack.c.h.bf16 %v4318_v36 }
 0x17e   : > { %v3547_v59 = vadd.f32 %v3546_v41, %v3419_v49  ;;  %v3103_v60 = vunpack.c.l.bf16 %v1943_v53  ;;  %v3105_v16 = vunpack.c.l.bf16 %v1961_v4  ;;  %v1740_v49 = vld [vmem:[%s5070_s6 + $0xec] sm:$0xf] }
 0x17f   : > { %v3104_v62 = vunpack.c.l.bf16 %v1952_v56 }
 0x180   : > { %v3548_v0 = vadd.f32 %v3547_v59, %v3420_v58  ;;  %v3231_v2 = vmul.f32 %v4083_v50, %v3103_v60  ;;  %2288 = vperm.xlu2 %4472, %v1734_v57   ;;  %v3233_v31 = vmul.f32 %v4087_v9, %v3105_v16  ;;  %v1747_v57 = vld [vmem:[%s5070_s6 + $0x108] sm:$0xf] }
 0x181   : > { %v3232_v6 = vmul.f32 %v4084_v55, %v3104_v62  ;;  %2360 = vperm.xlu1 %4471, %v1742_v61   ;;  %v1748_v55 = vld [vmem:[%s5070_s6 + $0x10c] sm:$0xf]  ;;  %v4319_v61 = vld [vmem:[%s5068_s15 + $0x58] sm:$0xff]  }
 0x182   : > { %v3549_v8 = vadd.f32 %v3548_v0, %v3421_v1  ;;  %2351 = vperm.xlu0 %4470, %v1741_v63   ;;  %v4320_v0 = vld [vmem:[%s5068_s15 + $0x60] sm:$0xff]   ;;  %v4100_v5 = vunpack.c.h.bf16 %v4319_v61 }
 0x183   : > { %v3352_v10 = vpack.c.bf16 %v3232_v6, %v3231_v2  ;;  %v1965_v11 = vpop.permute.xlu2 %1964  ;;  %v1983_v13 = vpop.permute.xlu1 %1982  ;;  %v4099_v2 = vunpack.c.l.bf16 %v4319_v61  ;;  %v4104_v9 = vunpack.c.h.bf16 %v4320_v0 }
 0x184   : > { %v3550_v15 = vadd.f32 %v3549_v8, %v3422_v7  ;;  %v1970_v17 = vperm.slane %v1965_v11, %v5153_v52  ;;  %v1988_v18 = vperm.slane %v1983_v13, %v5153_v52  ;;  %v1974_v19 = vpop.permute.xlu0 %1973  ;;  %v4103_v13 = vunpack.c.l.bf16 %v4320_v0 }
 0x185   : > { %v3423_v20 = vunpack.c.l.bf16 %v3352_v10  ;;  %v3424_v21 = vunpack.c.h.bf16 %v3352_v10  ;;  %v1979_v23 = vperm.slane %v1974_v19, %v5153_v52 }
 0x186   : > { %v3106_v25 = vunpack.c.l.bf16 %v1970_v17  ;;  %v3108_v26 = vunpack.c.l.bf16 %v1988_v18  ;;  %v1751_v18 = vld [vmem:[%s5070_s6 + $0x118] sm:$0xf] }
 0x187   : > { %v3551_v28 = vadd.f32 %v3550_v15, %v3423_v20  ;;  %v3107_v29 = vunpack.c.l.bf16 %v1979_v23  ;;  %v1743_v15 = vld [vmem:[%s5070_s6 + $0xf8] sm:$0xf] }
 0x188   : > { %v3234_v32 = vmul.f32 %v4088_v12, %v3106_v25  ;;  %v3236_v33 = vmul.f32 %v4092_v14, %v3108_v26  ;;  %2315 = vperm.xlu2 %4472, %v1737_v24  }
 0x189   : > { %v5208_v34 = vadd.f32 %v3551_v28, %v3424_v21  ;;  %v3235_v35 = vmul.f32 %v4091_v22, %v3107_v29  ;;  %2387 = vperm.xlu1 %4471, %v1745_v27   ;;  %v1750_v22 = vld [vmem:[%s5070_s6 + $0x114] sm:$0xf]  ;;  %v4321_v28 = vld [vmem:[%s5068_s15 + $0x68] sm:$0xff]  }
 0x18a   : > { %v3353_v37 = vpack.c.bf16 %v3234_v32, %v3233_v31  ;;  %2378 = vperm.xlu0 %4470, %v1744_v30  }
 0x18b   : > { %v3354_v38 = vpack.c.bf16 %v3236_v33, %v3235_v35  ;;  %v1992_v39 = vpop.permute.xlu2 %1991  ;;  %v2010_v40 = vpop.permute.xlu1 %2009  ;;  %v4107_v35 = vunpack.c.l.bf16 %v4321_v28 }
 0x18c   : > { %v3425_v41 = vunpack.c.l.bf16 %v3353_v37  ;;  %v3426_v42 = vunpack.c.h.bf16 %v3353_v37  ;;  %v1997_v44 = vperm.slane %v1992_v39, %v5153_v52  ;;  %v2001_v45 = vpop.permute.xlu0 %2000  ;;  %v2015_v62 = vperm.slane %v2010_v40, %v5153_v52  ;;  %v1746_v40 = vld [vmem:[%s5070_s6 + $0x104] sm:$0xf] }
 0x18d   : > { %v2006_v47 = vperm.slane %v2001_v45, %v5153_v52  ;;  %v3427_v53 = vunpack.c.l.bf16 %v3354_v38  ;;  %v3428_v58 = vunpack.c.h.bf16 %v3354_v38  ;;  %v4108_v38 = vunpack.c.h.bf16 %v4321_v28 }
 0x18e   : > { %v3559_v50 = vadd.f32 %v3426_v42, %v3425_v41  ;;  %v3109_v54 = vunpack.c.l.bf16 %v1997_v44  ;;  %v3111_v7 = vunpack.c.l.bf16 %v2015_v62  ;;  %v1754_v44 = vld [vmem:[%s5070_s6 + $0x124] sm:$0xf] }
 0x18f   : > { %v3110_v56 = vunpack.c.l.bf16 %v2006_v47 }
 0x190   : > { %v3560_v59 = vadd.f32 %v3559_v50, %v3427_v53  ;;  %v3237_v60 = vmul.f32 %v4095_v43, %v3109_v54  ;;  %2342 = vperm.xlu2 %4472, %v1740_v49   ;;  %v3239_v23 = vmul.f32 %v4099_v2, %v3111_v7  ;;  %v4322_v53 = vld [vmem:[%s5068_s15 + $0x70] sm:$0xff]  }
 0x191   : > { %v3238_v63 = vmul.f32 %v4096_v46, %v3110_v56  ;;  %2414 = vperm.xlu1 %4471, %v1748_v55   ;;  %v1753_v46 = vld [vmem:[%s5070_s6 + $0x120] sm:$0xf]  ;;  %v4323_v55 = vld [vmem:[%s5068_s15 + $0x78] sm:$0xff]   ;;  %v4112_v62 = vunpack.c.h.bf16 %v4322_v53 }
 0x192   : > { %v3561_v1 = vadd.f32 %v3560_v59, %v3428_v58  ;;  %2405 = vperm.xlu0 %4470, %v1747_v57   ;;  %v4111_v59 = vunpack.c.l.bf16 %v4322_v53  ;;  %v4116_v0 = vunpack.c.h.bf16 %v4323_v55  ;;  %v4115_v7 = vunpack.c.l.bf16 %v4323_v55 }
 0x193   : > { %v3355_v3 = vpack.c.bf16 %v3238_v63, %v3237_v60  ;;  %v2019_v4 = vpop.permute.xlu2 %2018  ;;  %v2037_v6 = vpop.permute.xlu1 %2036 }
 0x194   : > { %v2024_v8 = vperm.slane %v2019_v4, %v5153_v52  ;;  %v2042_v10 = vperm.slane %v2037_v6, %v5153_v52  ;;  %v2028_v11 = vpop.permute.xlu0 %2027 }
 0x195   : > { %v3429_v12 = vunpack.c.l.bf16 %v3355_v3  ;;  %v2033_v14 = vperm.slane %v2028_v11, %v5153_v52  ;;  %v3430_v19 = vunpack.c.h.bf16 %v3355_v3 }
 0x196   : > { %v3112_v16 = vunpack.c.l.bf16 %v2024_v8  ;;  %v3114_v17 = vunpack.c.l.bf16 %v2042_v10 }
 0x197   : > { %v3562_v20 = vadd.f32 %v3561_v1, %v3429_v12  ;;  %v3113_v21 = vunpack.c.l.bf16 %v2033_v14  ;;  %v1757_v12 = vld [vmem:[%s5070_s6 + $0x130] sm:$0xf] }
 0x198   : > { %v3240_v24 = vmul.f32 %v4100_v5, %v3112_v16  ;;  %v3242_v25 = vmul.f32 %v4104_v9, %v3114_v17  ;;  %2369 = vperm.xlu2 %4472, %v1743_v15   ;;  %v1749_v9 = vld [vmem:[%s5070_s6 + $0x110] sm:$0xf]  ;;  %v1756_v16 = vld [vmem:[%s5070_s6 + $0x12c] sm:$0xf] }
 0x199   : > { %v3563_v26 = vadd.f32 %v3562_v20, %v3430_v19  ;;  %v3241_v27 = vmul.f32 %v4103_v13, %v3113_v21  ;;  %2441 = vperm.xlu1 %4471, %v1751_v18  }
 0x19a   : > { %v3356_v29 = vpack.c.bf16 %v3240_v24, %v3239_v23  ;;  %2432 = vperm.xlu0 %4470, %v1750_v22   ;;  %v4324_v22 = vld [vmem:[%s5068_s15 + $0x80] sm:$0xff]   ;;  %v3553_v23 = vrot.slane %v5208_v34, 4 }
 0x19b   : > { %v3357_v30 = vpack.c.bf16 %v3242_v25, %v3241_v27  ;;  %v2046_v31 = vpop.permute.xlu2 %2045  ;;  %v2064_v32 = vpop.permute.xlu1 %2063 }
 0x19c   : > { %v3431_v33 = vunpack.c.l.bf16 %v3356_v29  ;;  %v2051_v36 = vperm.slane %v2046_v31, %v5153_v52  ;;  %v2055_v37 = vpop.permute.xlu0 %2054  ;;  %v3432_v41 = vunpack.c.h.bf16 %v3356_v29  ;;  %v2069_v54 = vperm.slane %v2064_v32, %v5153_v52 }
 0x19d   : > { %v2060_v39 = vperm.slane %v2055_v37, %v5153_v52  ;;  %v3433_v49 = vunpack.c.l.bf16 %v3357_v30  ;;  %v3434_v57 = vunpack.c.h.bf16 %v3357_v30  ;;  %v4119_v29 = vunpack.c.l.bf16 %v4324_v22 }
 0x19e   : > { %v3564_v42 = vadd.f32 %v3563_v26, %v3431_v33  ;;  %v3115_v43 = vunpack.c.l.bf16 %v2051_v36  ;;  %v3117_v2 = vunpack.c.l.bf16 %v2069_v54  ;;  %v4120_v32 = vunpack.c.h.bf16 %v4324_v22 }
 0x19f   : > { %v3116_v45 = vunpack.c.l.bf16 %v2060_v39  ;;  %v3554_v36 = vadd.f32 %v3553_v23, %v5208_v34 }
 0x1a0   : > { %v3565_v47 = vadd.f32 %v3564_v42, %v3432_v41  ;;  %v3243_v50 = vmul.f32 %v4107_v35, %v3115_v43  ;;  %2396 = vperm.xlu2 %4472, %v1746_v40   ;;  %v3245_v17 = vmul.f32 %v4111_v59, %v3117_v2  ;;  %v1752_v35 = vld [vmem:[%s5070_s6 + $0x11c] sm:$0xf]  ;;  %v1759_v43 = vld [vmem:[%s5070_s6 + $0x138] sm:$0xf] }
 0x1a1   : > { %v3244_v56 = vmul.f32 %v4108_v38, %v3116_v45  ;;  %2468 = vperm.xlu1 %4471, %v1754_v44   ;;  %v1760_v40 = vld [vmem:[%s5070_s6 + $0x13c] sm:$0xf]  ;;  %v3555_v53 = vrot.slane %v3554_v36, 2 }
 0x1a2   : > { %v3566_v58 = vadd.f32 %v3565_v47, %v3433_v49  ;;  %2459 = vperm.xlu0 %4470, %v1753_v46   ;;  %v4325_v47 = vld [vmem:[%s5068_s15 + $0x88] sm:$0xff]  }
 0x1a3   : > { %v3358_v60 = vpack.c.bf16 %v3244_v56, %v3243_v50  ;;  %v2073_v61 = vpop.permute.xlu2 %2072  ;;  %v2091_v63 = vpop.permute.xlu1 %2090  ;;  %v4326_v50 = vld [vmem:[%s5068_s15 + $0x90] sm:$0xff]   ;;  %v4123_v55 = vunpack.c.l.bf16 %v4325_v47  ;;  %v4124_v59 = vunpack.c.h.bf16 %v4325_v47 }
 0x1a4   : > { %v3567_v1 = vadd.f32 %v3566_v58, %v3434_v57  ;;  %v2078_v3 = vperm.slane %v2073_v61, %v5153_v52  ;;  %v2096_v4 = vperm.slane %v2091_v63, %v5153_v52  ;;  %v2082_v5 = vpop.permute.xlu0 %2081  ;;  %v4128_v63 = vunpack.c.h.bf16 %v4326_v50 }
 0x1a5   : > { %v3435_v6 = vunpack.c.l.bf16 %v3358_v60  ;;  %v2087_v8 = vperm.slane %v2082_v5, %v5153_v52  ;;  %v3436_v13 = vunpack.c.h.bf16 %v3358_v60  ;;  %v4127_v2 = vunpack.c.l.bf16 %v4326_v50 }
 0x1a6   : > { %v3118_v10 = vunpack.c.l.bf16 %v2078_v3  ;;  %v3120_v11 = vunpack.c.l.bf16 %v2096_v4  ;;  %v1755_v4 = vld [vmem:[%s5070_s6 + $0x128] sm:$0xf] }
 0x1a7   : > { %v3568_v14 = vadd.f32 %v3567_v1, %v3435_v6  ;;  %v3119_v15 = vunpack.c.l.bf16 %v2087_v8  ;;  %v1763_v8 = vld [vmem:[%s5070_s6 + $0x148] sm:$0xf] }
 0x1a8   : > { %v3246_v18 = vmul.f32 %v4112_v62, %v3118_v10  ;;  %v3248_v19 = vmul.f32 %v4116_v0, %v3120_v11  ;;  %2423 = vperm.xlu2 %4472, %v1749_v9   ;;  %v3556_v9 = vadd.f32 %v3555_v53, %v3554_v36  ;;  %v4329_v53 = vld [vmem:[%s5068_s15 + $0xa8] sm:$0xff]  }
 0x1a9   : > { %v3569_v20 = vadd.f32 %v3568_v14, %v3436_v13  ;;  %v3247_v21 = vmul.f32 %v4115_v7, %v3119_v15  ;;  %2495 = vperm.xlu1 %4471, %v1757_v12   ;;  %v1762_v13 = vld [vmem:[%s5070_s6 + $0x144] sm:$0xf] }
 0x1aa   : > { %v3359_v24 = vpack.c.bf16 %v3246_v18, %v3245_v17  ;;  %2486 = vperm.xlu0 %4470, %v1756_v16   ;;  %v4327_v18 = vld [vmem:[%s5068_s15 + $0x98] sm:$0xff]   ;;  %v3557_v22 = vrot.slane %v3556_v9, 1 }
 0x1ab   : > { %v3360_v25 = vpack.c.bf16 %v3248_v19, %v3247_v21  ;;  %v2100_v26 = vpop.permute.xlu2 %2099  ;;  %v2118_v27 = vpop.permute.xlu1 %2117 }
 0x1ac   : > { %v3437_v28 = vunpack.c.l.bf16 %v3359_v24  ;;  %v2105_v30 = vperm.slane %v2100_v26, %v5153_v52  ;;  %v2109_v31 = vpop.permute.xlu0 %2108  ;;  %v3438_v37 = vunpack.c.h.bf16 %v3359_v24  ;;  %v2123_v41 = vperm.slane %v2118_v27, %v5153_v52 }
 0x1ad   : > { %v2114_v33 = vperm.slane %v2109_v31, %v5153_v52  ;;  %v3439_v45 = vunpack.c.l.bf16 %v3360_v25  ;;  %v3440_v54 = vunpack.c.h.bf16 %v3360_v25  ;;  %v4131_v25 = vunpack.c.l.bf16 %v4327_v18 }
 0x1ae   : > { %v3570_v38 = vadd.f32 %v3569_v20, %v3437_v28  ;;  %v3121_v39 = vunpack.c.l.bf16 %v2105_v30  ;;  %v3123_v56 = vunpack.c.l.bf16 %v2123_v41  ;;  %v3558_v41 = vadd.f32 %v3557_v22, %v3556_v9 }
 0x1af   : > { %v3122_v42 = vunpack.c.l.bf16 %v2114_v33 }
 0x1b0   : > { %v3571_v44 = vadd.f32 %v3570_v38, %v3438_v37  ;;  %v3249_v46 = vmul.f32 %v4119_v29, %v3121_v39  ;;  %2450 = vperm.xlu2 %4472, %v1752_v35   ;;  %v3251_v10 = vmul.f32 %v4123_v55, %v3123_v56  ;;  %v1758_v35 = vld [vmem:[%s5070_s6 + $0x134] sm:$0xf] }
 0x1b1   : > { %v3250_v49 = vmul.f32 %v4120_v32, %v3122_v42  ;;  %2522 = vperm.xlu1 %4471, %v1760_v40   ;;  %v4132_v32 = vunpack.c.h.bf16 %v4327_v18  ;;  %v1766_v40 = vld [vmem:[%s5070_s6 + $0x154] sm:$0xf] }
 0x1b2   : > { %v3572_v34 = vadd.f32 %v3571_v44, %v3439_v45  ;;  %2513 = vperm.xlu0 %4470, %v1759_v43   ;;  %v1765_v44 = vld [vmem:[%s5070_s6 + $0x150] sm:$0xf] }
 0x1b3   : > { %v3361_v57 = vpack.c.bf16 %v3250_v49, %v3249_v46  ;;  %v2127_v58 = vpop.permute.xlu2 %2126  ;;  %v2145_v60 = vpop.permute.xlu1 %2144  ;;  %v4328_v49 = vld [vmem:[%s5068_s15 + $0xa0] sm:$0xff]  }
 0x1b4   : > { %v3573_v61 = vadd.f32 %v3572_v34, %v3440_v54  ;;  %v2132_v62 = vperm.slane %v2127_v58, %v5153_v52  ;;  %v2150_v0 = vperm.slane %v2145_v60, %v5153_v52  ;;  %v2136_v1 = vpop.permute.xlu0 %2135  ;;  %v4136_v60 = vunpack.c.h.bf16 %v4328_v49 }
 0x1b5   : > { %v2141_v3 = vperm.slane %v2136_v1, %v5153_v52  ;;  %v3441_v11 = vunpack.c.l.bf16 %v3361_v57  ;;  %v3442_v15 = vunpack.c.h.bf16 %v3361_v57  ;;  %v4135_v57 = vunpack.c.l.bf16 %v4328_v49 }
 0x1b6   : > { %v3574_v5 = vrot.slane %v3573_v61, 4  ;;  %v3124_v6 = vunpack.c.l.bf16 %v2132_v62  ;;  %v3126_v7 = vunpack.c.l.bf16 %v2150_v0  ;;  %v4140_v62 = vunpack.c.h.bf16 %v4329_v53 }
 0x1b7   : > { %v3125_v12 = vunpack.c.l.bf16 %v2141_v3  ;;  %v3580_v28 = vadd.f32 %v3442_v15, %v3441_v11 }
 0x1b8   : > { %v3575_v14 = vadd.f32 %v3574_v5, %v3573_v61  ;;  %v3252_v16 = vmul.f32 %v4124_v59, %v3124_v6  ;;  %v3254_v17 = vmul.f32 %v4128_v63, %v3126_v7  ;;  %2477 = vperm.xlu2 %4472, %v1755_v4   ;;  %v4139_v5 = vunpack.c.l.bf16 %v4329_v53  ;;  %v1761_v7 = vld [vmem:[%s5070_s6 + $0x140] sm:$0xf] }
 0x1b9   : > { %v3253_v19 = vmul.f32 %v4127_v2, %v3125_v12  ;;  %2549 = vperm.xlu1 %4471, %v1763_v8  }
 0x1ba   : > { %v3576_v20 = vrot.slane %v3575_v14, 2  ;;  %v3362_v21 = vpack.c.bf16 %v3252_v16, %v3251_v10  ;;  %2540 = vperm.xlu0 %4470, %v1762_v13   ;;  %v1769_v10 = vld [vmem:[%s5070_s6 + $0x160] sm:$0xf] }
 0x1bb   : > { %v3363_v23 = vpack.c.bf16 %v3254_v17, %v3253_v19  ;;  %v2154_v24 = vpop.permute.xlu2 %2153  ;;  %v2172_v26 = vpop.permute.xlu1 %2171 }
 0x1bc   : > { %v3577_v27 = vadd.f32 %v3576_v20, %v3575_v14  ;;  %v3443_v29 = vunpack.c.l.bf16 %v3362_v21  ;;  %v2159_v30 = vperm.slane %v2154_v24, %v5153_v52  ;;  %v2163_v31 = vpop.permute.xlu0 %2162  ;;  %v3444_v37 = vunpack.c.h.bf16 %v3362_v21  ;;  %v1768_v14 = vld [vmem:[%s5070_s6 + $0x15c] sm:$0xf]  ;;  %v4330_v20 = vld [vmem:[%s5068_s15 + $0xb0] sm:$0xff]  }
 0x1bd   : > { %v2168_v33 = vperm.slane %v2163_v31, %v5153_v52  ;;  %v3445_v42 = vunpack.c.l.bf16 %v3363_v23  ;;  %v2177_v50 = vperm.slane %v2172_v26, %v5153_v52  ;;  %v3446_v55 = vunpack.c.h.bf16 %v3363_v23  ;;  %v1764_v31 = vld [vmem:[%s5070_s6 + $0x14c] sm:$0xf] }
 0x1be   : > { %v3578_v36 = vrot.slane %v3577_v27, 1  ;;  %v3581_v38 = vadd.f32 %v3580_v28, %v3443_v29  ;;  %v3127_v39 = vunpack.c.l.bf16 %v2159_v30  ;;  %v4143_v26 = vunpack.c.l.bf16 %v4330_v20 }
 0x1bf   : > { %v3128_v43 = vunpack.c.l.bf16 %v2168_v33  ;;  %v3129_v0 = vunpack.c.l.bf16 %v2177_v50  ;;  %v4144_v29 = vunpack.c.h.bf16 %v4330_v20 }
 0x1c0   : > { %v3579_v45 = vadd.f32 %v3578_v36, %v3577_v27  ;;  %v3582_v46 = vadd.f32 %v3581_v38, %v3444_v37  ;;  %v3255_v47 = vmul.f32 %v4131_v25, %v3127_v39  ;;  %2504 = vperm.xlu2 %4472, %v1758_v35   ;;  %v1772_v36 = vld [vmem:[%s5070_s6 + $0x16c] sm:$0xf]  ;;  %v1771_v38 = vld [vmem:[%s5070_s6 + $0x168] sm:$0xf] }
 0x1c1   : > { %v3256_v54 = vmul.f32 %v4132_v32, %v3128_v43  ;;  %2576 = vperm.xlu1 %4471, %v1766_v40   ;;  %v3257_v15 = vmul.f32 %v4135_v57, %v3129_v0 }
 0x1c2   : > { %v5266_v34 = vsel %vm3714_vm2, %v3579_v45, %v3558_v41  ;;  %v3583_v56 = vadd.f32 %v3582_v46, %v3445_v42  ;;  %2567 = vperm.xlu0 %4470, %v1765_v44   ;;  %v4331_v42 = vld [vmem:[%s5068_s15 + $0xb8] sm:$0xff]   ;;  %v4332_v44 = vld [vmem:[%s5068_s15 + $0xc0] sm:$0xff]  }
 0x1c3   : > { %v3364_v58 = vpack.c.bf16 %v3256_v54, %v3255_v47  ;;  %v2181_v59 = vpop.permute.xlu2 %2180  ;;  %v2199_v61 = vpop.permute.xlu1 %2198  ;;  %v4147_v49 = vunpack.c.l.bf16 %v4331_v42  ;;  %v4148_v54 = vunpack.c.h.bf16 %v4331_v42 }
 0x1c4   : > { %v3584_v63 = vadd.f32 %v3583_v56, %v3446_v55  ;;  %v2186_v1 = vperm.slane %v2181_v59, %v5153_v52  ;;  %v2204_v2 = vperm.slane %v2199_v61, %v5153_v52  ;;  %v2190_v3 = vpop.permute.xlu0 %2189  ;;  %v4152_v56 = vunpack.c.h.bf16 %v4332_v44 }
 0x1c5   : > { %v3447_v4 = vunpack.c.l.bf16 %v3364_v58  ;;  %v2195_v6 = vperm.slane %v2190_v3, %v5153_v52  ;;  %v3448_v11 = vunpack.c.h.bf16 %v3364_v58 }
 0x1c6   : > { %v3130_v8 = vunpack.c.l.bf16 %v2186_v1  ;;  %v3132_v9 = vunpack.c.l.bf16 %v2204_v2  ;;  %v1767_v1 = vld [vmem:[%s5070_s6 + $0x158] sm:$0xf] }
 0x1c7   : > { %v3585_v12 = vadd.f32 %v3584_v63, %v3447_v4  ;;  %v3131_v13 = vunpack.c.l.bf16 %v2195_v6  ;;  %v4151_v63 = vunpack.c.l.bf16 %v4332_v44  ;;  %v1775_v4 = vld [vmem:[%s5070_s6 + $0x178] sm:$0xf] }
 0x1c8   : > { %v3258_v16 = vmul.f32 %v4136_v60, %v3130_v8  ;;  %v3260_v17 = vmul.f32 %v4140_v62, %v3132_v9  ;;  %2531 = vperm.xlu2 %4472, %v1761_v7   ;;  %v1774_v8 = vld [vmem:[%s5070_s6 + $0x174] sm:$0xf] }
 0x1c9   : > { %v3586_v18 = vadd.f32 %v3585_v12, %v3448_v11  ;;  %v3259_v19 = vmul.f32 %v4139_v5, %v3131_v13  ;;  %2603 = vperm.xlu1 %4471, %v1769_v10  }
 0x1ca   : > { %v3365_v21 = vpack.c.bf16 %v3258_v16, %v3257_v15  ;;  %2594 = vperm.xlu0 %4470, %v1768_v14   ;;  %v4333_v14 = vld [vmem:[%s5068_s15 + $0xc8] sm:$0xff]  }
 0x1cb   : > { %v3366_v22 = vpack.c.bf16 %v3260_v17, %v3259_v19  ;;  %v2208_v23 = vpop.permute.xlu2 %2207  ;;  %v2226_v24 = vpop.permute.xlu1 %2225  ;;  %v4155_v20 = vunpack.c.l.bf16 %v4333_v14 }
 0x1cc   : > { %v3449_v25 = vunpack.c.l.bf16 %v3365_v21  ;;  %v2213_v27 = vperm.slane %v2208_v23, %v5153_v52  ;;  %v2217_v28 = vpop.permute.xlu0 %2216  ;;  %v3450_v32 = vunpack.c.h.bf16 %v3365_v21  ;;  %v2231_v43 = vperm.slane %v2226_v24, %v5153_v52 }
 0x1cd   : > { %v2222_v30 = vperm.slane %v2217_v28, %v5153_v52  ;;  %v3451_v40 = vunpack.c.l.bf16 %v3366_v22  ;;  %v3452_v46 = vunpack.c.h.bf16 %v3366_v22  ;;  %v4156_v23 = vunpack.c.h.bf16 %v4333_v14 }
 0x1ce   : > { %v3587_v33 = vadd.f32 %v3586_v18, %v3449_v25  ;;  %v3133_v35 = vunpack.c.l.bf16 %v2213_v27  ;;  %v3135_v58 = vunpack.c.l.bf16 %v2231_v43  ;;  %v1770_v25 = vld [vmem:[%s5070_s6 + $0x164] sm:$0xf] }
 0x1cf   : > { %v3134_v37 = vunpack.c.l.bf16 %v2222_v30 }
 0x1d0   : > { %v3588_v39 = vadd.f32 %v3587_v33, %v3450_v32  ;;  %v3261_v41 = vmul.f32 %v4143_v26, %v3133_v35  ;;  %2558 = vperm.xlu2 %4472, %v1764_v31   ;;  %v3263_v9 = vmul.f32 %v4147_v49, %v3135_v58  ;;  %v1777_v31 = vld [vmem:[%s5070_s6 + $0x180] sm:$0xf]  ;;  %v4334_v35 = vld [vmem:[%s5068_s15 + $0xd0] sm:$0xff]  }
 0x1d1   : > { %v3262_v45 = vmul.f32 %v4144_v29, %v3134_v37  ;;  %2630 = vperm.xlu1 %4471, %v1772_v36   ;;  %v1778_v29 = vld [vmem:[%s5070_s6 + $0x184] sm:$0xf]  ;;  %v4335_v37 = vld [vmem:[%s5068_s15 + $0xd8] sm:$0xff]   ;;  %v4159_v42 = vunpack.c.l.bf16 %v4334_v35 }
 0x1d2   : > { %v3589_v47 = vadd.f32 %v3588_v39, %v3451_v40  ;;  %2621 = vperm.xlu0 %4470, %v1771_v38   ;;  %v4163_v58 = vunpack.c.l.bf16 %v4335_v37 }
 0x1d3   : > { %v3367_v50 = vpack.c.bf16 %v3262_v45, %v3261_v41  ;;  %v2235_v53 = vpop.permute.xlu2 %2234  ;;  %v2253_v55 = vpop.permute.xlu1 %2252  ;;  %v4160_v45 = vunpack.c.h.bf16 %v4334_v35 }
 0x1d4   : > { %v3590_v57 = vadd.f32 %v3589_v47, %v3452_v46  ;;  %v2240_v59 = vperm.slane %v2235_v53, %v5153_v52  ;;  %v2258_v60 = vperm.slane %v2253_v55, %v5153_v52  ;;  %v2244_v61 = vpop.permute.xlu0 %2243  ;;  %v4164_v47 = vunpack.c.h.bf16 %v4335_v37 }
 0x1d5   : > { %v3453_v62 = vunpack.c.l.bf16 %v3367_v50  ;;  %v2249_v0 = vperm.slane %v2244_v61, %v5153_v52  ;;  %v3454_v5 = vunpack.c.h.bf16 %v3367_v50 }
 0x1d6   : > { %v3136_v2 = vunpack.c.l.bf16 %v2240_v59  ;;  %v3138_v3 = vunpack.c.l.bf16 %v2258_v60  ;;  %v1773_v60 = vld [vmem:[%s5070_s6 + $0x170] sm:$0xf] }
 0x1d7   : > { %v3591_v6 = vadd.f32 %v3590_v57, %v3453_v62  ;;  %v3137_v7 = vunpack.c.l.bf16 %v2249_v0  ;;  %v1781_v0 = vld [vmem:[%s5070_s6 + $0x190] sm:$0xf] }
 0x1d8   : > { %v3264_v10 = vmul.f32 %v4148_v54, %v3136_v2  ;;  %v3266_v11 = vmul.f32 %v4152_v56, %v3138_v3  ;;  %2585 = vperm.xlu2 %4472, %v1767_v1  }
 0x1d9   : > { %v3592_v12 = vadd.f32 %v3591_v6, %v3454_v5  ;;  %v3265_v13 = vmul.f32 %v4151_v63, %v3137_v7  ;;  %2657 = vperm.xlu1 %4471, %v1775_v4   ;;  %v1780_v4 = vld [vmem:[%s5070_s6 + $0x18c] sm:$0xf] }
 0x1da   : > { %v3368_v15 = vpack.c.bf16 %v3264_v10, %v3263_v9  ;;  %2648 = vperm.xlu0 %4470, %v1774_v8  }
 0x1db   : > { %v3369_v16 = vpack.c.bf16 %v3266_v11, %v3265_v13  ;;  %v2262_v17 = vpop.permute.xlu2 %2261  ;;  %v2280_v18 = vpop.permute.xlu1 %2279  ;;  %v4336_v11 = vld [vmem:[%s5068_s15 + $0xe0] sm:$0xff]  }
 0x1dc   : > { %v3455_v19 = vunpack.c.l.bf16 %v3368_v15  ;;  %v2267_v21 = vperm.slane %v2262_v17, %v5153_v52  ;;  %v2271_v22 = vpop.permute.xlu0 %2270  ;;  %v3456_v26 = vunpack.c.h.bf16 %v3368_v15  ;;  %v2285_v36 = vperm.slane %v2280_v18, %v5153_v52 }
 0x1dd   : > { %v2276_v24 = vperm.slane %v2271_v22, %v5153_v52  ;;  %v3457_v38 = vunpack.c.l.bf16 %v3369_v16  ;;  %v3458_v39 = vunpack.c.h.bf16 %v3369_v16  ;;  %v4168_v22 = vunpack.c.h.bf16 %v4336_v11 }
 0x1de   : > { %v3593_v27 = vadd.f32 %v3592_v12, %v3455_v19  ;;  %v3139_v28 = vunpack.c.l.bf16 %v2267_v21  ;;  %v3141_v50 = vunpack.c.l.bf16 %v2285_v36  ;;  %v4167_v19 = vunpack.c.l.bf16 %v4336_v11  ;;  %v4337_v36 = vld [vmem:[%s5068_s15 + $0xe8] sm:$0xff]  }
 0x1df   : > { %v3140_v30 = vunpack.c.l.bf16 %v2276_v24  ;;  %v3601_v56 = vadd.f32 %v3458_v39, %v3457_v38  ;;  %v1776_v24 = vld [vmem:[%s5070_s6 + $0x17c] sm:$0xf]  ;;  %v4338_v38 = vld [vmem:[%s5068_s15 + $0xf0] sm:$0xff]  }
 0x1e0   : > { %v3594_v32 = vadd.f32 %v3593_v27, %v3456_v26  ;;  %v3267_v33 = vmul.f32 %v4155_v20, %v3139_v28  ;;  %2612 = vperm.xlu2 %4472, %v1770_v25   ;;  %v3269_v6 = vmul.f32 %v4159_v42, %v3141_v50 }
 0x1e1   : > { %v3268_v40 = vmul.f32 %v4156_v23, %v3140_v30  ;;  %2684 = vperm.xlu1 %4471, %v1778_v29   ;;  %v1784_v29 = vld [vmem:[%s5070_s6 + $0x19c] sm:$0xf] }
 0x1e2   : > { %v3595_v41 = vrot.slane %v3594_v32, 4  ;;  %2675 = vperm.xlu0 %4470, %v1777_v31   ;;  %v1783_v31 = vld [vmem:[%s5070_s6 + $0x198] sm:$0xf] }
 0x1e3   : > { %v3370_v43 = vpack.c.bf16 %v3268_v40, %v3267_v33  ;;  %v2289_v44 = vpop.permute.xlu2 %2288  ;;  %v2307_v46 = vpop.permute.xlu1 %2306 }
 0x1e4   : > { %v3596_v49 = vadd.f32 %v3595_v41, %v3594_v32  ;;  %v2294_v53 = vperm.slane %v2289_v44, %v5153_v52  ;;  %v2312_v54 = vperm.slane %v2307_v46, %v5153_v52  ;;  %v2298_v55 = vpop.permute.xlu0 %2297  ;;  %v4172_v44 = vunpack.c.h.bf16 %v4337_v36 }
 0x1e5   : > { %v3459_v57 = vunpack.c.l.bf16 %v3370_v43  ;;  %v2303_v59 = vperm.slane %v2298_v55, %v5153_v52  ;;  %v3460_v1 = vunpack.c.h.bf16 %v3370_v43  ;;  %v4176_v46 = vunpack.c.h.bf16 %v4338_v38 }
 0x1e6   : > { %v3597_v61 = vrot.slane %v3596_v49, 2  ;;  %v3142_v62 = vunpack.c.l.bf16 %v2294_v53  ;;  %v3144_v63 = vunpack.c.l.bf16 %v2312_v54 }
 0x1e7   : > { %v3602_v2 = vadd.f32 %v3601_v56, %v3459_v57  ;;  %v3143_v3 = vunpack.c.l.bf16 %v2303_v59  ;;  %v4175_v56 = vunpack.c.l.bf16 %v4338_v38 }
 0x1e8   : > { %v3598_v5 = vadd.f32 %v3597_v61, %v3596_v49  ;;  %v3270_v7 = vmul.f32 %v4160_v45, %v3142_v62  ;;  %v3272_v8 = vmul.f32 %v4164_v47, %v3144_v63  ;;  %2639 = vperm.xlu2 %4472, %v1773_v60   ;;  %v1787_v61 = vld [vmem:[%s5070_s6 + $0x1a8] sm:$0xf] }
 0x1e9   : > { %v3603_v9 = vadd.f32 %v3602_v2, %v3460_v1  ;;  %v3271_v10 = vmul.f32 %v4163_v58, %v3143_v3  ;;  %2711 = vperm.xlu1 %4471, %v1781_v0   ;;  %v1779_v58 = vld [vmem:[%s5070_s6 + $0x188] sm:$0xf]  ;;  %v1786_v1 = vld [vmem:[%s5070_s6 + $0x1a4] sm:$0xf] }
 0x1ea   : > { %v3599_v12 = vrot.slane %v3598_v5, 1  ;;  %v3371_v13 = vpack.c.bf16 %v3270_v7, %v3269_v6  ;;  %2702 = vperm.xlu0 %4470, %v1780_v4   ;;  %v4339_v7 = vld [vmem:[%s5068_s15 + $0xf8] sm:$0xff]  }
 0x1eb   : > { %v3372_v14 = vpack.c.bf16 %v3272_v8, %v3271_v10  ;;  %v2316_v15 = vpop.permute.xlu2 %2315  ;;  %v2334_v16 = vpop.permute.xlu1 %2333 }
 0x1ec   : > { %v3600_v17 = vadd.f32 %v3599_v12, %v3598_v5  ;;  %v3461_v18 = vunpack.c.l.bf16 %v3371_v13  ;;  %v2321_v20 = vperm.slane %v2316_v15, %v5153_v52  ;;  %v2325_v21 = vpop.permute.xlu0 %2324  ;;  %v3462_v26 = vunpack.c.h.bf16 %v3371_v13 }
 0x1ed   : > { %v2330_v23 = vperm.slane %v2325_v21, %v5153_v52  ;;  %v3463_v33 = vunpack.c.l.bf16 %v3372_v14  ;;  %v2339_v37 = vperm.slane %v2334_v16, %v5153_v52  ;;  %v3464_v40 = vunpack.c.h.bf16 %v3372_v14 }
 0x1ee   : > { %v5309_v25 = vsel %vm3716_vm3, %v3600_v17, %v5266_v34  ;;  %v3604_v27 = vadd.f32 %v3603_v9, %v3461_v18  ;;  %v3145_v28 = vunpack.c.l.bf16 %v2321_v20  ;;  %v4171_v34 = vunpack.c.l.bf16 %v4337_v36  ;;  %v1782_v18 = vld [vmem:[%s5070_s6 + $0x194] sm:$0xf] }
 0x1ef   : > { %v3146_v30 = vunpack.c.l.bf16 %v2330_v23  ;;  %v3147_v49 = vunpack.c.l.bf16 %v2339_v37  ;;  %v4179_v13 = vunpack.c.l.bf16 %v4339_v7  ;;  %v4180_v16 = vunpack.c.h.bf16 %v4339_v7 }
 0x1f0   : > { %v3605_v32 = vadd.f32 %v3604_v27, %v3462_v26  ;;  %v3273_v35 = vmul.f32 %v4167_v19, %v3145_v28  ;;  %2666 = vperm.xlu2 %4472, %v1776_v24   ;;  %v1789_v24 = vld [vmem:[%s5070_s6 + $0x1b0] sm:$0xf] }
 0x1f1   : > { %v3274_v39 = vmul.f32 %v4168_v22, %v3146_v30  ;;  %2738 = vperm.xlu1 %4471, %v1784_v29   ;;  %v3275_v2 = vmul.f32 %v4171_v34, %v3147_v49  ;;  %v1790_v22 = vld [vmem:[%s5070_s6 + $0x1b4] sm:$0xf]  ;;  %v4340_v29 = vld [vmem:[%s5068_s15 + $0x100] sm:$0xff]  }
 0x1f2   : > { %v3606_v41 = vadd.f32 %v3605_v32, %v3463_v33  ;;  %2729 = vperm.xlu0 %4470, %v1783_v31   ;;  %v4341_v31 = vld [vmem:[%s5068_s15 + $0x108] sm:$0xff]   ;;  %v4183_v36 = vunpack.c.l.bf16 %v4340_v29 }
 0x1f3   : > { %v3373_v42 = vpack.c.bf16 %v3274_v39, %v3273_v35  ;;  %v2343_v43 = vpop.permute.xlu2 %2342  ;;  %v2361_v45 = vpop.permute.xlu1 %2360  ;;  %v4184_v39 = vunpack.c.h.bf16 %v4340_v29 }
 0x1f4   : > { %v3607_v47 = vadd.f32 %v3606_v41, %v3464_v40  ;;  %v2348_v50 = vperm.slane %v2343_v43, %v5153_v52  ;;  %v2366_v53 = vperm.slane %v2361_v45, %v5153_v52  ;;  %v2352_v54 = vpop.permute.xlu0 %2351  ;;  %v4188_v41 = vunpack.c.h.bf16 %v4341_v31 }
 0x1f5   : > { %v3465_v55 = vunpack.c.l.bf16 %v3373_v42  ;;  %v2357_v57 = vperm.slane %v2352_v54, %v5153_v52  ;;  %v3466_v62 = vunpack.c.h.bf16 %v3373_v42 }
 0x1f6   : > { %v3148_v59 = vunpack.c.l.bf16 %v2348_v50  ;;  %v3150_v60 = vunpack.c.l.bf16 %v2366_v53  ;;  %v1785_v50 = vld [vmem:[%s5070_s6 + $0x1a0] sm:$0xf] }
 0x1f7   : > { %v3608_v63 = vadd.f32 %v3607_v47, %v3465_v55  ;;  %v3149_v0 = vunpack.c.l.bf16 %v2357_v57  ;;  %v4187_v47 = vunpack.c.l.bf16 %v4341_v31  ;;  %v1793_v55 = vld [vmem:[%s5070_s6 + $0x1c0] sm:$0xf] }
 0x1f8   : > { %v3276_v3 = vmul.f32 %v4172_v44, %v3148_v59  ;;  %v3278_v4 = vmul.f32 %v4176_v46, %v3150_v60  ;;  %2693 = vperm.xlu2 %4472, %v1779_v58   ;;  %v1792_v59 = vld [vmem:[%s5070_s6 + $0x1bc] sm:$0xf]  ;;  %v4344_v31 = vld [vmem:[%s5068_s15 + $0x120] sm:$0xff]  }
 0x1f9   : > { %v3609_v5 = vadd.f32 %v3608_v63, %v3466_v62  ;;  %v3277_v6 = vmul.f32 %v4175_v56, %v3149_v0  ;;  %2765 = vperm.xlu1 %4471, %v1787_v61  }
 0x1fa   : > { %v3374_v8 = vpack.c.bf16 %v3276_v3, %v3275_v2  ;;  %2756 = vperm.xlu0 %4470, %v1786_v1   ;;  %v4342_v1 = vld [vmem:[%s5068_s15 + $0x110] sm:$0xff]  }
 0x1fb   : > { %v3375_v9 = vpack.c.bf16 %v3278_v4, %v3277_v6  ;;  %v2370_v10 = vpop.permute.xlu2 %2369  ;;  %v2388_v11 = vpop.permute.xlu1 %2387 }
 0x1fc   : > { %v3467_v12 = vunpack.c.l.bf16 %v3374_v8  ;;  %v2375_v14 = vperm.slane %v2370_v10, %v5153_v52  ;;  %v2379_v15 = vpop.permute.xlu0 %2378  ;;  %v3468_v19 = vunpack.c.h.bf16 %v3374_v8  ;;  %v2393_v30 = vperm.slane %v2388_v11, %v5153_v52 }
 0x1fd   : > { %v2384_v17 = vperm.slane %v2379_v15, %v5153_v52  ;;  %v3469_v27 = vunpack.c.l.bf16 %v3375_v9  ;;  %v3470_v33 = vunpack.c.h.bf16 %v3375_v9  ;;  %v4191_v9 = vunpack.c.l.bf16 %v4342_v1  ;;  %v1788_v15 = vld [vmem:[%s5070_s6 + $0x1ac] sm:$0xf] }
 0x1fe   : > { %v3610_v20 = vadd.f32 %v3609_v5, %v3467_v12  ;;  %v3151_v21 = vunpack.c.l.bf16 %v2375_v14  ;;  %v3153_v42 = vunpack.c.l.bf16 %v2393_v30 }
 0x1ff   : > { %v3152_v23 = vunpack.c.l.bf16 %v2384_v17 }
 0x200   : > { %v3611_v26 = vadd.f32 %v3610_v20, %v3468_v19  ;;  %v3279_v28 = vmul.f32 %v4179_v13, %v3151_v21  ;;  %2720 = vperm.xlu2 %4472, %v1782_v18   ;;  %v3281_v60 = vmul.f32 %v4183_v36, %v3153_v42  ;;  %v4192_v13 = vunpack.c.h.bf16 %v4342_v1  ;;  %v1795_v19 = vld [vmem:[%s5070_s6 + $0x1c8] sm:$0xf] }
 0x201   : > { %v3280_v32 = vmul.f32 %v4180_v16, %v3152_v23  ;;  %2792 = vperm.xlu1 %4471, %v1790_v22   ;;  %v1794_v22 = vld [vmem:[%s5070_s6 + $0x1c4] sm:$0xf] }
 0x202   : > { %v3612_v35 = vadd.f32 %v3611_v26, %v3469_v27  ;;  %2783 = vperm.xlu0 %4470, %v1789_v24   ;;  %v4343_v27 = vld [vmem:[%s5068_s15 + $0x118] sm:$0xff]  }
 0x203   : > { %v3376_v37 = vpack.c.bf16 %v3280_v32, %v3279_v28  ;;  %v2397_v38 = vpop.permute.xlu2 %2396  ;;  %v2415_v40 = vpop.permute.xlu1 %2414 }
 0x204   : > { %v3613_v34 = vadd.f32 %v3612_v35, %v3470_v33  ;;  %v2402_v43 = vperm.slane %v2397_v38, %v5153_v52  ;;  %v2420_v44 = vperm.slane %v2415_v40, %v5153_v52  ;;  %v2406_v45 = vpop.permute.xlu0 %2405  ;;  %v4195_v35 = vunpack.c.l.bf16 %v4343_v27 }
 0x205   : > { %v3471_v46 = vunpack.c.l.bf16 %v3376_v37  ;;  %v2411_v49 = vperm.slane %v2406_v45, %v5153_v52  ;;  %v3472_v56 = vunpack.c.h.bf16 %v3376_v37  ;;  %v4196_v38 = vunpack.c.h.bf16 %v4343_v27 }
 0x206   : > { %v3154_v53 = vunpack.c.l.bf16 %v2402_v43  ;;  %v3156_v54 = vunpack.c.l.bf16 %v2420_v44 }
 0x207   : > { %v3614_v57 = vadd.f32 %v3613_v34, %v3471_v46  ;;  %v3155_v58 = vunpack.c.l.bf16 %v2411_v49  ;;  %v4200_v34 = vunpack.c.h.bf16 %v4344_v31  ;;  %v4199_v46 = vunpack.c.l.bf16 %v4344_v31  ;;  %v1791_v49 = vld [vmem:[%s5070_s6 + $0x1b8] sm:$0xf] }
 0x208   : > { %v3282_v61 = vmul.f32 %v4184_v39, %v3154_v53  ;;  %v3284_v62 = vmul.f32 %v4188_v41, %v3156_v54  ;;  %2747 = vperm.xlu2 %4472, %v1785_v50  }
 0x209   : > { %v3615_v63 = vadd.f32 %v3614_v57, %v3472_v56  ;;  %v3283_v0 = vmul.f32 %v4187_v47, %v3155_v58  ;;  %2819 = vperm.xlu1 %4471, %v1793_v55   ;;  %v1796_v58 = vld [vmem:[%s5070_s6 + $0x1cc] sm:$0xf] }
 0x20a   : > { %v3377_v2 = vpack.c.bf16 %v3282_v61, %v3281_v60  ;;  %2810 = vperm.xlu0 %4470, %v1792_v59  }
 0x20b   : > { %v3616_v3 = vrot.slane %v3615_v63, 4  ;;  %v3378_v4 = vpack.c.bf16 %v3284_v62, %v3283_v0  ;;  %v2424_v5 = vpop.permute.xlu2 %2423  ;;  %v2442_v6 = vpop.permute.xlu1 %2441  ;;  %v4345_v0 = vld [vmem:[%s5068_s15 + $0x128] sm:$0xff]  }
 0x20c   : > { %v3473_v7 = vunpack.c.l.bf16 %v3377_v2  ;;  %v3474_v8 = vunpack.c.h.bf16 %v3377_v2  ;;  %v2429_v10 = vperm.slane %v2424_v5, %v5153_v52  ;;  %v2433_v11 = vpop.permute.xlu0 %2432  ;;  %v2447_v28 = vperm.slane %v2442_v6, %v5153_v52 }
 0x20d   : > { %v3617_v12 = vadd.f32 %v3616_v3, %v3615_v63  ;;  %v2438_v14 = vperm.slane %v2433_v11, %v5153_v52  ;;  %v3475_v17 = vunpack.c.l.bf16 %v3378_v4  ;;  %v3476_v23 = vunpack.c.h.bf16 %v3378_v4 }
 0x20e   : > { %v3622_v16 = vadd.f32 %v3474_v8, %v3473_v7  ;;  %v3157_v18 = vunpack.c.l.bf16 %v2429_v10  ;;  %v3159_v40 = vunpack.c.l.bf16 %v2447_v28  ;;  %v4203_v5 = vunpack.c.l.bf16 %v4345_v0  ;;  %v1803_v10 = vld [vmem:[%s5070_s6 + $0x1e8] sm:$0xf] }
 0x20f   : > { %v3618_v20 = vrot.slane %v3617_v12, 2  ;;  %v3158_v21 = vunpack.c.l.bf16 %v2438_v14  ;;  %v4204_v8 = vunpack.c.h.bf16 %v4345_v0  ;;  %v1798_v14 = vld [vmem:[%s5070_s6 + $0x1d4] sm:$0xf] }
 0x210   : > { %v3623_v24 = vadd.f32 %v3622_v16, %v3475_v17  ;;  %v3285_v26 = vmul.f32 %v4191_v9, %v3157_v18  ;;  %2774 = vperm.xlu2 %4472, %v1788_v15   ;;  %v3287_v59 = vmul.f32 %v4195_v35, %v3159_v40  ;;  %v1797_v16 = vld [vmem:[%s5070_s6 + $0x1d0] sm:$0xf] }
 0x211   : > { %v3619_v29 = vadd.f32 %v3618_v20, %v3617_v12  ;;  %v3286_v30 = vmul.f32 %v4192_v13, %v3158_v21  ;;  %2837 = vperm.xlu1 %4471, %v1795_v19   ;;  %v4346_v20 = vld [vmem:[%s5068_s15 + $0x130] sm:$0xff]  }
 0x212   : > { %v3624_v32 = vadd.f32 %v3623_v24, %v3476_v23  ;;  %2828 = vperm.xlu0 %4470, %v1794_v22   ;;  %v4347_v22 = vld [vmem:[%s5068_s15 + $0x138] sm:$0xff]   ;;  %v4207_v27 = vunpack.c.l.bf16 %v4346_v20 }
 0x213   : > { %v3620_v33 = vrot.slane %v3619_v29, 1  ;;  %v3379_v36 = vpack.c.bf16 %v3286_v30, %v3285_v26  ;;  %v2451_v37 = vpop.permute.xlu2 %2450  ;;  %v2469_v39 = vpop.permute.xlu1 %2468  ;;  %v4208_v30 = vunpack.c.h.bf16 %v4346_v20  ;;  %v4211_v40 = vunpack.c.l.bf16 %v4347_v22 }
 0x214   : > { %v2456_v41 = vperm.slane %v2451_v37, %v5153_v52  ;;  %v2474_v42 = vperm.slane %v2469_v39, %v5153_v52  ;;  %v2460_v43 = vpop.permute.xlu0 %2459 }
 0x215   : > { %v3621_v44 = vadd.f32 %v3620_v33, %v3619_v29  ;;  %v3477_v45 = vunpack.c.l.bf16 %v3379_v36  ;;  %v2465_v47 = vperm.slane %v2460_v43, %v5153_v52  ;;  %v3478_v55 = vunpack.c.h.bf16 %v3379_v36  ;;  %v1800_v43 = vld [vmem:[%s5070_s6 + $0x1dc] sm:$0xf] }
 0x216   : > { %v3160_v50 = vunpack.c.l.bf16 %v2456_v41  ;;  %v3162_v53 = vunpack.c.l.bf16 %v2474_v42 }
 0x217   : > { %v5352_v54 = vsel %vm3718_vm4, %v3621_v44, %v5309_v25  ;;  %v3625_v56 = vadd.f32 %v3624_v32, %v3477_v45  ;;  %v3161_v57 = vunpack.c.l.bf16 %v2465_v47  ;;  %v4212_v32 = vunpack.c.h.bf16 %v4347_v22  ;;  %v1799_v47 = vld [vmem:[%s5070_s6 + $0x1d8] sm:$0xf] }
 0x218   : > { %v3288_v60 = vmul.f32 %v4196_v38, %v3160_v50  ;;  %v3290_v61 = vmul.f32 %v4200_v34, %v3162_v53  ;;  %2801 = vperm.xlu2 %4472, %v1791_v49  }
 0x219   : > { %v3626_v62 = vadd.f32 %v3625_v56, %v3478_v55  ;;  %v3289_v63 = vmul.f32 %v4199_v46, %v3161_v57  ;;  %3743 = vperm.xlu1 %4471, %v5151_v51   ;;  %v4348_v57 = vld [vmem:[%s5068_s15 + $0x140] sm:$0xff]  }
 0x21a   : > { %v3380_v1 = vpack.c.bf16 %v3288_v60, %v3287_v59  ;;  %2846 = vperm.xlu0 %4470, %v1796_v58  }
 0x21b   : > { %v3381_v25 = vpack.c.bf16 %v3290_v61, %v3289_v63  ;;  %v2478_v2 = vpop.permute.xlu2 %2477  ;;  %v2496_v3 = vpop.permute.xlu1 %2495  ;;  %v4215_v63 = vunpack.c.l.bf16 %v4348_v57 }
 0x21c   : > { %v3479_v4 = vunpack.c.l.bf16 %v3380_v1  ;;  %v2483_v6 = vperm.slane %v2478_v2, %v5153_v52  ;;  %v2487_v7 = vpop.permute.xlu0 %2486  ;;  %v3480_v11 = vunpack.c.h.bf16 %v3380_v1  ;;  %v2501_v21 = vperm.slane %v2496_v3, %v5153_v52 }
 0x21d   : > { %v2492_v9 = vperm.slane %v2487_v7, %v5153_v52  ;;  %v3481_v18 = vunpack.c.l.bf16 %v3381_v25  ;;  %v3482_v24 = vunpack.c.h.bf16 %v3381_v25  ;;  %v4216_v25 = vunpack.c.h.bf16 %v4348_v57 }
 0x21e   : > { %v3627_v12 = vadd.f32 %v3626_v62, %v3479_v4  ;;  %v3163_v13 = vunpack.c.l.bf16 %v2483_v6  ;;  %v3165_v35 = vunpack.c.l.bf16 %v2501_v21  ;;  %v1802_v6 = vld [vmem:[%s5070_s6 + $0x1e4] sm:$0xf] }
 0x21f   : > { %v3164_v15 = vunpack.c.l.bf16 %v2492_v9  ;;  %v1801_v9 = vld [vmem:[%s5070_s6 + $0x1e0] sm:$0xf] }
 0x220   : > { %v3628_v17 = vadd.f32 %v3627_v12, %v3480_v11  ;;  %v3291_v19 = vmul.f32 %v4203_v5, %v3163_v13  ;;  %2909 = vperm.xlu2 %4472, %v1803_v10   ;;  %v3293_v49 = vmul.f32 %v4207_v27, %v3165_v35  ;;  %v4349_v13 = vld [vmem:[%s5068_s15 + $0x148] sm:$0xff]  }
 0x221   : > { %v3292_v23 = vmul.f32 %v4204_v8, %v3164_v15  ;;  %2864 = vperm.xlu1 %4471, %v1798_v14   ;;  %v4350_v15 = vld [vmem:[%s5068_s15 + $0x150] sm:$0xff]   ;;  %v4220_v22 = vunpack.c.h.bf16 %v4349_v13 }
 0x222   : > { %v3629_v26 = vadd.f32 %v3628_v17, %v3481_v18  ;;  %2855 = vperm.xlu0 %4470, %v1797_v16   ;;  %v4219_v18 = vunpack.c.l.bf16 %v4349_v13  ;;  %v4224_v27 = vunpack.c.h.bf16 %v4350_v15 }
 0x223   : > { %v3382_v28 = vpack.c.bf16 %v3292_v23, %v3291_v19  ;;  %v2505_v29 = vpop.permute.xlu2 %2504  ;;  %v2523_v31 = vpop.permute.xlu1 %2522 }
 0x224   : > { %v3630_v33 = vadd.f32 %v3629_v26, %v3482_v24  ;;  %v2510_v36 = vperm.slane %v2505_v29, %v5153_v52  ;;  %v2528_v37 = vperm.slane %v2523_v31, %v5153_v52  ;;  %v2514_v38 = vpop.permute.xlu0 %2513 }
 0x225   : > { %v3483_v39 = vunpack.c.l.bf16 %v3382_v28  ;;  %v2519_v41 = vperm.slane %v2514_v38, %v5153_v52  ;;  %v3484_v44 = vunpack.c.h.bf16 %v3382_v28 }
 0x226   : > { %v3166_v34 = vunpack.c.l.bf16 %v2510_v36  ;;  %v3168_v42 = vunpack.c.l.bf16 %v2528_v37  ;;  %v1805_v36 = vld [vmem:[%s5070_s6 + $0x1f0] sm:$0xf] }
 0x227   : > { %v3631_v45 = vadd.f32 %v3630_v33, %v3483_v39  ;;  %v3167_v46 = vunpack.c.l.bf16 %v2519_v41 }
 0x228   : > { %v3294_v50 = vmul.f32 %v4208_v30, %v3166_v34  ;;  %v3296_v53 = vmul.f32 %v4212_v32, %v3168_v42  ;;  %v4223_v30 = vunpack.c.l.bf16 %v4350_v15 }
 0x229   : > { %v3632_v55 = vadd.f32 %v3631_v45, %v3484_v44  ;;  %v3295_v56 = vmul.f32 %v4211_v40, %v3167_v46  ;;  %2882 = vperm.xlu1 %4471, %v1800_v43   ;;  %v1804_v40 = vld [vmem:[%s5070_s6 + $0x1ec] sm:$0xf]  ;;  %v4351_v44 = vld [vmem:[%s5068_s15 + $0x158] sm:$0xff]  }
 0x22a   : > { %v3383_v58 = vpack.c.bf16 %v3294_v50, %v3293_v49  ;;  %2873 = vperm.xlu0 %4470, %v1799_v47  }
 0x22b   : > { %v3384_v59 = vpack.c.bf16 %v3296_v53, %v3295_v56  ;;  %v2532_v60 = vpop.permute.xlu2 %2531  ;;  %v2550_v61 = vpop.permute.xlu1 %2549  ;;  %v4227_v53 = vunpack.c.l.bf16 %v4351_v44 }
 0x22c   : > { %v3485_v62 = vunpack.c.l.bf16 %v3383_v58  ;;  %v2537_v0 = vperm.slane %v2532_v60, %v5153_v52  ;;  %v2541_v1 = vpop.permute.xlu0 %2540  ;;  %v3486_v3 = vunpack.c.h.bf16 %v3383_v58  ;;  %v2555_v7 = vperm.slane %v2550_v61, %v5153_v52 }
 0x22d   : > { %v2546_v2 = vperm.slane %v2541_v1, %v5153_v52  ;;  %v3487_v11 = vunpack.c.l.bf16 %v3384_v59  ;;  %v3488_v16 = vunpack.c.h.bf16 %v3384_v59  ;;  %v4228_v61 = vunpack.c.h.bf16 %v4351_v44 }
 0x22e   : > { %v3633_v4 = vadd.f32 %v3632_v55, %v3485_v62  ;;  %v3169_v5 = vunpack.c.l.bf16 %v2537_v0  ;;  %v3171_v19 = vunpack.c.l.bf16 %v2555_v7 }
 0x22f   : > { %v3170_v8 = vunpack.c.l.bf16 %v2546_v2  ;;  %v1807_v2 = vld [vmem:[%s5070_s6 + $0x1f8] sm:$0xf] }
 0x230   : > { %v3634_v10 = vadd.f32 %v3633_v4, %v3486_v3  ;;  %v3297_v12 = vmul.f32 %v4215_v63, %v3169_v5  ;;  %v3299_v37 = vmul.f32 %v4219_v18, %v3171_v19  ;;  %v1806_v5 = vld [vmem:[%s5070_s6 + $0x1f4] sm:$0xf] }
 0x231   : > { %v3298_v14 = vmul.f32 %v4216_v25, %v3170_v8  ;;  %2900 = vperm.xlu1 %4471, %v1802_v6  }
 0x232   : > { %v3635_v17 = vadd.f32 %v3634_v10, %v3487_v11  ;;  %2891 = vperm.xlu0 %4470, %v1801_v9   ;;  %v4352_v9 = vld [vmem:[%s5068_s15 + $0x160] sm:$0xff]   ;;  %v4353_v11 = vld [vmem:[%s5068_s15 + $0x168] sm:$0xff]  }
 0x233   : > { %v3385_v20 = vpack.c.bf16 %v3298_v14, %v3297_v12  ;;  %v2559_v21 = vpop.permute.xlu2 %2558  ;;  %v2577_v23 = vpop.permute.xlu1 %2576  ;;  %v4232_v19 = vunpack.c.h.bf16 %v4352_v9 }
 0x234   : > { %v3636_v24 = vadd.f32 %v3635_v17, %v3488_v16  ;;  %v2564_v26 = vperm.slane %v2559_v21, %v5153_v52  ;;  %v2582_v28 = vperm.slane %v2577_v23, %v5153_v52  ;;  %v2568_v29 = vpop.permute.xlu0 %2567  ;;  %v4231_v16 = vunpack.c.l.bf16 %v4352_v9 }
 0x235   : > { %v2573_v31 = vperm.slane %v2568_v29, %v5153_v52  ;;  %v3489_v38 = vunpack.c.l.bf16 %v3385_v20  ;;  %v3490_v34 = vunpack.c.h.bf16 %v3385_v20  ;;  %v4236_v21 = vunpack.c.h.bf16 %v4353_v11 }
 0x236   : > { %v3637_v32 = vrot.slane %v3636_v24, 4  ;;  %v3172_v33 = vunpack.c.l.bf16 %v2564_v26  ;;  %v3174_v35 = vunpack.c.l.bf16 %v2582_v28  ;;  %v4235_v28 = vunpack.c.l.bf16 %v4353_v11 }
 0x237   : > { %v3173_v39 = vunpack.c.l.bf16 %v2573_v31  ;;  %v3643_v57 = vadd.f32 %v3490_v34, %v3489_v38  ;;  %v4354_v34 = vld [vmem:[%s5068_s15 + $0x170] sm:$0xff]  }
 0x238   : > { %v3638_v41 = vadd.f32 %v3637_v32, %v3636_v24  ;;  %v3300_v42 = vmul.f32 %v4220_v22, %v3172_v33  ;;  %v3302_v43 = vmul.f32 %v4224_v27, %v3174_v35 }
 0x239   : > { %v3301_v45 = vmul.f32 %v4223_v30, %v3173_v39  ;;  %2927 = vperm.xlu1 %4471, %v1805_v36   ;;  %v1808_v36 = vld [vmem:[%s5070_s6 + $0x1fc] sm:$0xf]  ;;  %s5547_s6 = scalar_lea.vmem (!%p4047_p7), [#allocation7], %s5066_s12 }
 0x23a   : > { %v3639_v46 = vrot.slane %v3638_v41, 2  ;;  %v3386_v47 = vpack.c.bf16 %v3300_v42, %v3299_v37  ;;  %2918 = vperm.xlu0 %4470, %v1804_v40  }
 0x23b   : > { %v3387_v49 = vpack.c.bf16 %v3302_v43, %v3301_v45  ;;  %v2586_v50 = vpop.permute.xlu2 %2585  ;;  %v2604_v55 = vpop.permute.xlu1 %2603 }
 0x23c   : > { %v3640_v56 = vadd.f32 %v3639_v46, %v3638_v41  ;;  %v3491_v58 = vunpack.c.l.bf16 %v3386_v47  ;;  %v2591_v59 = vperm.slane %v2586_v50, %v5153_v52  ;;  %v2595_v60 = vpop.permute.xlu0 %2594  ;;  %v3492_v0 = vunpack.c.h.bf16 %v3386_v47 }
 0x23d   : > { %v2600_v62 = vperm.slane %v2595_v60, %v5153_v52  ;;  %v3493_v3 = vunpack.c.l.bf16 %v3387_v49  ;;  %v2609_v10 = vperm.slane %v2604_v55, %v5153_v52  ;;  %v3494_v14 = vunpack.c.h.bf16 %v3387_v49 }
 0x23e   : > { %v3641_v63 = vrot.slane %v3640_v56, 1  ;;  %v3644_v1 = vadd.f32 %v3643_v57, %v3491_v58  ;;  %v3175_v25 = vunpack.c.l.bf16 %v2591_v59  ;;  %v4239_v47 = vunpack.c.l.bf16 %v4354_v34 }
 0x23f   : > { %v3176_v4 = vunpack.c.l.bf16 %v2600_v62  ;;  %v3177_v23 = vunpack.c.l.bf16 %v2609_v10 }
 0x240   : > { %v3642_v6 = vadd.f32 %v3641_v63, %v3640_v56  ;;  %v3645_v7 = vadd.f32 %v3644_v1, %v3492_v0  ;;  %v3303_v8 = vmul.f32 %v4227_v53, %v3175_v25  ;;  %v4240_v53 = vunpack.c.h.bf16 %v4354_v34  ;;  %v4355_v63 = vld [vmem:[%s5068_s15 + $0x178] sm:$0xff]   ;;  %v4356_v1 = vld [vmem:[%s5068_s15 + $0x180] sm:$0xff]  }
 0x241   : > { %v3304_v12 = vmul.f32 %v4228_v61, %v3176_v4  ;;  %2945 = vperm.xlu1 %4471, %v1807_v2   ;;  %v3305_v37 = vmul.f32 %v4231_v16, %v3177_v23  ;;  %v4243_v4 = vunpack.c.l.bf16 %v4355_v63  ;;  %v4248_v9 = vunpack.c.h.bf16 %v4356_v1 }
 0x242   : > { %v5392_v13 = vsel %vm3720_vm5, %v3642_v6, %v5352_v54  ;;  %v3646_v15 = vadd.f32 %v3645_v7, %v3493_v3  ;;  %2936 = vperm.xlu0 %4470, %v1806_v5   ;;  %v4244_v7 = vunpack.c.h.bf16 %v4355_v63 }
 0x243   : > { %v3388_v17 = vpack.c.bf16 %v3304_v12, %v3303_v8  ;;  %v2613_v18 = vpop.permute.xlu2 %2612  ;;  %v2631_v20 = vpop.permute.xlu1 %2630 }
 0x244   : > { %v3647_v22 = vadd.f32 %v3646_v15, %v3494_v14  ;;  %v2618_v24 = vperm.slane %v2613_v18, %v5153_v52  ;;  %v2636_v26 = vperm.slane %v2631_v20, %v5153_v52  ;;  %v2622_v27 = vpop.permute.xlu0 %2621 }
 0x245   : > { %v3495_v54 = vunpack.c.l.bf16 %v3388_v17  ;;  %v2627_v29 = vperm.slane %v2622_v27, %v5153_v52  ;;  %v3496_v32 = vunpack.c.h.bf16 %v3388_v17  ;;  %v4247_v17 = vunpack.c.l.bf16 %v4356_v1 }
 0x246   : > { %v3178_v30 = vunpack.c.l.bf16 %v2618_v24  ;;  %v3180_v31 = vunpack.c.l.bf16 %v2636_v26 }
 0x247   : > { %v3648_v33 = vadd.f32 %v3647_v22, %v3495_v54  ;;  %v3179_v35 = vunpack.c.l.bf16 %v2627_v29  ;;  %v4357_v29 = vld [vmem:[%s5068_s15 + $0x188] sm:$0xff]  }
 0x248   : > { %v3306_v38 = vmul.f32 %v4232_v19, %v3178_v30  ;;  %v3308_v39 = vmul.f32 %v4236_v21, %v3180_v31 }
 0x249   : > { %v3649_v40 = vadd.f32 %v3648_v33, %v3496_v32  ;;  %v3307_v41 = vmul.f32 %v4235_v28, %v3179_v35 }
 0x24a   : > { %v3389_v42 = vpack.c.bf16 %v3306_v38, %v3305_v37  ;;  %2954 = vperm.xlu0 %4470, %v1808_v36   ;;  %v4251_v36 = vunpack.c.l.bf16 %v4357_v29 }
 0x24b   : > { %v3390_v43 = vpack.c.bf16 %v3308_v39, %v3307_v41  ;;  %v2640_v44 = vpop.permute.xlu2 %2639  ;;  %v2658_v45 = vpop.permute.xlu1 %2657  ;;  %v4252_v39 = vunpack.c.h.bf16 %v4357_v29 }
 0x24c   : > { %v3497_v46 = vunpack.c.l.bf16 %v3389_v42  ;;  %v2645_v49 = vperm.slane %v2640_v44, %v5153_v52  ;;  %v2649_v50 = vpop.permute.xlu0 %2648  ;;  %v3498_v56 = vunpack.c.h.bf16 %v3389_v42  ;;  %v2663_v0 = vperm.slane %v2658_v45, %v5153_v52 }
 0x24d   : > { %v2654_v55 = vperm.slane %v2649_v50, %v5153_v52  ;;  %v3499_v61 = vunpack.c.l.bf16 %v3390_v43  ;;  %v3500_v2 = vunpack.c.h.bf16 %v3390_v43 }
 0x24e   : > { %v3650_v57 = vadd.f32 %v3649_v40, %v3497_v46  ;;  %v3181_v58 = vunpack.c.l.bf16 %v2645_v49  ;;  %v3183_v11 = vunpack.c.l.bf16 %v2663_v0  ;;  %v4358_v46 = vld [vmem:[%s5068_s15 + $0x190] sm:$0xff]   ;;  %v4359_v49 = vld [vmem:[%s5068_s15 + $0x198] sm:$0xff]  }
 0x24f   : > { %v3182_v59 = vunpack.c.l.bf16 %v2654_v55 }
 0x250   : > { %v3651_v60 = vadd.f32 %v3650_v57, %v3498_v56  ;;  %v3309_v62 = vmul.f32 %v4239_v47, %v3181_v58  ;;  %v3311_v24 = vmul.f32 %v4243_v4, %v3183_v11  ;;  %v4255_v57 = vunpack.c.l.bf16 %v4358_v46 }
 0x251   : > { %v3310_v25 = vmul.f32 %v4240_v53, %v3182_v59 }
 0x252   : > { %v3652_v3 = vadd.f32 %v3651_v60, %v3499_v61  ;;  %v4256_v60 = vunpack.c.h.bf16 %v4358_v46 }
 0x253   : > { %v3391_v5 = vpack.c.bf16 %v3310_v25, %v3309_v62  ;;  %v2667_v6 = vpop.permute.xlu2 %2666  ;;  %v2685_v8 = vpop.permute.xlu1 %2684  ;;  %v4260_v62 = vunpack.c.h.bf16 %v4359_v49 }
 0x254   : > { %v3653_v10 = vadd.f32 %v3652_v3, %v3500_v2  ;;  %v2672_v12 = vperm.slane %v2667_v6, %v5153_v52  ;;  %v2690_v14 = vperm.slane %v2685_v8, %v5153_v52  ;;  %v2676_v15 = vpop.permute.xlu0 %2675 }
 0x255   : > { %v3501_v16 = vunpack.c.l.bf16 %v3391_v5  ;;  %v2681_v18 = vperm.slane %v2676_v15, %v5153_v52  ;;  %v3502_v21 = vunpack.c.h.bf16 %v3391_v5  ;;  %v4259_v5 = vunpack.c.l.bf16 %v4359_v49 }
 0x256   : > { %v3184_v19 = vunpack.c.l.bf16 %v2672_v12  ;;  %v3186_v20 = vunpack.c.l.bf16 %v2690_v14 }
 0x257   : > { %v3654_v22 = vadd.f32 %v3653_v10, %v3501_v16  ;;  %v3185_v23 = vunpack.c.l.bf16 %v2681_v18 }
 0x258   : > { %v3312_v26 = vmul.f32 %v4244_v7, %v3184_v19  ;;  %v3314_v27 = vmul.f32 %v4248_v9, %v3186_v20  ;;  %v4360_v20 = vld [vmem:[%s5068_s15 + $0x1a0] sm:$0xff]  }
 0x259   : > { %v3655_v54 = vadd.f32 %v3654_v22, %v3502_v21  ;;  %v3313_v28 = vmul.f32 %v4247_v17, %v3185_v23 }
 0x25a   : > { %v3392_v30 = vpack.c.bf16 %v3312_v26, %v3311_v24 }
 0x25b   : > { %v3393_v31 = vpack.c.bf16 %v3314_v27, %v3313_v28  ;;  %v2694_v32 = vpop.permute.xlu2 %2693  ;;  %v2712_v33 = vpop.permute.xlu1 %2711  ;;  %v4263_v28 = vunpack.c.l.bf16 %v4360_v20 }
 0x25c   : > { %v3503_v35 = vunpack.c.l.bf16 %v3392_v30  ;;  %v2699_v37 = vperm.slane %v2694_v32, %v5153_v52  ;;  %v2703_v38 = vpop.permute.xlu0 %2702  ;;  %v3504_v41 = vunpack.c.h.bf16 %v3392_v30  ;;  %v2717_v47 = vperm.slane %v2712_v33, %v5153_v52 }
 0x25d   : > { %v2708_v40 = vperm.slane %v2703_v38, %v5153_v52  ;;  %v3505_v50 = vunpack.c.l.bf16 %v3393_v31  ;;  %v3506_v53 = vunpack.c.h.bf16 %v3393_v31  ;;  %v4264_v31 = vunpack.c.h.bf16 %v4360_v20 }
 0x25e   : > { %v3656_v34 = vadd.f32 %v3655_v54, %v3503_v35  ;;  %v3187_v42 = vunpack.c.l.bf16 %v2699_v37  ;;  %v3189_v0 = vunpack.c.l.bf16 %v2717_v47 }
 0x25f   : > { %v3188_v43 = vunpack.c.l.bf16 %v2708_v40  ;;  %v3664_v3 = vadd.f32 %v3506_v53, %v3505_v50 }
 0x260   : > { %v3657_v44 = vadd.f32 %v3656_v34, %v3504_v41  ;;  %v3315_v45 = vmul.f32 %v4251_v36, %v3187_v42  ;;  %v3317_v15 = vmul.f32 %v4255_v57, %v3189_v0  ;;  %v4361_v34 = vld [vmem:[%s5068_s15 + $0x1a8] sm:$0xff]  }
 0x261   : > { %v3316_v55 = vmul.f32 %v4252_v39, %v3188_v43  ;;  %v4362_v43 = vld [vmem:[%s5068_s15 + $0x1b0] sm:$0xff]   ;;  %v4267_v47 = vunpack.c.l.bf16 %v4361_v34  ;;  %v4268_v53 = vunpack.c.h.bf16 %v4361_v34 }
 0x262   : > { %v3658_v56 = vrot.slane %v3657_v44, 4 }
 0x263   : > { %v3394_v58 = vpack.c.bf16 %v3316_v55, %v3315_v45  ;;  %v2721_v59 = vpop.permute.xlu2 %2720  ;;  %v2739_v61 = vpop.permute.xlu1 %2738  ;;  %v4272_v55 = vunpack.c.h.bf16 %v4362_v43 }
 0x264   : > { %v3659_v63 = vadd.f32 %v3658_v56, %v3657_v44  ;;  %v2726_v1 = vperm.slane %v2721_v59, %v5153_v52  ;;  %v2744_v25 = vperm.slane %v2739_v61, %v5153_v52  ;;  %v2730_v2 = vpop.permute.xlu0 %2729 }
 0x265   : > { %v3507_v4 = vunpack.c.l.bf16 %v3394_v58  ;;  %v2735_v6 = vperm.slane %v2730_v2, %v5153_v52  ;;  %v3508_v10 = vunpack.c.h.bf16 %v3394_v58 }
 0x266   : > { %v3660_v7 = vrot.slane %v3659_v63, 2  ;;  %v3190_v8 = vunpack.c.l.bf16 %v2726_v1  ;;  %v3192_v9 = vunpack.c.l.bf16 %v2744_v25 }
 0x267   : > { %v3665_v11 = vadd.f32 %v3664_v3, %v3507_v4  ;;  %v3191_v12 = vunpack.c.l.bf16 %v2735_v6 }
 0x268   : > { %v3661_v14 = vadd.f32 %v3660_v7, %v3659_v63  ;;  %v3318_v16 = vmul.f32 %v4256_v60, %v3190_v8  ;;  %v3320_v17 = vmul.f32 %v4260_v62, %v3192_v9  ;;  %v4271_v62 = vunpack.c.l.bf16 %v4362_v43  ;;  %v4363_v9 = vld [vmem:[%s5068_s15 + $0x1b8] sm:$0xff]   ;;  %v4477_v43 = vld [vmem:[%s5098_s11] sm:$0xff] }
 0x269   : > { %v3666_v18 = vadd.f32 %v3665_v11, %v3508_v10  ;;  %v3319_v19 = vmul.f32 %v4259_v5, %v3191_v12 }
 0x26a   : > { %v3662_v21 = vrot.slane %v3661_v14, 1  ;;  %v3395_v22 = vpack.c.bf16 %v3318_v16, %v3317_v15  ;;  %v4275_v16 = vunpack.c.l.bf16 %v4363_v9 }
 0x26b   : > { %v3396_v23 = vpack.c.bf16 %v3320_v17, %v3319_v19  ;;  %v2748_v24 = vpop.permute.xlu2 %2747  ;;  %v2766_v26 = vpop.permute.xlu1 %2765  ;;  %v4276_v19 = vunpack.c.h.bf16 %v4363_v9 }
 0x26c   : > { %v3663_v27 = vadd.f32 %v3662_v21, %v3661_v14  ;;  %v3509_v54 = vunpack.c.l.bf16 %v3395_v22  ;;  %v2753_v29 = vperm.slane %v2748_v24, %v5153_v52  ;;  %v2757_v30 = vpop.permute.xlu0 %2756  ;;  %v3510_v35 = vunpack.c.h.bf16 %v3395_v22 }
 0x26d   : > { %v2762_v32 = vperm.slane %v2757_v30, %v5153_v52  ;;  %v3511_v40 = vunpack.c.l.bf16 %v3396_v23  ;;  %v2771_v42 = vperm.slane %v2766_v26, %v5153_v52  ;;  %v3512_v45 = vunpack.c.h.bf16 %v3396_v23 }
 0x26e   : > { %v5420_v33 = vsel %vm3722_vm6, %v3663_v27, %v5392_v13  ;;  %v3667_v36 = vadd.f32 %v3666_v18, %v3509_v54  ;;  %v3193_v37 = vunpack.c.l.bf16 %v2753_v29 }
 0x26f   : > { %v3194_v38 = vunpack.c.l.bf16 %v2762_v32  ;;  %v3195_v57 = vunpack.c.l.bf16 %v2771_v42 }
 0x270   : > { %v3668_v39 = vadd.f32 %v3667_v36, %v3510_v35  ;;  %v3321_v41 = vmul.f32 %v4263_v28, %v3193_v37 }
 0x271   : > { %v3322_v44 = vmul.f32 %v4264_v31, %v3194_v38  ;;  %v3323_v4 = vmul.f32 %v4267_v47, %v3195_v57 }
 0x272   : > { %v3669_v46 = vadd.f32 %v3668_v39, %v3511_v40 }
 0x273   : > { %v3397_v49 = vpack.c.bf16 %v3322_v44, %v3321_v41  ;;  %v2775_v50 = vpop.permute.xlu2 %2774  ;;  %v2793_v13 = vpop.permute.xlu1 %2792 }
 0x274   : > { %v3670_v56 = vadd.f32 %v3669_v46, %v3512_v45  ;;  %v2780_v58 = vperm.slane %v2775_v50, %v5153_v52  ;;  %v2798_v59 = vperm.slane %v2793_v13, %v5153_v52  ;;  %v2784_v60 = vpop.permute.xlu0 %2783  ;;  %v4364_v50 = vld [vmem:[%s5068_s15 + $0x1c0] sm:$0xff]  }
 0x275   : > { %v3513_v61 = vunpack.c.l.bf16 %v3397_v49  ;;  %v2789_v63 = vperm.slane %v2784_v60, %v5153_v52  ;;  %v3514_v25 = vunpack.c.h.bf16 %v3397_v49  ;;  %v4279_v60 = vunpack.c.l.bf16 %v4364_v50 }
 0x276   : > { %v3196_v0 = vunpack.c.l.bf16 %v2780_v58  ;;  %v3198_v1 = vunpack.c.l.bf16 %v2798_v59  ;;  %v4365_v58 = vld [vmem:[%s5068_s15 + $0x1c8] sm:$0xff]  }
 0x277   : > { %v3671_v2 = vadd.f32 %v3670_v56, %v3513_v61  ;;  %v3197_v3 = vunpack.c.l.bf16 %v2789_v63  ;;  %v4284_v63 = vunpack.c.h.bf16 %v4365_v58 }
 0x278   : > { %v3324_v5 = vmul.f32 %v4268_v53, %v3196_v0  ;;  %v3326_v6 = vmul.f32 %v4272_v55, %v3198_v1  ;;  %v4280_v55 = vunpack.c.h.bf16 %v4364_v50 }
 0x279   : > { %v3672_v7 = vadd.f32 %v3671_v2, %v3514_v25  ;;  %v3325_v8 = vmul.f32 %v4271_v62, %v3197_v3  ;;  %v4283_v25 = vunpack.c.l.bf16 %v4365_v58  ;;  %v4369_v58 = vld [vmem:[%s5068_s15 + $0x1e8] sm:$0xff]  }
 0x27a   : > { %v3398_v10 = vpack.c.bf16 %v3324_v5, %v3323_v4 }
 0x27b   : > { %v3399_v11 = vpack.c.bf16 %v3326_v6, %v3325_v8  ;;  %v2802_v12 = vpop.permute.xlu2 %2801  ;;  %v2820_v14 = vpop.permute.xlu1 %2819  ;;  %v4366_v6 = vld [vmem:[%s5068_s15 + $0x1d0] sm:$0xff]  }
 0x27c   : > { %v3515_v15 = vunpack.c.l.bf16 %v3398_v10  ;;  %v2807_v17 = vperm.slane %v2802_v12, %v5153_v52  ;;  %v2811_v18 = vpop.permute.xlu0 %2810  ;;  %v3516_v21 = vunpack.c.h.bf16 %v3398_v10  ;;  %v2825_v47 = vperm.slane %v2820_v14, %v5153_v52 }
 0x27d   : > { %v2816_v20 = vperm.slane %v2811_v18, %v5153_v52  ;;  %v3517_v27 = vunpack.c.l.bf16 %v3399_v11  ;;  %v3518_v29 = vunpack.c.h.bf16 %v3399_v11  ;;  %v4287_v18 = vunpack.c.l.bf16 %v4366_v6 }
 0x27e   : > { %v3673_v22 = vadd.f32 %v3672_v7, %v3515_v15  ;;  %v3199_v23 = vunpack.c.l.bf16 %v2807_v17  ;;  %v3201_v61 = vunpack.c.l.bf16 %v2825_v47  ;;  %v4288_v15 = vunpack.c.h.bf16 %v4366_v6 }
 0x27f   : > { %v3200_v24 = vunpack.c.l.bf16 %v2816_v20 }
 0x280   : > { %v3674_v26 = vadd.f32 %v3673_v22, %v3516_v21  ;;  %v3327_v54 = vmul.f32 %v4275_v16, %v3199_v23  ;;  %v3329_v10 = vmul.f32 %v4279_v60, %v3201_v61  ;;  %v4367_v22 = vld [vmem:[%s5068_s15 + $0x1d8] sm:$0xff]  }
 0x281   : > { %v3328_v28 = vmul.f32 %v4276_v19, %v3200_v24 }
 0x282   : > { %v3675_v30 = vadd.f32 %v3674_v26, %v3517_v27 }
 0x283   : > { %v3400_v31 = vpack.c.bf16 %v3328_v28, %v3327_v54  ;;  %v2838_v32 = vpop.permute.xlu1 %2837 }
 0x284   : > { %v3676_v35 = vadd.f32 %v3675_v30, %v3518_v29  ;;  %v2829_v36 = vpop.permute.xlu0 %2828  ;;  %v2843_v59 = vperm.slane %v2838_v32, %v5153_v52  ;;  %v4292_v29 = vunpack.c.h.bf16 %v4367_v22  ;;  %v4291_v32 = vunpack.c.l.bf16 %v4367_v22 }
 0x285   : > { %v3519_v37 = vunpack.c.l.bf16 %v3400_v31  ;;  %v3520_v38 = vunpack.c.h.bf16 %v3400_v31  ;;  %v2834_v42 = vperm.slane %v2829_v36, %v5153_v52 }
 0x286   : > { %v3203_v5 = vunpack.c.l.bf16 %v2843_v59 }
 0x287   : > { %v3677_v39 = vadd.f32 %v3676_v35, %v3519_v37  ;;  %v3202_v56 = vunpack.c.l.bf16 %v2834_v42 }
 0x288   : > { %v3331_v16 = vmul.f32 %v4283_v25, %v3203_v5  ;;  %v4300_v5 = vunpack.c.h.bf16 %v4369_v58 }
 0x289   : > { %v3678_v40 = vadd.f32 %v3677_v39, %v3520_v38  ;;  %v3330_v2 = vmul.f32 %v4280_v55, %v3202_v56  ;;  %v4368_v38 = vld [vmem:[%s5068_s15 + $0x1e0] sm:$0xff]  }
 0x28a   : > { %v4296_v42 = vunpack.c.h.bf16 %v4368_v38 }
 0x28b   : > { %v3679_v41 = vrot.slane %v3678_v40, 4  ;;  %v3744_v34 = vpop.permute.xlu1 %3743  ;;  %v3401_v14 = vpack.c.bf16 %v3330_v2, %v3329_v10 }
 0x28c   : > { %v3746_v44 = vsub.f32 %v4477_v43, %v3744_v34  ;;  %v2847_v45 = vpop.permute.xlu0 %2846 }
 0x28d   : > { %v3680_v46 = vadd.f32 %v3679_v41, %v3678_v40  ;;  %v2852_v13 = vperm.slane %v2847_v45, %v5153_v52  ;;  %v3521_v23 = vunpack.c.l.bf16 %v3401_v14  ;;  %v3522_v27 = vunpack.c.h.bf16 %v3401_v14  ;;  %v2910_v45 = vpop.permute.xlu2 %2909  ;;  %v4370_v14 = vld [vmem:[%s5068_s15 + $0x1f0] sm:$0xff]  }
 0x28e   : > { %v3747_v49 = vmul.f32 1.442695, %v3746_v44 }
 0x28f   : > { %v3681_v53 = vrot.slane %v3680_v46, 2  ;;  %v3204_v0 = vunpack.c.l.bf16 %v2852_v13  ;;  %v3685_v36 = vadd.f32 %v3522_v27, %v3521_v23  ;;  %v4304_v23 = vunpack.c.h.bf16 %v4370_v14 }
 0x290   : > { %4473 = vpow2.f32 %v3747_v49  ;;  %v4295_v49 = vunpack.c.l.bf16 %v4368_v38 }
 0x291   : > { %v3682_v57 = vadd.f32 %v3681_v53, %v3680_v46  ;;  %v3332_v12 = vmul.f32 %v4284_v63, %v3204_v0  ;;  %v4299_v0 = vunpack.c.l.bf16 %v4369_v58 }
 0x293   : > { %v3683_v62 = vrot.slane %v3682_v57, 1  ;;  %v2865_v1 = vpop.permute.xlu1 %2864  ;;  %v3402_v20 = vpack.c.bf16 %v3332_v12, %v3331_v16 }
 0x294   : > { %v2856_v3 = vpop.permute.xlu0 %2855  ;;  %v2870_v7 = vperm.slane %v2865_v1, %v5153_v52 }
 0x295   : > { %v3684_v4 = vadd.f32 %v3683_v62, %v3682_v57  ;;  %v2861_v8 = vperm.slane %v2856_v3, %v5153_v52  ;;  %v3523_v30 = vunpack.c.l.bf16 %v3402_v20  ;;  %v3524_v46 = vunpack.c.h.bf16 %v3402_v20 }
 0x296   : > { %v4474_v9 = vpop.eup %4473  ;;  %v3206_v17 = vunpack.c.l.bf16 %v2870_v7  ;;  %v2915_v57 = vperm.slane %v2910_v45, %v5153_v52 }
 0x297   : > { %v5442_v11 = vsel %vm3724_vm7, %v3684_v4, %v5420_v33  ;;  %3749 = vadd.xlane.f32.xlu1 %v4474_v9  ;;  %v3205_v19 = vunpack.c.l.bf16 %v2861_v8  ;;  %v3686_v39 = vadd.f32 %v3685_v36, %v3523_v30  ;;  %v4371_v30 = vld [vmem:[%s5068_s15 + $0x1f8] sm:$0xff]  }
 0x298   : > { %v3334_v54 = vmul.f32 %v4288_v15, %v3206_v17  ;;  %v3211_v1 = vunpack.c.l.bf16 %v2915_v57 }
 0x299   : > { %v3333_v33 = vmul.f32 %v4287_v18, %v3205_v19  ;;  %v3687_v13 = vadd.f32 %v3686_v39, %v3524_v46  ;;  %v4303_v19 = vunpack.c.l.bf16 %v4370_v14  ;;  %v4308_v39 = vunpack.c.h.bf16 %v4371_v30 }
 0x29a   : > { %v3339_v9 = vmul.f32 %v4299_v0, %v3211_v1 }
 0x29b   : > { %v2883_v21 = vpop.permute.xlu1 %2882  ;;  %v3403_v37 = vpack.c.bf16 %v3334_v54, %v3333_v33 }
 0x29c   : > { %v2888_v24 = vperm.slane %v2883_v21, %v5153_v52  ;;  %v2874_v26 = vpop.permute.xlu0 %2873 }
 0x29d   : > { %v2879_v28 = vperm.slane %v2874_v26, %v5153_v52  ;;  %v3525_v47 = vunpack.c.l.bf16 %v3403_v37  ;;  %v3526_v62 = vunpack.c.h.bf16 %v3403_v37  ;;  %v4307_v37 = vunpack.c.l.bf16 %v4371_v30 }
 0x29e   : > { %v3208_v31 = vunpack.c.l.bf16 %v2888_v24 }
 0x29f   : > { %v3207_v35 = vunpack.c.l.bf16 %v2879_v28  ;;  %v3688_v59 = vadd.f32 %v3687_v13, %v3525_v47 }
 0x2a0   : > { %v3336_v40 = vmul.f32 %v4292_v29, %v3208_v31 }
 0x2a1   : > { %v3335_v41 = vmul.f32 %v4291_v32, %v3207_v35  ;;  %v3689_v3 = vadd.f32 %v3688_v59, %v3526_v62 }
 0x2a3   : > { %v2901_v34 = vpop.permute.xlu1 %2900  ;;  %v3404_v55 = vpack.c.bf16 %v3336_v40, %v3335_v41 }
 0x2a4   : > { %v2906_v43 = vperm.slane %v2901_v34, %v5153_v52  ;;  %v2892_v44 = vpop.permute.xlu0 %2891 }
 0x2a5   : > { %v2897_v50 = vperm.slane %v2892_v44, %v5153_v52  ;;  %v3527_v63 = vunpack.c.l.bf16 %v3404_v55  ;;  %v3528_v10 = vunpack.c.h.bf16 %v3404_v55 }
 0x2a6   : > { %v3210_v53 = vunpack.c.l.bf16 %v2906_v43 }
 0x2a7   : > { %v3209_v56 = vunpack.c.l.bf16 %v2897_v50  ;;  %v3690_v7 = vadd.f32 %v3689_v3, %v3527_v63  ;;  %v3537_v63 = vld [vmem:[#allocation2] sm:$0xff] }
 0x2a8   : > { %v3338_v60 = vmul.f32 %v4296_v42, %v3210_v53 }
 0x2a9   : > { %v3337_v61 = vmul.f32 %v4295_v49, %v3209_v56  ;;  %v3691_v17 = vadd.f32 %v3690_v7, %v3528_v10 }
 0x2ab   : > { %v2928_v25 = vpop.permute.xlu1 %2927  ;;  %v3405_v4 = vpack.c.bf16 %v3338_v60, %v3337_v61 }
 0x2ac   : > { %v2919_v2 = vpop.permute.xlu0 %2918  ;;  %v2933_v15 = vperm.slane %v2928_v25, %v5153_v52  ;;  %v3736_v25 = vsub.f32 %v5148_v48, %v5151_v51 }
 0x2ad   : > { %v2924_v6 = vperm.slane %v2919_v2, %v5153_v52  ;;  %v3529_v12 = vunpack.c.l.bf16 %v3405_v4  ;;  %v3530_v27 = vunpack.c.h.bf16 %v3405_v4  ;;  %v3739_v4 = vld [vmem:[#allocation4] sm:$0xff] }
 0x2ae   : > { %v3213_v22 = vunpack.c.l.bf16 %v2933_v15  ;;  %v3737_v2 = vmul.f32 1.442695, %v3736_v25 }
 0x2af   : > { %v3212_v8 = vunpack.c.l.bf16 %v2924_v6  ;;  %v3692_v21 = vadd.f32 %v3691_v17, %v3529_v12 }
 0x2b0   : > { %v3341_v29 = vmul.f32 %v4303_v19, %v3213_v22  ;;  %4475 = vpow2.f32 %v3737_v2 }
 0x2b1   : > { %v3340_v16 = vmul.f32 %v4300_v5, %v3212_v8  ;;  %v3693_v28 = vadd.f32 %v3692_v21, %v3530_v27 }
 0x2b3   : > { %v3406_v18 = vpack.c.bf16 %v3340_v16, %v3339_v9  ;;  %v2946_v26 = vpop.permute.xlu1 %2945 }
 0x2b4   : > { %v2937_v20 = vpop.permute.xlu0 %2936  ;;  %v2951_v31 = vperm.slane %v2946_v26, %v5153_v52 }
 0x2b5   : > { %v2942_v24 = vperm.slane %v2937_v20, %v5153_v52  ;;  %v3531_v54 = vunpack.c.l.bf16 %v3406_v18  ;;  %v3532_v40 = vunpack.c.h.bf16 %v3406_v18 }
 0x2b6   : > { %v3215_v41 = vunpack.c.l.bf16 %v2951_v31  ;;  %v4476_v3 = vpop.eup %4475 }
 0x2b7   : > { %v3214_v33 = vunpack.c.l.bf16 %v2942_v24  ;;  %v3694_v35 = vadd.f32 %v3693_v28, %v3531_v54  ;;  %v3740_v5 = vmul.f32 %v4476_v3, %v3739_v4 }
 0x2b8   : > { %v3343_v45 = vmul.f32 %v4307_v37, %v3215_v41 }
 0x2b9   : > { %v3342_v32 = vmul.f32 %v4304_v23, %v3214_v33  ;;  %v3695_v43 = vadd.f32 %v3694_v35, %v3532_v40 }
 0x2bb   : > { %v3407_v36 = vpack.c.bf16 %v3342_v32, %v3341_v29 }
 0x2bc   : > { %v2955_v38 = vpop.permute.xlu0 %2954 }
 0x2bd   : > { %v3533_v34 = vunpack.c.l.bf16 %v3407_v36  ;;  %v2960_v42 = vperm.slane %v2955_v38, %v5153_v52  ;;  %v3534_v49 = vunpack.c.h.bf16 %v3407_v36 }
 0x2bf   : > { %v3216_v44 = vunpack.c.l.bf16 %v2960_v42  ;;  %v3696_v46 = vadd.f32 %v3695_v43, %v3533_v34 }
 0x2c1   : > { %v3344_v47 = vmul.f32 %v4308_v39, %v3216_v44  ;;  %v3697_v53 = vadd.f32 %v3696_v46, %v3534_v49 }
 0x2c3   : > { %v3408_v50 = vpack.c.bf16 %v3344_v47, %v3343_v45 }
 0x2c5   : > { %v3535_v13 = vunpack.c.l.bf16 %v3408_v50  ;;  %v3536_v55 = vunpack.c.h.bf16 %v3408_v50 }
 0x2c7   : > { %v3698_v56 = vadd.f32 %v3697_v53, %v3535_v13 }
 0x2c9   : > { %v3699_v57 = vadd.f32 %v3698_v56, %v3536_v55 }
 0x2cb   : > { %v3700_v58 = vrot.slane %v3699_v57, 4 }
 0x2cd   : > { %v3701_v59 = vadd.f32 %v3700_v58, %v3699_v57 }
 0x2cf   : > { %v3702_v60 = vrot.slane %v3701_v59, 2 }
 0x2d1   : > { %v3703_v61 = vadd.f32 %v3702_v60, %v3701_v59 }
 0x2d3   : > { %v3704_v62 = vrot.slane %v3703_v61, 1 }
 0x2d5   : > { %v3705_v52 = vadd.f32 %v3704_v62, %v3703_v61 }
 0x2d7   : > { %v3727_v0 = vsel %vm3726_vm8, %v3705_v52, %v5442_v11 }
 0x2d8   : > { %v3729_v1 = vadd.f32 %v3727_v0, %v3537_v63 }
 0x2da   : > { %3730 = vst [vmem:[#allocation2] sm:$0xff] %v3729_v1 }
 0x309   : > { %3758 = sbr.rel (%p4047_p7) target bundleno = 1068 (0x42c), region = 146 }
 0x30a   : > { %v3750_v6 = vpop.xlane.xlu1 %3749 }
 0x30b   : > { %v3751_v7 = vadd.f32 %v3750_v6, %v3740_v5 }
 0x30d   : > { %3753 = vst.msk [vmem:[#allocation4] sm:$0xff] %vm3752_vm1, %v3751_v7 }
 0x30e   : > { %v3759_v11 = vld [vmem:[%s1540_s21] sm:$0xff]  ;;  %v3781_v48 = vld [vmem:[%s5547_s6] sm:$0xf]  ;;  %v4625_v51 = vmov 0   ;;  %v3819_v38 = vld [vmem:[#allocation3] sm:$0xff]  ;;  %v3843_v3 = vstv %s4048_s18  ;;  %v3840_v5 = vstv %s3839_s0 }
 0x30f   : > { %4478 = vset.pattern.permute.xlu0 %v4625_v51  ;;  %4479 = vrcp.f32 %v3759_v11  ;;  %v3782_v8 = vunpack.c.l.bf16 %v3781_v48  ;;  %v3771_v14 = vand.u32 2147483648, %v3759_v11  ;;  %vm3765_vm9 = vweird.f32 %v3759_v11  ;;  %v3774_v22 = vld [vmem:[#allocation2] sm:$0xff] }
 0x310   : > { %v3769_v16 = vand.u32 2147483647, %v3759_v11  ;;  %v3818_v37 = vld [vmem:[%s1536_s20] sm:$0xff] }
 0x311   : > { %v3789_v9 = vmul.f32 %v3782_v8, %v3782_v8  ;;  %v3772_v18 = vor.u32 1.1754944e-38, %v3771_v14  ;;  %v3820_v41 = vsub.f32 %v3818_v37, %v3819_v38 }
 0x312   : > { %vm3770_vm12 = vcmp.eq.f32.partialorder %v3769_v16, 8.507059e+37 }
 0x313   : > { %3790 = vadd.xlane.f32.xlu1 %v3789_v9  ;;  %v3821_v45 = vmul.f32 1.442695, %v3820_v41 }
 0x314   : > { %v3823_v28 = vld [vmem:[#allocation4] sm:$0xff] }
 0x315   : > { %v4480_v10 = vpop.eup %4479  ;;  %vm3829_vm13 = vweird.f32 %v3823_v28  ;;  %v3835_v49 = vand.u32 2147483648, %v3823_v28  ;;  %v3833_v53 = vand.u32 2147483647, %v3823_v28 }
 0x316   : > { %v3761_v12 = vmul.f32 %v4480_v10, %v3759_v11  ;;  %vm3766_vm10 = vweird.f32 %v4480_v10 }
 0x317   : > { %vm3767_vm11 = vmor %vm3765_vm9, %vm3766_vm10  ;;  %v3836_v58 = vor.u32 1.1754944e-38, %v3835_v49  ;;  %vm3834_vm5 = vcmp.eq.f32.partialorder %v3833_v53, 8.507059e+37 }
 0x318   : > { %v3762_v15 = vsub.f32 1.0, %v3761_v12 }
 0x31a   : > { %v3763_v17 = vmul.f32 %v4480_v10, %v3762_v15 }
 0x31c   : > { %v3764_v19 = vadd.f32 %v4480_v10, %v3763_v17 }
 0x31e   : > { %v3768_v20 = vsel %vm3767_vm11, %v4480_v10, %v3764_v19 }
 0x31f   : > { %v3773_v21 = vsel %vm3770_vm12, %v3772_v18, %v3768_v20 }
 0x320   : > { %3777 = vperm.xlu0 %4478, %v3773_v21  }
 0x386   : > { %v3791_v54 = vpop.xlane.xlu1 %3790 }
 0x387   : > { %v3803_v33 = vmax.f32 %v3791_v54, 1e-16 }
 0x389   : > { %4481 = vrsqrt.f32 %v3803_v33  ;;  %vm3810_vm15 = vweird.f32 %v3803_v33 }
 0x38a   : > { %4483 = vrcp.f32 %v3823_v28 }
 0x38f   : > { %v4482_v29 = vpop.eup %4481 }
 0x390   : > { %v4484_v30 = vpop.eup %4483  ;;  %v3805_v31 = vmul.f32 %v4482_v29, %v3803_v33  ;;  %vm3811_vm0 = vweird.f32 %v4482_v29 }
 0x391   : > { %v3825_v36 = vmul.f32 %v4484_v30, %v3823_v28  ;;  %vm3830_vm14 = vweird.f32 %v4484_v30  ;;  %vm3812_vm4 = vmor %vm3810_vm15, %vm3811_vm0 }
 0x392   : > { %v3778_v23 = vpop.permute.xlu0 %3777  ;;  %v3806_v39 = vmul.f32 %v4482_v29, %v3805_v31  ;;  %vm5476_vm2 = vmor %vm3829_vm13, %vm3830_vm14 }
 0x393   : > { %v3780_v24 = vmul.f32 %v3778_v23, %v3774_v22  ;;  %v3826_v40 = vsub.f32 1.0, %v3825_v36 }
 0x394   : > { %v3807_v34 = vmul.f32 0.5, %v3806_v39 }
 0x395   : > { %v3786_v26 = vmul.f32 %v3780_v24, %v3780_v24  ;;  %v3783_v27 = vmul.f32 %v3782_v8, %v3780_v24  ;;  %v3827_v43 = vmul.f32 %v4484_v30, %v3826_v40 }
 0x396   : > { %v3808_v46 = vsub.f32 1.5, %v3807_v34 }
 0x397   : > { %3787 = vadd.xlane.f32.xlu0 %v3786_v26  ;;  %3784 = vadd.xlane.f32.xlu1 %v3783_v27  ;;  %v3828_v50 = vadd.f32 %v4484_v30, %v3827_v43 }
 0x398   : > { %v3809_v57 = vmul.f32 %v4482_v29, %v3808_v46 }
 0x399   : > { %v3832_v59 = vsel %vm5476_vm2, %v4484_v30, %v3828_v50 }
 0x39a   : > { %v3813_v63 = vsel %vm3812_vm4, %v4482_v29, %v3809_v57  ;;  %v3837_v52 = vsel %vm3834_vm5, %v3836_v58, %v3832_v59 }
 0x40a   : > { %v3788_v32 = vpop.xlane.xlu0 %3787  ;;  %v3785_v1 = vpop.xlane.xlu1 %3784 }
 0x40b   : > { %v3792_v35 = vmax.f32 %v3788_v32, 1e-16 }
 0x40d   : > { %4485 = vrsqrt.f32 %v3792_v35  ;;  %vm3799_vm6 = vweird.f32 %v3792_v35 }
 0x40e   : > { %4487 = vpow2.f32 %v3821_v45 }
 0x413   : > { %v4486_v42 = vpop.eup %4485 }
 0x414   : > { %v3794_v44 = vmul.f32 %v4486_v42, %v3792_v35  ;;  %vm3800_vm3 = vweird.f32 %v4486_v42  ;;  %v4488_v61 = vpop.eup %4487 }
 0x415   : > { %vm3801_vm7 = vmor %vm3799_vm6, %vm3800_vm3  ;;  %v3838_v25 = vmul.f32 %v4488_v61, %v3837_v52 }
 0x416   : > { %v3795_v47 = vmul.f32 %v4486_v42, %v3794_v44 }
 0x417   : > { %v3844_v6 = vmul.f32 %v3843_v3, %v3838_v25 }
 0x418   : > { %v3796_v13 = vmul.f32 0.5, %v3795_v47 }
 0x41a   : > { %v3797_v56 = vsub.f32 1.5, %v3796_v13 }
 0x41c   : > { %v3798_v60 = vmul.f32 %v4486_v42, %v3797_v56 }
 0x41e   : > { %v3802_v62 = vsel %vm3801_vm7, %v4486_v42, %v3798_v60 }
 0x41f   : > { %v3814_v0 = vmul.f32 %v3813_v63, %v3802_v62 }
 0x421   : > { %v3815_v2 = vmul.f32 %v3814_v0, %v3785_v1 }
 0x423   : > { %v3816_v4 = vadd.f32 1.0, %v3815_v2 }
 0x425   : > { %v3817_v7 = vmul.f32 0.5, %v3816_v4 }
 0x427   : > { %v3841_v11 = vmul.f32 %v3840_v5, %v3817_v7 }
 0x429   : > { %v3845_v48 = vadd.f32 %v3844_v6, %v3841_v11 }
 0x42b   : > { %3846 = vst.msk [vmem:[%s1544_s2] sm:$0xff] %vm3752_vm1, %v3845_v48 }
 0x42c PF: > { %s21_s10 = sadd.s32 1, %s4618_s10   ;;  %s5551_s16 = sld [smem:[#allocation15_spill]] }
 0x42d   : > { %p18_p8 = scmp.ge.s32.totalorder %s21_s10, 6   ;;  %s5552_s20 = sld [smem:[#allocation16_spill]] }
 0x42e   : > { %s5553_s14 = sld [smem:[#allocation13_spill]]  ;;  %s5555_s24 = smov %s4586_s25 }
 0x42f   : > { %s5554_s13 = sld [smem:[#allocation14_spill]]  ;;  %s5556_s25 = smov %s4590_s26 }
 0x430   : > { %s5558_s27 = smov %s4598_s28  ;;  %s5560_s29 = smov %s4610_s8 }
 0x431   : > { %s5561_s30 = smov %s4614_s9  ;;  %20 = sbr.rel (!%p18_p8) target bundleno = 13 (0xd), region = 208 }
 0x432   : > { %s5557_s26 = smov %s5551_s16 }
 0x433   : > { %s5559_s28 = smov %s5552_s20 }
 0x434   : > { %s5562_s8 = smov %s5553_s14 }
 0x435   : > { %s5563_s9 = smov %s5554_s13 }
 0x436   :  { %3866 = vsyncpa [#allocation8], 1 }
 0x437   :  { %3868 = vsyncpa [#allocation8 + $0x1], 1 }
 0x438   :  { %3869 = vsyncpa [#allocation9], 1 }
 0x439   :  { %3871 = vsyncpa [#allocation9 + $0x1], 1 }

</bundles_post_ra>
